<compile_context>
chip_gen: v5e
topology: v5e:2x2
jax: 0.10.0
libtpu: 0.0.40
codegen_flags: <defaults>
</compile_context>

<pallas_src>
import jax
import jax.numpy as jnp
from jax import lax
from jax.experimental import pallas as pl
from jax.experimental.pallas import tpu as pltpu

HIDDEN = 256     # `input` in the PyTorch module
N_ITERS = 10
THRESH = 0.001


def _threshold(x):
    # nn.Threshold(0.001, 0): keep x where x > 0.001, else 0
    return jnp.where(x > THRESH, x, jnp.zeros_like(x))


def _threshold_bf16(x_f32):
    """Fused Threshold(0.001, 0) + bf16 cast for MXU input.

    Mask is computed on the f32 value, the select runs on packed bf16 vregs.
    Numerically identical to `_threshold(x).astype(bf16)` (cast(0) == 0), so
    the bf16-mirror reference does not change.
    """
    xb = x_f32.astype(jnp.bfloat16)
    return jnp.where(x_f32 > THRESH, xb, jnp.zeros_like(xb))


def _round_up(x, m):
    return ((x + m - 1) // m) * m


def tencoder_kernel(y_ref, w0_ref, b0_ref, w1_ref, b1_ref,
                    d0w_ref, d0b_ref, d1w_ref, d1b_ref, out_ref):
    # y and the four weight matrices arrive as bf16 (pre-cast in the wrapper);
    # biases are f32 (1, HIDDEN).
    y = y_ref[...]
    w0 = w0_ref[...]
    w1 = w1_ref[...]
    d0w = d0w_ref[...]
    d1w = d1w_ref[...]
    b0 = b0_ref[...]
    b1 = b1_ref[...]
    d0b = d0b_ref[...]
    d1b = d1b_ref[...]

    # wy1 = w0block(y) ; wy2 = w1block(wy1)   (bf16 MXU inputs, f32 accumulation)
    wy1 = jnp.dot(y, w0, preferred_element_type=jnp.float32) + b0
    wy2 = jnp.dot(wy1.astype(jnp.bfloat16), w1,
                  preferred_element_type=jnp.float32) + b1

    # Hoist loop-invariant bias sums out of the unrolled recurrence
    # (JAX does not CSE broadcast_in_dim).
    wy1b = wy1 + d0b
    wy2b = wy2 + d1b

    def body(i, x2):
        x1 = jnp.dot(_threshold_bf16(x2), d0w,
                     preferred_element_type=jnp.float32) + wy1b
        x2_new = jnp.dot(_threshold_bf16(x1), d1w,
                         preferred_element_type=jnp.float32) + x2 + wy2b
        return x2_new

    x2 = lax.fori_loop(0, N_ITERS, body, wy1, unroll=True)

    out_ref[...] = _threshold(x2)


def _choose_tiles(B, max_block_batch, min_tiles):
    """Balanced batch tiling: minimize padded rows and balance tiles."""
    n_tiles = max(pl.cdiv(B, max_block_batch), min_tiles)
    BT = _round_up(pl.cdiv(B, n_tiles), 8)   # sublane-aligned
    Bp = BT * n_tiles
    return BT, Bp, n_tiles


def tencoder_forward(y, params, *, max_block_batch=512, min_tiles=1):
    """y: [B, feat] float32. params: dict of [in, out] f32 weights / (1, out) biases.

    max_block_batch: cap on the batch tile (512 amortizes the per-matmul MXU
    weight push and per-grid-step overhead; VMEM is not a constraint).
    min_tiles: set >= 2 on v7x for large B so both TensorCores get work.
    """
    B, feat = y.shape
    BT, Bp, n_tiles = _choose_tiles(B, max_block_batch, min_tiles)

    # Cast the activation to bf16 in the wrapper (halves its DMA), then pad.
    y = y.astype(jnp.bfloat16)
    if Bp != B:
        y = jnp.pad(y, ((0, Bp - B), (0, 0)))
    grid = (n_tiles,)

    # Cast matmul weights to bf16 once; keep biases f32.
    bf = jnp.bfloat16
    w0, w1 = params["w0_w"].astype(bf), params["w1_w"].astype(bf)
    d0w, d1w = params["dc0_w"].astype(bf), params["dc1_w"].astype(bf)
    b0, b1 = params["w0_b"], params["w1_b"]
    d0b, d1b = params["dc0_b"], params["dc1_b"]

    const = lambda i: (0, 0)   # weights / biases: same block every grid step (VMEM-resident)
    out = pl.pallas_call(
        tencoder_kernel,
        out_shape=jax.ShapeDtypeStruct((Bp, HIDDEN), jnp.float32),
        grid_spec=pltpu.PrefetchScalarGridSpec(
            num_scalar_prefetch=0,
            grid=grid,
            in_specs=[
                pl.BlockSpec((BT, feat), lambda i: (i, 0)),      # y tile (bf16)
                pl.BlockSpec((feat, HIDDEN), const),             # w0
                pl.BlockSpec((1, HIDDEN), const),                # b0
                pl.BlockSpec((HIDDEN, HIDDEN), const),           # w1
                pl.BlockSpec((1, HIDDEN), const),                # b1
                pl.BlockSpec((HIDDEN, HIDDEN), const),           # d0w
                pl.BlockSpec((1, HIDDEN), const),                # d0b
                pl.BlockSpec((HIDDEN, HIDDEN), const),           # d1w
                pl.BlockSpec((1, HIDDEN), const),                # d1b
            ],
            out_specs=pl.BlockSpec((BT, HIDDEN), lambda i: (i, 0)),
        ),
        compiler_params=pltpu.CompilerParams(
            dimension_semantics=("parallel",)),   # v7x: shard batch tiles over 2 TCs
    )(y, w0, b0, w1, b1, d0w, d0b, d1w, d1b)
    return out[:B]


def init_params(key, feat):
    """Deterministic init mimicking nn.Linear default (uniform(-1/sqrt(fan_in), ...)).
    Weights stored as [in, out]; biases as [1, out] for TPU-friendly 2D layout."""
    ks = jax.random.split(key, 8)

    def lin(kw, kb, fan_in, fan_out):
        bound = 1.0 / jnp.sqrt(fan_in)
        w = jax.random.uniform(kw, (fan_in, fan_out), jnp.float32, -bound, bound)
        b = jax.random.uniform(kb, (1, fan_out), jnp.float32, -bound, bound)
        return w, b

    w0_w, w0_b = lin(ks[0], ks[1], feat, HIDDEN)      # w0block: feat -> 256
    w1_w, w1_b = lin(ks[2], ks[3], HIDDEN, HIDDEN)    # w1block: 256 -> 256
    dc0_w, dc0_b = lin(ks[4], ks[5], HIDDEN, HIDDEN)  # dcblock0
    dc1_w, dc1_b = lin(ks[6], ks[7], HIDDEN, HIDDEN)  # dcblock1
    return dict(w0_w=w0_w, w0_b=w0_b, w1_w=w1_w, w1_b=w1_b,
                dc0_w=dc0_w, dc0_b=dc0_b, dc1_w=dc1_w, dc1_b=dc1_b)


def tencoder_ref_f32(y, p):
    """Pure-JAX f32 reference (matches the PyTorch module exactly)."""
    wy1 = y @ p["w0_w"] + p["w0_b"]
    wy2 = wy1 @ p["w1_w"] + p["w1_b"]
    x2 = wy1
    for _ in range(N_ITERS):
        x1 = _threshold(x2)
        x1 = x1 @ p["dc0_w"] + p["dc0_b"] + wy1
        x20 = _threshold(x1)
        x2 = x20 @ p["dc1_w"] + p["dc1_b"] + x2 + wy2
    return _threshold(x2)


def tencoder_ref_bf16(y, p):
    """Pure-JAX reference mirroring the kernel's numerics (bf16 MXU inputs, f32 acc)."""
    bf = jnp.bfloat16
    w0, w1 = p["w0_w"].astype(bf), p["w1_w"].astype(bf)
    d0w, d1w = p["dc0_w"].astype(bf), p["dc1_w"].astype(bf)
    wy1 = jnp.dot(y.astype(bf), w0, preferred_element_type=jnp.float32) + p["w0_b"]
    wy2 = jnp.dot(wy1.astype(bf), w1, preferred_element_type=jnp.float32) + p["w1_b"]
    wy1b = wy1 + p["dc0_b"]
    wy2b = wy2 + p["dc1_b"]
    x2 = wy1
    for _ in range(N_ITERS):
        x1 = _threshold(x2)
        x1 = jnp.dot(x1.astype(bf), d0w, preferred_element_type=jnp.float32) + wy1b
        x20 = _threshold(x1)
        x2 = jnp.dot(x20.astype(bf), d1w, preferred_element_type=jnp.float32) + x2 + wy2b
    return _threshold(x2)


def _check(B, FEAT, key, **fwd_kwargs):
    k_y, k_p = jax.random.split(key)
    y = jax.random.normal(k_y, (B, FEAT), jnp.float32)
    params = init_params(k_p, FEAT)

    out = jax.block_until_ready(tencoder_forward(y, params, **fwd_kwargs))
    assert out.shape == (B, HIDDEN)

    # Tight check vs a pure-JAX reference with identical (bf16-input) numerics.
    ref_bf16 = tencoder_ref_bf16(y, params)
    assert jnp.allclose(out, ref_bf16, atol=1e-3, rtol=1e-3), \
        "mismatch vs bf16-mirror reference"

    # Loose sanity check vs the exact f32 reference (bf16 drift is expected
    # but must stay small relative to the output magnitude).
    ref_f32 = tencoder_ref_f32(y, params)
    max_diff = float(jnp.max(jnp.abs(out - ref_f32)))
    scale = max(1.0, float(jnp.max(jnp.abs(ref_f32))))
    assert max_diff / scale < 0.1, \
        f"bf16 drift too large vs f32 reference: {max_diff} (scale {scale})"
    return max_diff


if __name__ == "__main__":
    key = jax.random.PRNGKey(0)
    k1, k2, k3 = jax.random.split(key, 3)

    # Small shape consistent with the module (feat=32 input features, batch=8).
    _check(B=8, FEAT=32, key=k1)
    # Balanced-tiling path: B=260 with default settings -> single 264-row tile
    # (1.5% padding instead of the old 49%).
    _check(B=260, FEAT=32, key=k2)
    # Multi-tile grid path: force 3 balanced tiles of 88 rows (Bp=264).
    _check(B=260, FEAT=32, key=k3, max_block_batch=128)

    print("KERNEL_OK")
</pallas_src>

<mosaic_0001>
module attributes {stable_mosaic.version = 11 : i64} {
  func.func @tencoder_kernel(%arg0: i32, %arg1: memref<8x32xbf16, #tpu.memory_space<vmem>>, %arg2: memref<32x256xbf16, #tpu.memory_space<vmem>>, %arg3: memref<1x256xf32, #tpu.memory_space<vmem>>, %arg4: memref<256x256xbf16, #tpu.memory_space<vmem>>, %arg5: memref<1x256xf32, #tpu.memory_space<vmem>>, %arg6: memref<256x256xbf16, #tpu.memory_space<vmem>>, %arg7: memref<1x256xf32, #tpu.memory_space<vmem>>, %arg8: memref<256x256xbf16, #tpu.memory_space<vmem>>, %arg9: memref<1x256xf32, #tpu.memory_space<vmem>>, %arg10: memref<8x256xf32, #tpu.memory_space<vmem>>) attributes {dimension_semantics = [#tpu.dimension_semantics<parallel>], iteration_bounds = array<i64: 1>, scalar_prefetch = 0 : i64, scratch_operands = 0 : i64, tpu.core_type = #tpu.core_type<tc>, window_params = [{transform_indices = @transform_0, window_bounds = array<i64: 8, 32>}, {pipeline_mode = #tpu.pipeline_mode<synchronous>, transform_indices = @transform_1, window_bounds = array<i64: 32, 256>}, {pipeline_mode = #tpu.pipeline_mode<synchronous>, transform_indices = @transform_2, window_bounds = array<i64: 1, 256>}, {pipeline_mode = #tpu.pipeline_mode<synchronous>, transform_indices = @transform_3, window_bounds = array<i64: 256, 256>}, {pipeline_mode = #tpu.pipeline_mode<synchronous>, transform_indices = @transform_4, window_bounds = array<i64: 1, 256>}, {pipeline_mode = #tpu.pipeline_mode<synchronous>, transform_indices = @transform_5, window_bounds = array<i64: 256, 256>}, {pipeline_mode = #tpu.pipeline_mode<synchronous>, transform_indices = @transform_6, window_bounds = array<i64: 1, 256>}, {pipeline_mode = #tpu.pipeline_mode<synchronous>, transform_indices = @transform_7, window_bounds = array<i64: 256, 256>}, {pipeline_mode = #tpu.pipeline_mode<synchronous>, transform_indices = @transform_8, window_bounds = array<i64: 1, 256>}, {transform_indices = @transform_9, window_bounds = array<i64: 8, 256>}]} {
    %c0 = arith.constant 0 : index
    %c0_0 = arith.constant 0 : index
    %0 = vector.load %arg1[%c0, %c0_0] : memref<8x32xbf16, #tpu.memory_space<vmem>>, vector<8x32xbf16>
    %c0_1 = arith.constant 0 : index
    %c0_2 = arith.constant 0 : index
    %1 = vector.load %arg2[%c0_1, %c0_2] : memref<32x256xbf16, #tpu.memory_space<vmem>>, vector<32x256xbf16>
    %c0_3 = arith.constant 0 : index
    %c0_4 = arith.constant 0 : index
    %2 = vector.load %arg4[%c0_3, %c0_4] : memref<256x256xbf16, #tpu.memory_space<vmem>>, vector<256x256xbf16>
    %c0_5 = arith.constant 0 : index
    %c0_6 = arith.constant 0 : index
    %3 = vector.load %arg6[%c0_5, %c0_6] : memref<256x256xbf16, #tpu.memory_space<vmem>>, vector<256x256xbf16>
    %c0_7 = arith.constant 0 : index
    %c0_8 = arith.constant 0 : index
    %4 = vector.load %arg8[%c0_7, %c0_8] : memref<256x256xbf16, #tpu.memory_space<vmem>>, vector<256x256xbf16>
    %c0_9 = arith.constant 0 : index
    %c0_10 = arith.constant 0 : index
    %5 = vector.load %arg3[%c0_9, %c0_10] : memref<1x256xf32, #tpu.memory_space<vmem>>, vector<1x256xf32>
    %c0_11 = arith.constant 0 : index
    %c0_12 = arith.constant 0 : index
    %6 = vector.load %arg5[%c0_11, %c0_12] : memref<1x256xf32, #tpu.memory_space<vmem>>, vector<1x256xf32>
    %c0_13 = arith.constant 0 : index
    %c0_14 = arith.constant 0 : index
    %7 = vector.load %arg7[%c0_13, %c0_14] : memref<1x256xf32, #tpu.memory_space<vmem>>, vector<1x256xf32>
    %c0_15 = arith.constant 0 : index
    %c0_16 = arith.constant 0 : index
    %8 = vector.load %arg9[%c0_15, %c0_16] : memref<1x256xf32, #tpu.memory_space<vmem>>, vector<1x256xf32>
    %cst = arith.constant dense<0.000000e+00> : vector<8x256xf32>
    %9 = tpu.matmul %0, %1, %cst {dimension_numbers = #tpu.dot_dimension_numbers<[1], [0], [0], [1], [0, 0, 1, 1], [], []>} : vector<8x32xbf16>, vector<32x256xbf16>, vector<8x256xf32> -> vector<8x256xf32>
    %10 = vector.broadcast %5 : vector<1x256xf32> to vector<8x256xf32>
    %11 = arith.addf %9, %10 : vector<8x256xf32>
    %12 = arith.truncf %11 : vector<8x256xf32> to vector<8x256xbf16>
    %cst_17 = arith.constant dense<0.000000e+00> : vector<8x256xf32>
    %13 = tpu.matmul %12, %2, %cst_17 {dimension_numbers = #tpu.dot_dimension_numbers<[1], [0], [0], [1], [0, 0, 1, 1], [], []>} : vector<8x256xbf16>, vector<256x256xbf16>, vector<8x256xf32> -> vector<8x256xf32>
    %14 = vector.broadcast %6 : vector<1x256xf32> to vector<8x256xf32>
    %15 = arith.addf %13, %14 : vector<8x256xf32>
    %16 = vector.broadcast %7 : vector<1x256xf32> to vector<8x256xf32>
    %17 = arith.addf %11, %16 : vector<8x256xf32>
    %18 = vector.broadcast %8 : vector<1x256xf32> to vector<8x256xf32>
    %19 = arith.addf %15, %18 : vector<8x256xf32>
    %c0_i32 = arith.constant 0 : i32
    %20 = arith.truncf %11 : vector<8x256xf32> to vector<8x256xbf16>
    %cst_18 = arith.constant 1.000000e-03 : f32
    %21 = vector.broadcast %cst_18 : f32 to vector<8x256xf32>
    %22 = arith.cmpf ogt, %11, %21 : vector<8x256xf32>
    %cst_19 = arith.constant 0.000000e+00 : bf16
    %23 = vector.broadcast %cst_19 : bf16 to vector<8x256xbf16>
    %24 = arith.select %22, %20, %23 : vector<8x256xi1>, vector<8x256xbf16>
    %cst_20 = arith.constant dense<0.000000e+00> : vector<8x256xf32>
    %25 = tpu.matmul %24, %3, %cst_20 {dimension_numbers = #tpu.dot_dimension_numbers<[1], [0], [0], [1], [0, 0, 1, 1], [], []>} : vector<8x256xbf16>, vector<256x256xbf16>, vector<8x256xf32> -> vector<8x256xf32>
    %26 = arith.addf %25, %17 : vector<8x256xf32>
    %27 = arith.truncf %26 : vector<8x256xf32> to vector<8x256xbf16>
    %cst_21 = arith.constant 1.000000e-03 : f32
    %28 = vector.broadcast %cst_21 : f32 to vector<8x256xf32>
    %29 = arith.cmpf ogt, %26, %28 : vector<8x256xf32>
    %cst_22 = arith.constant 0.000000e+00 : bf16
    %30 = vector.broadcast %cst_22 : bf16 to vector<8x256xbf16>
    %31 = arith.select %29, %27, %30 : vector<8x256xi1>, vector<8x256xbf16>
    %cst_23 = arith.constant dense<0.000000e+00> : vector<8x256xf32>
    %32 = tpu.matmul %31, %4, %cst_23 {dimension_numbers = #tpu.dot_dimension_numbers<[1], [0], [0], [1], [0, 0, 1, 1], [], []>} : vector<8x256xbf16>, vector<256x256xbf16>, vector<8x256xf32> -> vector<8x256xf32>
    %33 = arith.addf %32, %11 : vector<8x256xf32>
    %34 = arith.addf %33, %19 : vector<8x256xf32>
    %c1_i32 = arith.constant 1 : i32
    %35 = arith.truncf %34 : vector<8x256xf32> to vector<8x256xbf16>
    %cst_24 = arith.constant 1.000000e-03 : f32
    %36 = vector.broadcast %cst_24 : f32 to vector<8x256xf32>
    %37 = arith.cmpf ogt, %34, %36 : vector<8x256xf32>
    %cst_25 = arith.constant 0.000000e+00 : bf16
    %38 = vector.broadcast %cst_25 : bf16 to vector<8x256xbf16>
    %39 = arith.select %37, %35, %38 : vector<8x256xi1>, vector<8x256xbf16>
    %cst_26 = arith.constant dense<0.000000e+00> : vector<8x256xf32>
    %40 = tpu.matmul %39, %3, %cst_26 {dimension_numbers = #tpu.dot_dimension_numbers<[1], [0], [0], [1], [0, 0, 1, 1], [], []>} : vector<8x256xbf16>, vector<256x256xbf16>, vector<8x256xf32> -> vector<8x256xf32>
    %41 = arith.addf %40, %17 : vector<8x256xf32>
    %42 = arith.truncf %41 : vector<8x256xf32> to vector<8x256xbf16>
    %cst_27 = arith.constant 1.000000e-03 : f32
    %43 = vector.broadcast %cst_27 : f32 to vector<8x256xf32>
    %44 = arith.cmpf ogt, %41, %43 : vector<8x256xf32>
    %cst_28 = arith.constant 0.000000e+00 : bf16
    %45 = vector.broadcast %cst_28 : bf16 to vector<8x256xbf16>
    %46 = arith.select %44, %42, %45 : vector<8x256xi1>, vector<8x256xbf16>
    %cst_29 = arith.constant dense<0.000000e+00> : vector<8x256xf32>
    %47 = tpu.matmul %46, %4, %cst_29 {dimension_numbers = #tpu.dot_dimension_numbers<[1], [0], [0], [1], [0, 0, 1, 1], [], []>} : vector<8x256xbf16>, vector<256x256xbf16>, vector<8x256xf32> -> vector<8x256xf32>
    %48 = arith.addf %47, %34 : vector<8x256xf32>
    %49 = arith.addf %48, %19 : vector<8x256xf32>
    %c2_i32 = arith.constant 2 : i32
    %50 = arith.truncf %49 : vector<8x256xf32> to vector<8x256xbf16>
    %cst_30 = arith.constant 1.000000e-03 : f32
    %51 = vector.broadcast %cst_30 : f32 to vector<8x256xf32>
    %52 = arith.cmpf ogt, %49, %51 : vector<8x256xf32>
    %cst_31 = arith.constant 0.000000e+00 : bf16
    %53 = vector.broadcast %cst_31 : bf16 to vector<8x256xbf16>
    %54 = arith.select %52, %50, %53 : vector<8x256xi1>, vector<8x256xbf16>
    %cst_32 = arith.constant dense<0.000000e+00> : vector<8x256xf32>
    %55 = tpu.matmul %54, %3, %cst_32 {dimension_numbers = #tpu.dot_dimension_numbers<[1], [0], [0], [1], [0, 0, 1, 1], [], []>} : vector<8x256xbf16>, vector<256x256xbf16>, vector<8x256xf32> -> vector<8x256xf32>
    %56 = arith.addf %55, %17 : vector<8x256xf32>
    %57 = arith.truncf %56 : vector<8x256xf32> to vector<8x256xbf16>
    %cst_33 = arith.constant 1.000000e-03 : f32
    %58 = vector.broadcast %cst_33 : f32 to vector<8x256xf32>
    %59 = arith.cmpf ogt, %56, %58 : vector<8x256xf32>
    %cst_34 = arith.constant 0.000000e+00 : bf16
    %60 = vector.broadcast %cst_34 : bf16 to vector<8x256xbf16>
    %61 = arith.select %59, %57, %60 : vector<8x256xi1>, vector<8x256xbf16>
    %cst_35 = arith.constant dense<0.000000e+00> : vector<8x256xf32>
    %62 = tpu.matmul %61, %4, %cst_35 {dimension_numbers = #tpu.dot_dimension_numbers<[1], [0], [0], [1], [0, 0, 1, 1], [], []>} : vector<8x256xbf16>, vector<256x256xbf16>, vector<8x256xf32> -> vector<8x256xf32>
    %63 = arith.addf %62, %49 : vector<8x256xf32>
    %64 = arith.addf %63, %19 : vector<8x256xf32>
    %c3_i32 = arith.constant 3 : i32
    %65 = arith.truncf %64 : vector<8x256xf32> to vector<8x256xbf16>
    %cst_36 = arith.constant 1.000000e-03 : f32
    %66 = vector.broadcast %cst_36 : f32 to vector<8x256xf32>
    %67 = arith.cmpf ogt, %64, %66 : vector<8x256xf32>
    %cst_37 = arith.constant 0.000000e+00 : bf16
    %68 = vector.broadcast %cst_37 : bf16 to vector<8x256xbf16>
    %69 = arith.select %67, %65, %68 : vector<8x256xi1>, vector<8x256xbf16>
    %cst_38 = arith.constant dense<0.000000e+00> : vector<8x256xf32>
    %70 = tpu.matmul %69, %3, %cst_38 {dimension_numbers = #tpu.dot_dimension_numbers<[1], [0], [0], [1], [0, 0, 1, 1], [], []>} : vector<8x256xbf16>, vector<256x256xbf16>, vector<8x256xf32> -> vector<8x256xf32>
    %71 = arith.addf %70, %17 : vector<8x256xf32>
    %72 = arith.truncf %71 : vector<8x256xf32> to vector<8x256xbf16>
    %cst_39 = arith.constant 1.000000e-03 : f32
    %73 = vector.broadcast %cst_39 : f32 to vector<8x256xf32>
    %74 = arith.cmpf ogt, %71, %73 : vector<8x256xf32>
    %cst_40 = arith.constant 0.000000e+00 : bf16
    %75 = vector.broadcast %cst_40 : bf16 to vector<8x256xbf16>
    %76 = arith.select %74, %72, %75 : vector<8x256xi1>, vector<8x256xbf16>
    %cst_41 = arith.constant dense<0.000000e+00> : vector<8x256xf32>
    %77 = tpu.matmul %76, %4, %cst_41 {dimension_numbers = #tpu.dot_dimension_numbers<[1], [0], [0], [1], [0, 0, 1, 1], [], []>} : vector<8x256xbf16>, vector<256x256xbf16>, vector<8x256xf32> -> vector<8x256xf32>
    %78 = arith.addf %77, %64 : vector<8x256xf32>
    %79 = arith.addf %78, %19 : vector<8x256xf32>
    %c4_i32 = arith.constant 4 : i32
    %80 = arith.truncf %79 : vector<8x256xf32> to vector<8x256xbf16>
    %cst_42 = arith.constant 1.000000e-03 : f32
    %81 = vector.broadcast %cst_42 : f32 to vector<8x256xf32>
    %82 = arith.cmpf ogt, %79, %81 : vector<8x256xf32>
    %cst_43 = arith.constant 0.000000e+00 : bf16
    %83 = vector.broadcast %cst_43 : bf16 to vector<8x256xbf16>
    %84 = arith.select %82, %80, %83 : vector<8x256xi1>, vector<8x256xbf16>
    %cst_44 = arith.constant dense<0.000000e+00> : vector<8x256xf32>
    %85 = tpu.matmul %84, %3, %cst_44 {dimension_numbers = #tpu.dot_dimension_numbers<[1], [0], [0], [1], [0, 0, 1, 1], [], []>} : vector<8x256xbf16>, vector<256x256xbf16>, vector<8x256xf32> -> vector<8x256xf32>
    %86 = arith.addf %85, %17 : vector<8x256xf32>
    %87 = arith.truncf %86 : vector<8x256xf32> to vector<8x256xbf16>
    %cst_45 = arith.constant 1.000000e-03 : f32
    %88 = vector.broadcast %cst_45 : f32 to vector<8x256xf32>
    %89 = arith.cmpf ogt, %86, %88 : vector<8x256xf32>
    %cst_46 = arith.constant 0.000000e+00 : bf16
    %90 = vector.broadcast %cst_46 : bf16 to vector<8x256xbf16>
    %91 = arith.select %89, %87, %90 : vector<8x256xi1>, vector<8x256xbf16>
    %cst_47 = arith.constant dense<0.000000e+00> : vector<8x256xf32>
    %92 = tpu.matmul %91, %4, %cst_47 {dimension_numbers = #tpu.dot_dimension_numbers<[1], [0], [0], [1], [0, 0, 1, 1], [], []>} : vector<8x256xbf16>, vector<256x256xbf16>, vector<8x256xf32> -> vector<8x256xf32>
    %93 = arith.addf %92, %79 : vector<8x256xf32>
    %94 = arith.addf %93, %19 : vector<8x256xf32>
    %c5_i32 = arith.constant 5 : i32
    %95 = arith.truncf %94 : vector<8x256xf32> to vector<8x256xbf16>
    %cst_48 = arith.constant 1.000000e-03 : f32
    %96 = vector.broadcast %cst_48 : f32 to vector<8x256xf32>
    %97 = arith.cmpf ogt, %94, %96 : vector<8x256xf32>
    %cst_49 = arith.constant 0.000000e+00 : bf16
    %98 = vector.broadcast %cst_49 : bf16 to vector<8x256xbf16>
    %99 = arith.select %97, %95, %98 : vector<8x256xi1>, vector<8x256xbf16>
    %cst_50 = arith.constant dense<0.000000e+00> : vector<8x256xf32>
    %100 = tpu.matmul %99, %3, %cst_50 {dimension_numbers = #tpu.dot_dimension_numbers<[1], [0], [0], [1], [0, 0, 1, 1], [], []>} : vector<8x256xbf16>, vector<256x256xbf16>, vector<8x256xf32> -> vector<8x256xf32>
    %101 = arith.addf %100, %17 : vector<8x256xf32>
    %102 = arith.truncf %101 : vector<8x256xf32> to vector<8x256xbf16>
    %cst_51 = arith.constant 1.000000e-03 : f32
    %103 = vector.broadcast %cst_51 : f32 to vector<8x256xf32>
    %104 = arith.cmpf ogt, %101, %103 : vector<8x256xf32>
    %cst_52 = arith.constant 0.000000e+00 : bf16
    %105 = vector.broadcast %cst_52 : bf16 to vector<8x256xbf16>
    %106 = arith.select %104, %102, %105 : vector<8x256xi1>, vector<8x256xbf16>
    %cst_53 = arith.constant dense<0.000000e+00> : vector<8x256xf32>
    %107 = tpu.matmul %106, %4, %cst_53 {dimension_numbers = #tpu.dot_dimension_numbers<[1], [0], [0], [1], [0, 0, 1, 1], [], []>} : vector<8x256xbf16>, vector<256x256xbf16>, vector<8x256xf32> -> vector<8x256xf32>
    %108 = arith.addf %107, %94 : vector<8x256xf32>
    %109 = arith.addf %108, %19 : vector<8x256xf32>
    %c6_i32 = arith.constant 6 : i32
    %110 = arith.truncf %109 : vector<8x256xf32> to vector<8x256xbf16>
    %cst_54 = arith.constant 1.000000e-03 : f32
    %111 = vector.broadcast %cst_54 : f32 to vector<8x256xf32>
    %112 = arith.cmpf ogt, %109, %111 : vector<8x256xf32>
    %cst_55 = arith.constant 0.000000e+00 : bf16
    %113 = vector.broadcast %cst_55 : bf16 to vector<8x256xbf16>
    %114 = arith.select %112, %110, %113 : vector<8x256xi1>, vector<8x256xbf16>
    %cst_56 = arith.constant dense<0.000000e+00> : vector<8x256xf32>
    %115 = tpu.matmul %114, %3, %cst_56 {dimension_numbers = #tpu.dot_dimension_numbers<[1], [0], [0], [1], [0, 0, 1, 1], [], []>} : vector<8x256xbf16>, vector<256x256xbf16>, vector<8x256xf32> -> vector<8x256xf32>
    %116 = arith.addf %115, %17 : vector<8x256xf32>
    %117 = arith.truncf %116 : vector<8x256xf32> to vector<8x256xbf16>
    %cst_57 = arith.constant 1.000000e-03 : f32
    %118 = vector.broadcast %cst_57 : f32 to vector<8x256xf32>
    %119 = arith.cmpf ogt, %116, %118 : vector<8x256xf32>
    %cst_58 = arith.constant 0.000000e+00 : bf16
    %120 = vector.broadcast %cst_58 : bf16 to vector<8x256xbf16>
    %121 = arith.select %119, %117, %120 : vector<8x256xi1>, vector<8x256xbf16>
    %cst_59 = arith.constant dense<0.000000e+00> : vector<8x256xf32>
    %122 = tpu.matmul %121, %4, %cst_59 {dimension_numbers = #tpu.dot_dimension_numbers<[1], [0], [0], [1], [0, 0, 1, 1], [], []>} : vector<8x256xbf16>, vector<256x256xbf16>, vector<8x256xf32> -> vector<8x256xf32>
    %123 = arith.addf %122, %109 : vector<8x256xf32>
    %124 = arith.addf %123, %19 : vector<8x256xf32>
    %c7_i32 = arith.constant 7 : i32
    %125 = arith.truncf %124 : vector<8x256xf32> to vector<8x256xbf16>
    %cst_60 = arith.constant 1.000000e-03 : f32
    %126 = vector.broadcast %cst_60 : f32 to vector<8x256xf32>
    %127 = arith.cmpf ogt, %124, %126 : vector<8x256xf32>
    %cst_61 = arith.constant 0.000000e+00 : bf16
    %128 = vector.broadcast %cst_61 : bf16 to vector<8x256xbf16>
    %129 = arith.select %127, %125, %128 : vector<8x256xi1>, vector<8x256xbf16>
    %cst_62 = arith.constant dense<0.000000e+00> : vector<8x256xf32>
    %130 = tpu.matmul %129, %3, %cst_62 {dimension_numbers = #tpu.dot_dimension_numbers<[1], [0], [0], [1], [0, 0, 1, 1], [], []>} : vector<8x256xbf16>, vector<256x256xbf16>, vector<8x256xf32> -> vector<8x256xf32>
    %131 = arith.addf %130, %17 : vector<8x256xf32>
    %132 = arith.truncf %131 : vector<8x256xf32> to vector<8x256xbf16>
    %cst_63 = arith.constant 1.000000e-03 : f32
    %133 = vector.broadcast %cst_63 : f32 to vector<8x256xf32>
    %134 = arith.cmpf ogt, %131, %133 : vector<8x256xf32>
    %cst_64 = arith.constant 0.000000e+00 : bf16
    %135 = vector.broadcast %cst_64 : bf16 to vector<8x256xbf16>
    %136 = arith.select %134, %132, %135 : vector<8x256xi1>, vector<8x256xbf16>
    %cst_65 = arith.constant dense<0.000000e+00> : vector<8x256xf32>
    %137 = tpu.matmul %136, %4, %cst_65 {dimension_numbers = #tpu.dot_dimension_numbers<[1], [0], [0], [1], [0, 0, 1, 1], [], []>} : vector<8x256xbf16>, vector<256x256xbf16>, vector<8x256xf32> -> vector<8x256xf32>
    %138 = arith.addf %137, %124 : vector<8x256xf32>
    %139 = arith.addf %138, %19 : vector<8x256xf32>
    %c8_i32 = arith.constant 8 : i32
    %140 = arith.truncf %139 : vector<8x256xf32> to vector<8x256xbf16>
    %cst_66 = arith.constant 1.000000e-03 : f32
    %141 = vector.broadcast %cst_66 : f32 to vector<8x256xf32>
    %142 = arith.cmpf ogt, %139, %141 : vector<8x256xf32>
    %cst_67 = arith.constant 0.000000e+00 : bf16
    %143 = vector.broadcast %cst_67 : bf16 to vector<8x256xbf16>
    %144 = arith.select %142, %140, %143 : vector<8x256xi1>, vector<8x256xbf16>
    %cst_68 = arith.constant dense<0.000000e+00> : vector<8x256xf32>
    %145 = tpu.matmul %144, %3, %cst_68 {dimension_numbers = #tpu.dot_dimension_numbers<[1], [0], [0], [1], [0, 0, 1, 1], [], []>} : vector<8x256xbf16>, vector<256x256xbf16>, vector<8x256xf32> -> vector<8x256xf32>
    %146 = arith.addf %145, %17 : vector<8x256xf32>
    %147 = arith.truncf %146 : vector<8x256xf32> to vector<8x256xbf16>
    %cst_69 = arith.constant 1.000000e-03 : f32
    %148 = vector.broadcast %cst_69 : f32 to vector<8x256xf32>
    %149 = arith.cmpf ogt, %146, %148 : vector<8x256xf32>
    %cst_70 = arith.constant 0.000000e+00 : bf16
    %150 = vector.broadcast %cst_70 : bf16 to vector<8x256xbf16>
    %151 = arith.select %149, %147, %150 : vector<8x256xi1>, vector<8x256xbf16>
    %cst_71 = arith.constant dense<0.000000e+00> : vector<8x256xf32>
    %152 = tpu.matmul %151, %4, %cst_71 {dimension_numbers = #tpu.dot_dimension_numbers<[1], [0], [0], [1], [0, 0, 1, 1], [], []>} : vector<8x256xbf16>, vector<256x256xbf16>, vector<8x256xf32> -> vector<8x256xf32>
    %153 = arith.addf %152, %139 : vector<8x256xf32>
    %154 = arith.addf %153, %19 : vector<8x256xf32>
    %c9_i32 = arith.constant 9 : i32
    %155 = arith.truncf %154 : vector<8x256xf32> to vector<8x256xbf16>
    %cst_72 = arith.constant 1.000000e-03 : f32
    %156 = vector.broadcast %cst_72 : f32 to vector<8x256xf32>
    %157 = arith.cmpf ogt, %154, %156 : vector<8x256xf32>
    %cst_73 = arith.constant 0.000000e+00 : bf16
    %158 = vector.broadcast %cst_73 : bf16 to vector<8x256xbf16>
    %159 = arith.select %157, %155, %158 : vector<8x256xi1>, vector<8x256xbf16>
    %cst_74 = arith.constant dense<0.000000e+00> : vector<8x256xf32>
    %160 = tpu.matmul %159, %3, %cst_74 {dimension_numbers = #tpu.dot_dimension_numbers<[1], [0], [0], [1], [0, 0, 1, 1], [], []>} : vector<8x256xbf16>, vector<256x256xbf16>, vector<8x256xf32> -> vector<8x256xf32>
    %161 = arith.addf %160, %17 : vector<8x256xf32>
    %162 = arith.truncf %161 : vector<8x256xf32> to vector<8x256xbf16>
    %cst_75 = arith.constant 1.000000e-03 : f32
    %163 = vector.broadcast %cst_75 : f32 to vector<8x256xf32>
    %164 = arith.cmpf ogt, %161, %163 : vector<8x256xf32>
    %cst_76 = arith.constant 0.000000e+00 : bf16
    %165 = vector.broadcast %cst_76 : bf16 to vector<8x256xbf16>
    %166 = arith.select %164, %162, %165 : vector<8x256xi1>, vector<8x256xbf16>
    %cst_77 = arith.constant dense<0.000000e+00> : vector<8x256xf32>
    %167 = tpu.matmul %166, %4, %cst_77 {dimension_numbers = #tpu.dot_dimension_numbers<[1], [0], [0], [1], [0, 0, 1, 1], [], []>} : vector<8x256xbf16>, vector<256x256xbf16>, vector<8x256xf32> -> vector<8x256xf32>
    %168 = arith.addf %167, %154 : vector<8x256xf32>
    %169 = arith.addf %168, %19 : vector<8x256xf32>
    %cst_78 = arith.constant 1.000000e-03 : f32
    %170 = vector.broadcast %cst_78 : f32 to vector<8x256xf32>
    %171 = arith.cmpf ogt, %169, %170 : vector<8x256xf32>
    %cst_79 = arith.constant 0.000000e+00 : f32
    %172 = vector.broadcast %cst_79 : f32 to vector<8x256xf32>
    %173 = arith.select %171, %169, %172 : vector<8x256xi1>, vector<8x256xf32>
    %c0_80 = arith.constant 0 : index
    %c0_81 = arith.constant 0 : index
    %174 = vector.load %arg10[%c0_80, %c0_81] : memref<8x256xf32, #tpu.memory_space<vmem>>, vector<8x256xf32>
    tpu.vector_store %arg10[%c0_80, %c0_81], %173 {strides = array<i32>} : memref<8x256xf32, #tpu.memory_space<vmem>>, vector<8x256xf32>,
    return
  }
  func.func @transform_0(%arg0: i32) -> (i32, i32) {
    %c0_i32 = arith.constant 0 : i32
    %c0_i32_0 = arith.constant 0 : i32
    return %arg0, %c0_i32 : i32, i32
  }
  func.func @transform_1(%arg0: i32) -> (i32, i32) {
    %c0_i32 = arith.constant 0 : i32
    %c0_i32_0 = arith.constant 0 : i32
    %c0_i32_1 = arith.constant 0 : i32
    return %c0_i32, %c0_i32_0 : i32, i32
  }
  func.func @transform_2(%arg0: i32) -> (i32, i32) {
    %c0_i32 = arith.constant 0 : i32
    %c0_i32_0 = arith.constant 0 : i32
    %c0_i32_1 = arith.constant 0 : i32
    return %c0_i32, %c0_i32_0 : i32, i32
  }
  func.func @transform_3(%arg0: i32) -> (i32, i32) {
    %c0_i32 = arith.constant 0 : i32
    %c0_i32_0 = arith.constant 0 : i32
    %c0_i32_1 = arith.constant 0 : i32
    return %c0_i32, %c0_i32_0 : i32, i32
  }
  func.func @transform_4(%arg0: i32) -> (i32, i32) {
    %c0_i32 = arith.constant 0 : i32
    %c0_i32_0 = arith.constant 0 : i32
    %c0_i32_1 = arith.constant 0 : i32
    return %c0_i32, %c0_i32_0 : i32, i32
  }
  func.func @transform_5(%arg0: i32) -> (i32, i32) {
    %c0_i32 = arith.constant 0 : i32
    %c0_i32_0 = arith.constant 0 : i32
    %c0_i32_1 = arith.constant 0 : i32
    return %c0_i32, %c0_i32_0 : i32, i32
  }
  func.func @transform_6(%arg0: i32) -> (i32, i32) {
    %c0_i32 = arith.constant 0 : i32
    %c0_i32_0 = arith.constant 0 : i32
    %c0_i32_1 = arith.constant 0 : i32
    return %c0_i32, %c0_i32_0 : i32, i32
  }
  func.func @transform_7(%arg0: i32) -> (i32, i32) {
    %c0_i32 = arith.constant 0 : i32
    %c0_i32_0 = arith.constant 0 : i32
    %c0_i32_1 = arith.constant 0 : i32
    return %c0_i32, %c0_i32_0 : i32, i32
  }
  func.func @transform_8(%arg0: i32) -> (i32, i32) {
    %c0_i32 = arith.constant 0 : i32
    %c0_i32_0 = arith.constant 0 : i32
    %c0_i32_1 = arith.constant 0 : i32
    return %c0_i32, %c0_i32_0 : i32, i32
  }
  func.func @transform_9(%arg0: i32) -> (i32, i32) {
    %c0_i32 = arith.constant 0 : i32
    %c0_i32_0 = arith.constant 0 : i32
    return %arg0, %c0_i32 : i32, i32
  }
}

</mosaic_0001>

<bundles_post_ra>
// kernel: tpu_custom_call.1
= control target key start
LH: loop header
LB: loop body
LE: loop exit
PB: predicated region body
PF: predicated region fallthrough
CT: control target
= control target key end

     0   :  { %14 = vsyncpa [#allocation3], 0  ;;  %s3874_s0 = inlined_call_operand.hbm [shape: bf16[8,32], index: 0, kind: input, shape index: {}]   ;;  %s3875_s1 = inlined_call_operand.hbm [shape: bf16[32,256], index: 1, kind: input, shape index: {}]   ;;  %s3876_s2 = inlined_call_operand.hbm [shape: f32[1,256], index: 2, kind: input, shape index: {}]   ;;  %s3877_s3 = inlined_call_operand.hbm [shape: bf16[256,256], index: 3, kind: input, shape index: {}]   ;;  %s3878_s4 = inlined_call_operand.vmem [shape: f32[1,256], index: 4, kind: input, shape index: {}]   ;;  %s3879_s5 = inlined_call_operand.hbm [shape: bf16[256,256], index: 5, kind: input, shape index: {}]   ;;  %s3880_s6 = inlined_call_operand.vmem [shape: f32[1,256], index: 6, kind: input, shape index: {}]   ;;  %s3881_s7 = inlined_call_operand.hbm [shape: bf16[256,256], index: 7, kind: input, shape index: {}]   ;;  %s3882_s8 = inlined_call_operand.vmem [shape: f32[1,256], index: 8, kind: input, shape index: {}]   ;;  %s3883_s9 = inlined_call_operand.hbm [shape: f32[8,256], index: 9, kind: output, shape index: {}]  }
   0x1   :  { %15 = vsyncpa [#allocation6], 0 }
   0x2   :  { %16 = vsyncpa [#allocation9], 0 }
   0x3   :  { %17 = vsyncpa [#allocation12], 0  ;;  %s34_s11 = sshll.u32 %s3875_s1, 4  ;;  %s35_s11 = int_to_ptr.hbm [resolvable:$true] %s34_s11 }
   0x4   :  { %18 = vsyncpa [#allocation4], 0  ;;  %s2857_s12 = smov [#allocation5]   ;;  %s58_s16 = sshll.u32 %s3877_s3, 4  ;;  %s59_s16 = int_to_ptr.hbm [resolvable:$true] %s58_s16 }
   0x5   :  { %s36_s13 = sshll.u32 %s2857_s12, 4  ;;  %s2858_s17 = smov 128   ;;  %s37_s13 = int_to_ptr.vmem [resolvable:$true] %s36_s13 }
   0x6   :  { %s2859_s18 = smov 8   ;;  %s2860_s19 = smov [#allocation8]  }
   0x7   :  { %42 = dma.hbm_to_vmem [thread:$0]  %s35_s11, 512, %s37_s13, [#allocation6], %s2858_s17, %s2858_s17, %s2859_s18  }
   0x8   :  { %s60_s20 = sshll.u32 %s2860_s19, 4  ;;  %s24_s22 = sshll.u32 %s3874_s0, 4  ;;  %s61_s20 = int_to_ptr.vmem [resolvable:$true] %s60_s20  ;;  %s25_s22 = int_to_ptr.hbm [resolvable:$true] %s24_s22 }
   0x9   :  { %66 = dma.hbm_to_vmem [thread:$0]  %s59_s16, 4096, %s61_s20, [#allocation9], %s2858_s17, %s2858_s17, %s2859_s18  }
   0xa   :  { %s48_s24 = sshll.u32 %s3876_s2, 4  ;;  %s2861_s25 = smov [#allocation2]   ;;  %s49_s24 = int_to_ptr.hbm [resolvable:$true] %s48_s24 }
   0xb   :  { %s26_s26 = sshll.u32 %s2861_s25, 4  ;;  %s2862_s27 = smov [#allocation7]   ;;  %s27_s26 = int_to_ptr.vmem [resolvable:$true] %s26_s26 }
   0xc   :  { %29 = dma.hbm_to_vmem [thread:$0]  %s25_s22, 64, %s27_s26, [#allocation3]  }
   0xd   :  { %s50_s28 = sshll.u32 %s2862_s27, 4  ;;  %s73_s0 = sshll.u32 %s3879_s5, 4  ;;  %s51_s28 = int_to_ptr.vmem [resolvable:$true] %s50_s28  ;;  %s74_s0 = int_to_ptr.hbm [resolvable:$true] %s73_s0 }
   0xe   :  { %53 = dma.hbm_to_vmem [thread:$0]  %s49_s24, 32, %s51_s28, [#allocation6]  }
   0xf   :  { %s88_s12 = sshll.u32 %s3881_s7, 4  ;;  %s2863_s13 = smov [#allocation10]   ;;  %s89_s12 = int_to_ptr.hbm [resolvable:$true] %s88_s12 }
  0x10   :  { %s75_s2 = sshll.u32 %s2863_s13, 4  ;;  %s2864_s14 = smov [#allocation11]   ;;  %s76_s2 = int_to_ptr.vmem [resolvable:$true] %s75_s2 }
  0x11   :  { %81 = dma.hbm_to_vmem [thread:$0]  %s74_s0, 4096, %s76_s2, [#allocation9], %s2858_s17, %s2858_s17, %s2859_s18  }
  0x12   :  { %s90_s15 = sshll.u32 %s2864_s14, 4  ;;  %s91_s15 = int_to_ptr.vmem [resolvable:$true] %s90_s15 }
  0x13   :  { %96 = dma.hbm_to_vmem [thread:$0]  %s89_s12, 4096, %s91_s15, [#allocation12], %s2858_s17, %s2858_s17, %s2859_s18  }
  0x14   :  { %2847 = dma.done.wait [#allocation3], 64  }
  0x15   :  { %2848 = vsyncadd [#allocation3], 4294967232 }
  0x16   :  { %2849 = dma.done.wait [#allocation6], 544  }
  0x17   :  { %2850 = vsyncadd [#allocation6], 4294966752 }
  0x18   :  { %2851 = dma.done.wait [#allocation9], 8192  }
  0x19   :  { %2852 = vsyncadd [#allocation9], 4294959104 }
  0x1a   :  { %2853 = dma.done.wait [#allocation12], 4096  }
  0x1b   :  { %2854 = vsyncadd [#allocation12], 4294963200  ;;  %v2178_v0 = vld [vmem:[#allocation5 + $0x10] sm:$0xf]  ;;  %v2573_v1 = vld [vmem:[#allocation5 + $0x14] sm:$0xf0] }
  0x1c   :  { %v2572_v2 = vld [vmem:[#allocation5 + $0x14] sm:$0xf]  ;;  %v2179_v3 = vor.u32 %v2573_v1, %v2178_v0  ;;  %v2180_v4 = vld [vmem:[#allocation5 + $0x18] sm:$0xf0]  ;;  %v2170_v5 = vld [vmem:[#allocation5] sm:$0xf] }
  0x1d   :  { %v2571_v6 = vld [vmem:[#allocation5 + $0x4] sm:$0xf0]  ;;  %v2183_v7 = vor.u32 %v2572_v2, %v2180_v4  ;;  %v2570_v8 = vld [vmem:[#allocation5 + $0x4] sm:$0xf]  ;;  %v2172_v9 = vld [vmem:[#allocation5 + $0x8] sm:$0xf0] }
  0x1e   :  { %vm254_vm0 = vcmask 261120   ;;  %264 = vmatpush.bf16.msra.mxu0 %v2179_v3  ;;  %v2171_v10 = vor.u32 %v2571_v6, %v2170_v5  ;;  %v2244_v11 = vld [vmem:[#allocation8 + $0x70] sm:$0xf]  ;;  %v2589_v12 = vld [vmem:[#allocation8 + $0x74] sm:$0xf0]  ;;  %v2175_v14 = vor.u32 %v2570_v8, %v2172_v9  ;;  %s2155_s21 = sshll.u32 %s3883_s9, 4  ;;  %s2156_s21 = int_to_ptr.hbm [resolvable:$true] %s2155_s21 }
  0x1f   :  { %v2308_v13 = vld [vmem:[#allocation8 + $0xf0] sm:$0xf]  ;;  %277 = vmatpush.bf16.msra.mxu1 %v2183_v7  ;;  %v2245_v15 = vor.u32 %v2589_v12, %v2244_v11  ;;  %v2605_v16 = vld [vmem:[#allocation8 + $0xf4] sm:$0xf0]  ;;  %v2588_v17 = vld [vmem:[#allocation8 + $0x74] sm:$0xf] }
  0x20   :  { %v2246_v18 = vld [vmem:[#allocation8 + $0x78] sm:$0xf0]  ;;  %v2309_v20 = vor.u32 %v2605_v16, %v2308_v13  ;;  %v2604_v22 = vld [vmem:[#allocation8 + $0xf4] sm:$0xf]  ;;  %v2236_v24 = vld [vmem:[#allocation8 + $0x60] sm:$0xf] }
  0x21   :  { %v124_v19 = vld [vmem:[#allocation2] sm:$0xf]  ;;  %v2249_v21 = vor.u32 %v2588_v17, %v2246_v18  ;;  %457 = vmatpush.bf16.msra.mxu2 %v2245_v15  ;;  %v2587_v26 = vld [vmem:[#allocation8 + $0x64] sm:$0xf0]  ;;  %v2300_v27 = vld [vmem:[#allocation8 + $0xe0] sm:$0xf] }
  0x22   :  { %v2310_v23 = vld [vmem:[#allocation8 + $0xf8] sm:$0xf0]  ;;  %v2603_v28 = vld [vmem:[#allocation8 + $0xe4] sm:$0xf0]  ;;  %265 = vmatpush.bf16.msra.mxu0 %v2171_v10  ;;  %470 = vmatpush.bf16.msra.mxu3 %v2309_v20  ;;  %v2237_v29 = vor.u32 %v2587_v26, %v2236_v24  ;;  %v2586_v31 = vld [vmem:[#allocation8 + $0x64] sm:$0xf] }
  0x23   :  { %v2313_v25 = vor.u32 %v2604_v22, %v2310_v23  ;;  %v2301_v30 = vor.u32 %v2603_v28, %v2300_v27  ;;  %v2238_v32 = vld [vmem:[#allocation8 + $0x68] sm:$0xf0]  ;;  %v2602_v33 = vld [vmem:[#allocation8 + $0xe4] sm:$0xf]  ;;  %278 = vmatpush.bf16.msra.mxu1 %v2175_v14  ;;  %v2228_v36 = vld [vmem:[#allocation8 + $0x50] sm:$0xf] }
  0x24   :  { %v2241_v34 = vor.u32 %v2586_v31, %v2238_v32  ;;  %v2302_v35 = vld [vmem:[#allocation8 + $0xe8] sm:$0xf0]  ;;  %v2585_v37 = vld [vmem:[#allocation8 + $0x54] sm:$0xf0]  ;;  %v2292_v39 = vld [vmem:[#allocation8 + $0xd0] sm:$0xf] }
  0x25   :  { %v2305_v38 = vor.u32 %v2602_v33, %v2302_v35  ;;  %v2601_v40 = vld [vmem:[#allocation8 + $0xd4] sm:$0xf0]  ;;  %v2584_v41 = vld [vmem:[#allocation8 + $0x54] sm:$0xf]  ;;  %2184 = vmatmul.msk.bf16.vlgmr.msra.gmra.mxu0 %vm254_vm0, %v124_v19  ;;  %458 = vmatpush.bf16.msra.mxu2 %v2237_v29  ;;  %v2229_v42 = vor.u32 %v2585_v37, %v2228_v36  ;;  %v2230_v43 = vld [vmem:[#allocation8 + $0x58] sm:$0xf0] }
  0x26   :  { %483 = vmatpush.bf16.msrb.mxu0 %v2249_v21  ;;  %v2600_v44 = vld [vmem:[#allocation8 + $0xd4] sm:$0xf]  ;;  %v2294_v45 = vld [vmem:[#allocation8 + $0xd8] sm:$0xf0]  ;;  %2185 = vmatmul.msk.bf16.vlgmr.msra.gmra.mxu1 %vm254_vm0, %v124_v19  ;;  %v2293_v46 = vor.u32 %v2601_v40, %v2292_v39  ;;  %v2220_v47 = vld [vmem:[#allocation8 + $0x40] sm:$0xf]  ;;  %v2233_v49 = vor.u32 %v2584_v41, %v2230_v43 }
  0x27   :  { %496 = vmatpush.bf16.msrb.mxu1 %v2313_v25  ;;  %471 = vmatpush.bf16.msra.mxu3 %v2301_v30  ;;  %v2583_v48 = vld [vmem:[#allocation8 + $0x44] sm:$0xf0]  ;;  %v2284_v50 = vld [vmem:[#allocation8 + $0xc0] sm:$0xf]  ;;  %v2297_v52 = vor.u32 %v2600_v44, %v2294_v45  ;;  %v2582_v53 = vld [vmem:[#allocation8 + $0x44] sm:$0xf] }
  0x28   :  { %v2599_v51 = vld [vmem:[#allocation8 + $0xc4] sm:$0xf0]  ;;  %v2222_v54 = vld [vmem:[#allocation8 + $0x48] sm:$0xf0]  ;;  %v2221_v55 = vor.u32 %v2583_v48, %v2220_v47  ;;  %v2598_v56 = vld [vmem:[#allocation8 + $0xc4] sm:$0xf] }
  0x29   :  { %459 = vmatpush.bf16.msra.mxu2 %v2229_v42  ;;  %v2286_v57 = vld [vmem:[#allocation8 + $0xc8] sm:$0xf0]  ;;  %v2285_v58 = vor.u32 %v2599_v51, %v2284_v50  ;;  %v2212_v59 = vld [vmem:[#allocation8 + $0x30] sm:$0xf]  ;;  %v2581_v60 = vld [vmem:[#allocation8 + $0x34] sm:$0xf0]  ;;  %v2225_v61 = vor.u32 %v2582_v53, %v2222_v54 }
  0x2a   :  { %484 = vmatpush.bf16.msrb.mxu0 %v2241_v34  ;;  %v2276_v62 = vld [vmem:[#allocation8 + $0xb0] sm:$0xf]  ;;  %v2597_v63 = vld [vmem:[#allocation8 + $0xb4] sm:$0xf0]  ;;  %v2289_v0 = vor.u32 %v2598_v56, %v2286_v57  ;;  %v2580_v1 = vld [vmem:[#allocation8 + $0x34] sm:$0xf]  ;;  %v2213_v3 = vor.u32 %v2581_v60, %v2212_v59 }
  0x2b   :  { %497 = vmatpush.bf16.msrb.mxu1 %v2305_v38  ;;  %472 = vmatpush.bf16.msra.mxu3 %v2293_v46  ;;  %v2214_v2 = vld [vmem:[#allocation8 + $0x38] sm:$0xf0]  ;;  %v2596_v4 = vld [vmem:[#allocation8 + $0xb4] sm:$0xf]  ;;  %v2277_v6 = vor.u32 %v2597_v63, %v2276_v62  ;;  %v2204_v7 = vld [vmem:[#allocation8 + $0x20] sm:$0xf] }
  0x2c   :  { %v2278_v5 = vld [vmem:[#allocation8 + $0xb8] sm:$0xf0]  ;;  %v2579_v8 = vld [vmem:[#allocation8 + $0x24] sm:$0xf0]  ;;  %v2217_v9 = vor.u32 %v2580_v1, %v2214_v2  ;;  %v2268_v10 = vld [vmem:[#allocation8 + $0xa0] sm:$0xf] }
  0x2d   :  { %460 = vmatpush.bf16.msra.mxu2 %v2221_v55  ;;  %v2595_v11 = vld [vmem:[#allocation8 + $0xa4] sm:$0xf0]  ;;  %v2281_v12 = vor.u32 %v2596_v4, %v2278_v5  ;;  %v2578_v13 = vld [vmem:[#allocation8 + $0x24] sm:$0xf]  ;;  %v2206_v14 = vld [vmem:[#allocation8 + $0x28] sm:$0xf0]  ;;  %v2205_v15 = vor.u32 %v2579_v8, %v2204_v7 }
  0x2e   :  { %485 = vmatpush.bf16.msrb.mxu0 %v2233_v49  ;;  %v2594_v16 = vld [vmem:[#allocation8 + $0xa4] sm:$0xf]  ;;  %v2270_v17 = vld [vmem:[#allocation8 + $0xa8] sm:$0xf0]  ;;  %v2269_v18 = vor.u32 %v2595_v11, %v2268_v10  ;;  %v2196_v19 = vld [vmem:[#allocation8 + $0x10] sm:$0xf]  ;;  %v2209_v21 = vor.u32 %v2578_v13, %v2206_v14 }
  0x2f   :  { %498 = vmatpush.bf16.msrb.mxu1 %v2297_v52  ;;  %473 = vmatpush.bf16.msra.mxu3 %v2285_v58  ;;  %v2577_v20 = vld [vmem:[#allocation8 + $0x14] sm:$0xf0]  ;;  %v2260_v22 = vld [vmem:[#allocation8 + $0x90] sm:$0xf]  ;;  %v2273_v24 = vor.u32 %v2594_v16, %v2270_v17  ;;  %v2576_v25 = vld [vmem:[#allocation8 + $0x14] sm:$0xf] }
  0x30   :  { %v2593_v23 = vld [vmem:[#allocation8 + $0x94] sm:$0xf0]  ;;  %v2198_v26 = vld [vmem:[#allocation8 + $0x18] sm:$0xf0]  ;;  %v2592_v27 = vld [vmem:[#allocation8 + $0x94] sm:$0xf]  ;;  %v2197_v28 = vor.u32 %v2577_v20, %v2196_v19 }
  0x31   :  { %461 = vmatpush.bf16.msra.mxu2 %v2213_v3  ;;  %v2262_v29 = vld [vmem:[#allocation8 + $0x98] sm:$0xf0]  ;;  %v2188_v30 = vld [vmem:[#allocation8] sm:$0xf]  ;;  %v2575_v31 = vld [vmem:[#allocation8 + $0x4] sm:$0xf0]  ;;  %v2261_v32 = vor.u32 %v2593_v23, %v2260_v22  ;;  %v2201_v36 = vor.u32 %v2576_v25, %v2198_v26 }
  0x32   :  { %486 = vmatpush.bf16.msrb.mxu0 %v2225_v61  ;;  %v2252_v33 = vld [vmem:[#allocation8 + $0x80] sm:$0xf]  ;;  %v2591_v34 = vld [vmem:[#allocation8 + $0x84] sm:$0xf0]  ;;  %v2574_v35 = vld [vmem:[#allocation8 + $0x4] sm:$0xf]  ;;  %v2265_v40 = vor.u32 %v2592_v27, %v2262_v29  ;;  %v2189_v44 = vor.u32 %v2575_v31, %v2188_v30 }
  0x33   :  { %499 = vmatpush.bf16.msrb.mxu1 %v2289_v0  ;;  %474 = vmatpush.bf16.msra.mxu3 %v2277_v6  ;;  %v2190_v37 = vld [vmem:[#allocation8 + $0x8] sm:$0xf0]  ;;  %v2372_v38 = vld [vmem:[#allocation10 + $0x70] sm:$0xf]  ;;  %v2621_v39 = vld [vmem:[#allocation10 + $0x74] sm:$0xf0]  ;;  %v2253_v48 = vor.u32 %v2591_v34, %v2252_v33 }
  0x34   :  { %v2590_v41 = vld [vmem:[#allocation8 + $0x84] sm:$0xf]  ;;  %v2436_v42 = vld [vmem:[#allocation10 + $0xf0] sm:$0xf]  ;;  %v2637_v43 = vld [vmem:[#allocation10 + $0xf4] sm:$0xf0]  ;;  %v2948_v49 = vor.u32 %v2621_v39, %v2372_v38  ;;  %v2193_v52 = vor.u32 %v2574_v35, %v2190_v37 }
  0x35   :  { %462 = vmatpush.bf16.msra.mxu2 %v2205_v15  ;;  %v2254_v45 = vld [vmem:[#allocation8 + $0x88] sm:$0xf0]  ;;  %v2620_v46 = vld [vmem:[#allocation10 + $0x74] sm:$0xf]  ;;  %v2374_v47 = vld [vmem:[#allocation10 + $0x78] sm:$0xf0]  ;;  %v2950_v53 = vor.u32 %v2637_v43, %v2436_v42 }
  0x36   :  { %487 = vmatpush.bf16.msrb.mxu0 %v2217_v9  ;;  %v2636_v50 = vld [vmem:[#allocation10 + $0xf4] sm:$0xf]  ;;  %v2438_v51 = vld [vmem:[#allocation10 + $0xf8] sm:$0xf0]  ;;  %v2364_v54 = vld [vmem:[#allocation10 + $0x60] sm:$0xf]  ;;  %v2257_v56 = vor.u32 %v2590_v41, %v2254_v45  ;;  %v2952_v57 = vor.u32 %v2620_v46, %v2374_v47 }
  0x37   :  { %500 = vmatpush.bf16.msrb.mxu1 %v2281_v12  ;;  %475 = vmatpush.bf16.msra.mxu3 %v2269_v18  ;;  %v2619_v55 = vld [vmem:[#allocation10 + $0x64] sm:$0xf0]  ;;  %v2428_v58 = vld [vmem:[#allocation10 + $0xe0] sm:$0xf]  ;;  %v2954_v60 = vor.u32 %v2636_v50, %v2438_v51  ;;  %v2618_v61 = vld [vmem:[#allocation10 + $0x64] sm:$0xf] }
  0x38   :  { %v2635_v59 = vld [vmem:[#allocation10 + $0xe4] sm:$0xf0]  ;;  %v2366_v62 = vld [vmem:[#allocation10 + $0x68] sm:$0xf0]  ;;  %v2957_v63 = vor.u32 %v2619_v55, %v2364_v54  ;;  %v2634_v0 = vld [vmem:[#allocation10 + $0xe4] sm:$0xf] }
  0x39   :  { %463 = vmatpush.bf16.msra.mxu2 %v2197_v28  ;;  %v2430_v1 = vld [vmem:[#allocation10 + $0xe8] sm:$0xf0]  ;;  %v2960_v2 = vor.u32 %v2635_v59, %v2428_v58  ;;  %v2963_v3 = vor.u32 %v2618_v61, %v2366_v62  ;;  %v2356_v5 = vld [vmem:[#allocation10 + $0x50] sm:$0xf]  ;;  %v2617_v6 = vld [vmem:[#allocation10 + $0x54] sm:$0xf0] }
  0x3a   :  { %488 = vmatpush.bf16.msrb.mxu0 %v2209_v21  ;;  %v2966_v4 = vor.u32 %v2634_v0, %v2430_v1  ;;  %v2972_v7 = vor.u32 %v2617_v6, %v2356_v5  ;;  %v2420_v8 = vld [vmem:[#allocation10 + $0xd0] sm:$0xf]  ;;  %v2633_v9 = vld [vmem:[#allocation10 + $0xd4] sm:$0xf0]  ;;  %v2616_v11 = vld [vmem:[#allocation10 + $0x54] sm:$0xf] }
  0x3b   :  { %501 = vmatpush.bf16.msrb.mxu1 %v2273_v24  ;;  %476 = vmatpush.bf16.msra.mxu3 %v2261_v32  ;;  %v2974_v10 = vor.u32 %v2633_v9, %v2420_v8  ;;  %v2358_v12 = vld [vmem:[#allocation10 + $0x58] sm:$0xf0]  ;;  %v2632_v14 = vld [vmem:[#allocation10 + $0xd4] sm:$0xf]  ;;  %v2348_v17 = vld [vmem:[#allocation10 + $0x40] sm:$0xf] }
  0x3c   :  { %3977 = vst [vmem:[#allocation19_spill] sm:$0xff] %v2972_v7  ;;  %v2977_v13 = vor.u32 %v2616_v11, %v2358_v12  ;;  %v2422_v15 = vld [vmem:[#allocation10 + $0xd8] sm:$0xf0]  ;;  %v2615_v18 = vld [vmem:[#allocation10 + $0x44] sm:$0xf0] }
  0x3d   :  { %464 = vmatpush.bf16.msra.mxu2 %v2189_v44  ;;  %3978 = vst [vmem:[#allocation20_spill] sm:$0xff] %v2974_v10  ;;  %v2980_v16 = vor.u32 %v2632_v14, %v2422_v15  ;;  %v2412_v19 = vld [vmem:[#allocation10 + $0xc0] sm:$0xf]  ;;  %v2983_v20 = vor.u32 %v2615_v18, %v2348_v17  ;;  %v2631_v21 = vld [vmem:[#allocation10 + $0xc4] sm:$0xf0] }
  0x3e   :  { %489 = vmatpush.bf16.msrb.mxu0 %v2201_v36  ;;  %3979 = vst [vmem:[#allocation21_spill] sm:$0xff] %v2977_v13  ;;  %v2614_v22 = vld [vmem:[#allocation10 + $0x44] sm:$0xf]  ;;  %v2350_v23 = vld [vmem:[#allocation10 + $0x48] sm:$0xf0]  ;;  %v2986_v24 = vor.u32 %v2631_v21, %v2412_v19 }
  0x3f   :  { %502 = vmatpush.bf16.msrb.mxu1 %v2265_v40  ;;  %477 = vmatpush.bf16.msra.mxu3 %v2253_v48  ;;  %3980 = vst [vmem:[#allocation22_spill] sm:$0xff] %v2980_v16  ;;  %v2988_v25 = vor.u32 %v2614_v22, %v2350_v23  ;;  %v2630_v26 = vld [vmem:[#allocation10 + $0xc4] sm:$0xf]  ;;  %v2414_v27 = vld [vmem:[#allocation10 + $0xc8] sm:$0xf0] }
  0x40   :  { %3981 = vst [vmem:[#allocation23_spill] sm:$0xff] %v2983_v20  ;;  %v2991_v28 = vor.u32 %v2630_v26, %v2414_v27  ;;  %v2340_v29 = vld [vmem:[#allocation10 + $0x30] sm:$0xf]  ;;  %v2613_v30 = vld [vmem:[#allocation10 + $0x34] sm:$0xf0] }
  0x41   :  { %694 = vmatpush.bf16.msrb.mxu2 %v2948_v49  ;;  %3982 = vst [vmem:[#allocation24_spill] sm:$0xff] %v2986_v24  ;;  %v2404_v31 = vld [vmem:[#allocation10 + $0xb0] sm:$0xf]  ;;  %v2996_v32 = vor.u32 %v2613_v30, %v2340_v29  ;;  %v2629_v33 = vld [vmem:[#allocation10 + $0xb4] sm:$0xf0] }
  0x42   :  { %490 = vmatpush.bf16.msrb.mxu0 %v2193_v52  ;;  %3983 = vst [vmem:[#allocation25_spill] sm:$0xff] %v2988_v25  ;;  %v2612_v34 = vld [vmem:[#allocation10 + $0x34] sm:$0xf]  ;;  %v2342_v35 = vld [vmem:[#allocation10 + $0x38] sm:$0xf0]  ;;  %v2998_v36 = vor.u32 %v2629_v33, %v2404_v31 }
  0x43   :  { %707 = vmatpush.bf16.msrb.mxu3 %v2950_v53  ;;  %503 = vmatpush.bf16.msrb.mxu1 %v2257_v56  ;;  %3984 = vst [vmem:[#allocation26_spill] sm:$0xff] %v2991_v28  ;;  %v3000_v37 = vor.u32 %v2612_v34, %v2342_v35  ;;  %v2628_v38 = vld [vmem:[#allocation10 + $0xb4] sm:$0xf]  ;;  %v2406_v39 = vld [vmem:[#allocation10 + $0xb8] sm:$0xf0] }
  0x44   :  { %3985 = vst [vmem:[#allocation27_spill] sm:$0xff] %v2996_v32  ;;  %v2332_v40 = vld [vmem:[#allocation10 + $0x20] sm:$0xf]  ;;  %v3003_v41 = vor.u32 %v2628_v38, %v2406_v39  ;;  %v2611_v42 = vld [vmem:[#allocation10 + $0x24] sm:$0xf0] }
  0x45   :  { %695 = vmatpush.bf16.msrb.mxu2 %v2957_v63  ;;  %3986 = vst [vmem:[#allocation28_spill] sm:$0xff] %v2998_v36  ;;  %v2396_v43 = vld [vmem:[#allocation10 + $0xa0] sm:$0xf]  ;;  %v2627_v44 = vld [vmem:[#allocation10 + $0xa4] sm:$0xf0]  ;;  %v3007_v45 = vor.u32 %v2611_v42, %v2332_v40 }
  0x46   :  { %720 = vmatpush.bf16.msra.mxu0 %v2952_v57  ;;  %3987 = vst [vmem:[#allocation29_spill] sm:$0xff] %v3000_v37  ;;  %v3009_v46 = vor.u32 %v2627_v44, %v2396_v43  ;;  %v2610_v47 = vld [vmem:[#allocation10 + $0x24] sm:$0xf]  ;;  %v2334_v48 = vld [vmem:[#allocation10 + $0x28] sm:$0xf0] }
  0x47   :  { %733 = vmatpush.bf16.msra.mxu1 %v2954_v60  ;;  %708 = vmatpush.bf16.msrb.mxu3 %v2960_v2  ;;  %3988 = vst [vmem:[#allocation30_spill] sm:$0xff] %v3003_v41  ;;  %v2626_v50 = vld [vmem:[#allocation10 + $0xa4] sm:$0xf]  ;;  %v3012_v51 = vor.u32 %v2610_v47, %v2334_v48  ;;  %v2398_v52 = vld [vmem:[#allocation10 + $0xa8] sm:$0xf0] }
  0x48   :  { %3989 = vst [vmem:[#allocation31_spill] sm:$0xff] %v3007_v45  ;;  %v2324_v54 = vld [vmem:[#allocation10 + $0x10] sm:$0xf]  ;;  %v2609_v55 = vld [vmem:[#allocation10 + $0x14] sm:$0xf0]  ;;  %v3014_v56 = vor.u32 %v2626_v50, %v2398_v52 }
  0x49   :  { %696 = vmatpush.bf16.msrb.mxu2 %v2972_v7  ;;  %3990 = vst [vmem:[#allocation32_spill] sm:$0xff] %v3009_v46  ;;  %v2388_v58 = vld [vmem:[#allocation10 + $0x90] sm:$0xf]  ;;  %v2625_v59 = vld [vmem:[#allocation10 + $0x94] sm:$0xf0]  ;;  %v3017_v62 = vor.u32 %v2609_v55, %v2324_v54 }
  0x4a   :  { %721 = vmatpush.bf16.msra.mxu0 %v2963_v3  ;;  %3991 = vst [vmem:[#allocation33_spill] sm:$0xff] %v3012_v51  ;;  %v2608_v61 = vld [vmem:[#allocation10 + $0x14] sm:$0xf]  ;;  %v2326_v0 = vld [vmem:[#allocation10 + $0x18] sm:$0xf0]  ;;  %v3021_v6 = vor.u32 %v2625_v59, %v2388_v58 }
  0x4b   :  { %734 = vmatpush.bf16.msra.mxu1 %v2966_v4  ;;  %709 = vmatpush.bf16.msrb.mxu3 %v2974_v10  ;;  %3992 = vst [vmem:[#allocation34_spill] sm:$0xff] %v3014_v56  ;;  %v2624_v1 = vld [vmem:[#allocation10 + $0x94] sm:$0xf]  ;;  %v2390_v5 = vld [vmem:[#allocation10 + $0x98] sm:$0xf0]  ;;  %v3023_v8 = vor.u32 %v2608_v61, %v2326_v0 }
  0x4c   :  { %3993 = vst [vmem:[#allocation35_spill] sm:$0xff] %v3017_v62  ;;  %v2316_v9 = vld [vmem:[#allocation10] sm:$0xf]  ;;  %v2607_v11 = vld [vmem:[#allocation10 + $0x4] sm:$0xf0]  ;;  %v3026_v14 = vor.u32 %v2624_v1, %v2390_v5 }
  0x4d   :  { %697 = vmatpush.bf16.msrb.mxu2 %v2983_v20  ;;  %3994 = vst [vmem:[#allocation36_spill] sm:$0xff] %v3021_v6  ;;  %v2380_v12 = vld [vmem:[#allocation10 + $0x80] sm:$0xf]  ;;  %v2623_v15 = vld [vmem:[#allocation10 + $0x84] sm:$0xf0]  ;;  %v3029_v22 = vor.u32 %v2607_v11, %v2316_v9 }
  0x4e   :  { %722 = vmatpush.bf16.msra.mxu0 %v2977_v13  ;;  %3995 = vst [vmem:[#allocation37_spill] sm:$0xff] %v3023_v8  ;;  %v2606_v17 = vld [vmem:[#allocation10 + $0x4] sm:$0xf]  ;;  %v2318_v18 = vld [vmem:[#allocation10 + $0x8] sm:$0xf0]  ;;  %v3033_v23 = vor.u32 %v2623_v15, %v2380_v12 }
  0x4f   :  { %735 = vmatpush.bf16.msra.mxu1 %v2980_v16  ;;  %710 = vmatpush.bf16.msrb.mxu3 %v2986_v24  ;;  %3996 = vst [vmem:[#allocation38_spill] sm:$0xff] %v3026_v14  ;;  %v2622_v19 = vld [vmem:[#allocation10 + $0x84] sm:$0xf]  ;;  %v2382_v21 = vld [vmem:[#allocation10 + $0x88] sm:$0xf0]  ;;  %v3035_v26 = vor.u32 %v2606_v17, %v2318_v18 }
  0x50   :  { %3997 = vst [vmem:[#allocation39_spill] sm:$0xff] %v3029_v22  ;;  %v3038_v27 = vor.u32 %v2622_v19, %v2382_v21  ;;  %v225_v29 = vld [vmem:[#allocation7] sm:$0x3]  ;;  %v2500_v59 = vld [vmem:[#allocation11 + $0x70] sm:$0xf] }
  0x51   :  { %698 = vmatpush.bf16.msrb.mxu2 %v2996_v32  ;;  %3998 = vst [vmem:[#allocation40_spill] sm:$0xff] %v3033_v23  ;;  %v230_v30 = vperm.slane %v225_v29, 0  ;;  %v231_v31 = vperm.slane %v225_v29, 1  ;;  %v2653_v61 = vld [vmem:[#allocation11 + $0x74] sm:$0xf0] }
  0x52   :  { %723 = vmatpush.bf16.msra.mxu0 %v2988_v25  ;;  %3999 = vst [vmem:[#allocation41_spill] sm:$0xff] %v3035_v26  ;;  %v2564_v0 = vld [vmem:[#allocation11 + $0xf0] sm:$0xf]  ;;  %v3052_v1 = vor.u32 %v2653_v61, %v2500_v59  ;;  %v2669_v5 = vld [vmem:[#allocation11 + $0xf4] sm:$0xf0] }
  0x53   :  { %736 = vmatpush.bf16.msra.mxu1 %v2991_v28  ;;  %711 = vmatpush.bf16.msrb.mxu3 %v2998_v36  ;;  %4000 = vst [vmem:[#allocation42_spill] sm:$0xff] %v3038_v27  ;;  %v2652_v9 = vld [vmem:[#allocation11 + $0x74] sm:$0xf]  ;;  %v3054_v11 = vor.u32 %v2669_v5, %v2564_v0  ;;  %v2502_v12 = vld [vmem:[#allocation11 + $0x78] sm:$0xf0] }
  0x54   :  { %v2668_v15 = vld [vmem:[#allocation11 + $0xf4] sm:$0xf]  ;;  %v2566_v17 = vld [vmem:[#allocation11 + $0xf8] sm:$0xf0]  ;;  %v3057_v18 = vor.u32 %v2652_v9, %v2502_v12  ;;  %v2492_v21 = vld [vmem:[#allocation11 + $0x60] sm:$0xf] }
  0x55   :  { %699 = vmatpush.bf16.msrb.mxu2 %v3007_v45  ;;  %v3059_v19 = vor.u32 %v2668_v15, %v2566_v17  ;;  %v2651_v29 = vld [vmem:[#allocation11 + $0x64] sm:$0xf0]  ;;  %v2486_v61 = vld [vmem:[#allocation11 + $0x58] sm:$0xf0]  ;;  %v2664_v0 = vld [vmem:[#allocation11 + $0xd4] sm:$0xf] }
  0x56   :  { %724 = vmatpush.bf16.msra.mxu0 %v3000_v37  ;;  %v2550_v5 = vld [vmem:[#allocation11 + $0xd8] sm:$0xf0]  ;;  %v2476_v15 = vld [vmem:[#allocation11 + $0x40] sm:$0xf]  ;;  %v2647_v17 = vld [vmem:[#allocation11 + $0x44] sm:$0xf0] }
  0x57   :  { %737 = vmatpush.bf16.msra.mxu1 %v3003_v41  ;;  %712 = vmatpush.bf16.msrb.mxu3 %v3009_v46  ;;  %v3083_v12 = vor.u32 %v2664_v0, %v2550_v5  ;;  %v2661_v0 = vld [vmem:[#allocation11 + $0xb4] sm:$0xf0]  ;;  %v2644_v5 = vld [vmem:[#allocation11 + $0x34] sm:$0xf] }
  0x59   :  { %700 = vmatpush.bf16.msrb.mxu2 %v3017_v62  ;;  %4001 = vst [vmem:[#allocation43_spill] sm:$0xff] %v3083_v12 }
  0x5a   :  { %725 = vmatpush.bf16.msra.mxu0 %v3012_v51 }
  0x5b   :  { %738 = vmatpush.bf16.msra.mxu1 %v3014_v56  ;;  %713 = vmatpush.bf16.msrb.mxu3 %v3021_v6 }
  0x5d   :  { %701 = vmatpush.bf16.msrb.mxu2 %v3029_v22 }
  0x5e   :  { %726 = vmatpush.bf16.msra.mxu0 %v3023_v8 }
  0x5f   :  { %739 = vmatpush.bf16.msra.mxu1 %v3026_v14  ;;  %714 = vmatpush.bf16.msrb.mxu3 %v3033_v23 }
  0x62   :  { %727 = vmatpush.bf16.msra.mxu0 %v3035_v26 }
  0x63   :  { %740 = vmatpush.bf16.msra.mxu1 %v3038_v27 }
  0xa2   :  { %v267_v33 = vpop.f32.mrf.mxu0 }
  0xa3   :  { %v3044_v34 = vadd.f32 %v267_v33, %v230_v30  ;;  %v280_v35 = vpop.f32.mrf.mxu1  ;;  %v2556_v30 = vld [vmem:[#allocation11 + $0xe0] sm:$0xf]  ;;  %v2667_v33 = vld [vmem:[#allocation11 + $0xe4] sm:$0xf0] }
  0xa4   :  { %v3046_v38 = vadd.f32 %v280_v35, %v231_v31  ;;  %v3064_v31 = vor.u32 %v2651_v29, %v2492_v21  ;;  %v2650_v35 = vld [vmem:[#allocation11 + $0x64] sm:$0xf]  ;;  %v2540_v21 = vld [vmem:[#allocation11 + $0xc0] sm:$0xf]  ;;  %v3088_v29 = vor.u32 %v2647_v17, %v2476_v15  ;;  %v2470_v15 = vld [vmem:[#allocation11 + $0x38] sm:$0xf0] }
  0xa5   :  { %vm523_vm1 = vcmp.gt.f32.partialorder %v3044_v34, 0.001 }
  0xa6   :  { %v284_v39 = vpack.c.bf16 %v3046_v38, %v3044_v34  ;;  %vm524_vm2 = vcmp.gt.f32.partialorder %v3046_v38, 0.001  ;;  %4002 = vst [vmem:[#allocation44_spill] sm:$0xff] %v3088_v29 }
  0xa7   :  { %vm525_vm3 = vmpackc.low %vm524_vm2, %vm523_vm1 }
  0xa8   :  { %v291_v40 = vunpack.c.l.b16 %v284_v39  ;;  %v292_v42 = vunpack.c.h.b16 %v284_v39  ;;  %v526_v50 = vsel %vm525_vm3, %v284_v39, 0  ;;  %v3066_v39 = vor.u32 %v2667_v33, %v2556_v30  ;;  %v2663_v30 = vld [vmem:[#allocation11 + $0xc4] sm:$0xf0]  ;;  %v2646_v33 = vld [vmem:[#allocation11 + $0x44] sm:$0xf] }
  0xa9   :  { %v528_v52 = vunpack.c.l.b16 %v526_v50  ;;  %v529_v54 = vunpack.c.h.b16 %v526_v50  ;;  %v2649_v50 = vld [vmem:[#allocation11 + $0x54] sm:$0xf0] }
  0xaa   :  { %v269_v43 = vpop.f32.mrf.mxu0  ;;  %v293_v44 = vpack.c.b16 %v291_v40, %v291_v40  ;;  %v294_v47 = vpack.c.b16 %v292_v42, %v292_v42  ;;  %v2494_v40 = vld [vmem:[#allocation11 + $0x68] sm:$0xf0]  ;;  %v2666_v42 = vld [vmem:[#allocation11 + $0xe4] sm:$0xf] }
  0xab   :  { %v282_v48 = vpop.f32.mrf.mxu1  ;;  %v530_v55 = vpack.c.b16 %v528_v52, %v528_v52  ;;  %v531_v58 = vpack.c.b16 %v529_v54, %v529_v54  ;;  %v2558_v43 = vld [vmem:[#allocation11 + $0xe8] sm:$0xf0]  ;;  %v2548_v54 = vld [vmem:[#allocation11 + $0xd0] sm:$0xf] }
  0xac   :  { %465 = vmatmul.bf16.vlgmr.msra.gmra.mxu2 %v293_v44  ;;  %478 = vmatmul.bf16.vlgmr.msra.gmra.mxu3 %v294_v47  ;;  %v2484_v48 = vld [vmem:[#allocation11 + $0x50] sm:$0xf] }
  0xad   :  { %491 = vmatmul.bf16.vlgmr.msrb.gmra.mxu0 %v293_v44  ;;  %504 = vmatmul.bf16.vlgmr.msrb.gmra.mxu1 %v294_v47  ;;  %v3069_v44 = vor.u32 %v2650_v35, %v2494_v40  ;;  %v3071_v47 = vor.u32 %v2666_v42, %v2558_v43  ;;  %v3076_v52 = vor.u32 %v2649_v50, %v2484_v48  ;;  %v2478_v35 = vld [vmem:[#allocation11 + $0x48] sm:$0xf0]  ;;  %v2662_v43 = vld [vmem:[#allocation11 + $0xc4] sm:$0xf] }
  0xae   :  { %918 = vmatpush.bf16.msra.mxu2 %v3052_v1  ;;  %931 = vmatpush.bf16.msra.mxu3 %v3054_v11  ;;  %v3090_v40 = vor.u32 %v2663_v30, %v2540_v21  ;;  %v3092_v42 = vor.u32 %v2646_v33, %v2478_v35  ;;  %v2542_v48 = vld [vmem:[#allocation11 + $0xc8] sm:$0xf0]  ;;  %v3104_v21 = vor.u32 %v2644_v5, %v2470_v15  ;;  %v2660_v30 = vld [vmem:[#allocation11 + $0xb4] sm:$0xf]  ;;  %v2534_v33 = vld [vmem:[#allocation11 + $0xb8] sm:$0xf0] }
  0xaf   :  { %944 = vmatpush.bf16.msrb.mxu0 %v3057_v18  ;;  %957 = vmatpush.bf16.msrb.mxu1 %v3059_v19  ;;  %v3095_v50 = vor.u32 %v2662_v43, %v2542_v48  ;;  %v3107_v35 = vor.u32 %v2660_v30, %v2534_v33  ;;  %v2460_v43 = vld [vmem:[#allocation11 + $0x20] sm:$0xf]  ;;  %v2643_v48 = vld [vmem:[#allocation11 + $0x24] sm:$0xf0]  ;;  %v2658_v30 = vld [vmem:[#allocation11 + $0xa4] sm:$0xf] }
  0xb0   :  { %4003 = vst [vmem:[#allocation45_spill] sm:$0xff] %v3090_v40  ;;  %v2526_v33 = vld [vmem:[#allocation11 + $0xa8] sm:$0xf0] }
  0xb1   :  { %4004 = vst [vmem:[#allocation46_spill] sm:$0xff] %v3092_v42 }
  0xb2   :  { %919 = vmatpush.bf16.msra.mxu2 %v3064_v31  ;;  %932 = vmatpush.bf16.msra.mxu3 %v3066_v39  ;;  %4005 = vst [vmem:[#allocation47_spill] sm:$0xff] %v3095_v50 }
  0xb3   :  { %945 = vmatpush.bf16.msrb.mxu0 %v3069_v44  ;;  %958 = vmatpush.bf16.msrb.mxu1 %v3071_v47  ;;  %4008 = vst [vmem:[#allocation50_spill] sm:$0xff] %v3104_v21 }
  0xb4   :  { %4009 = vst [vmem:[#allocation51_spill] sm:$0xff] %v3107_v35 }
  0xb6   :  { %920 = vmatpush.bf16.msra.mxu2 %v3076_v52 }
  0xb7   :  { %959 = vmatpush.bf16.msrb.mxu1 %v3083_v12 }
  0xba   :  { %921 = vmatpush.bf16.msra.mxu2 %v3088_v29 }
  0xbb   :  { %960 = vmatpush.bf16.msrb.mxu1 %v3095_v50  ;;  %v2524_v50 = vld [vmem:[#allocation11 + $0xa0] sm:$0xf] }
  0xbc   :  { %702 = vmatmul.bf16.vlgmr.msrb.gmra.mxu2 %v530_v55  ;;  %715 = vmatmul.bf16.vlgmr.msrb.gmra.mxu3 %v531_v58 }
  0xbd   :  { %728 = vmatmul.bf16.vlgmr.msra.gmra.mxu0 %v530_v55  ;;  %741 = vmatmul.bf16.vlgmr.msra.gmra.mxu1 %v531_v58  ;;  %v2665_v55 = vld [vmem:[#allocation11 + $0xd4] sm:$0xf0]  ;;  %v2648_v58 = vld [vmem:[#allocation11 + $0x54] sm:$0xf] }
  0xbe   :  { %v3078_v59 = vor.u32 %v2665_v55, %v2548_v54  ;;  %v3081_v9 = vor.u32 %v2648_v58, %v2486_v61  ;;  %v2468_v54 = vld [vmem:[#allocation11 + $0x30] sm:$0xf]  ;;  %v2645_v55 = vld [vmem:[#allocation11 + $0x34] sm:$0xf0] }
  0xbf   :  { %v2532_v58 = vld [vmem:[#allocation11 + $0xb0] sm:$0xf]  ;;  %v3100_v61 = vor.u32 %v2645_v55, %v2468_v54  ;;  %961 = vmatpush.bf16.msrb.mxu1 %v3107_v35  ;;  %v3112_v54 = vor.u32 %v2643_v48, %v2460_v43  ;;  %v2659_v55 = vld [vmem:[#allocation11 + $0xa4] sm:$0xf0]  ;;  %v2641_v48 = vld [vmem:[#allocation11 + $0x14] sm:$0xf0] }
  0xc0   :  { %933 = vmatpush.bf16.msra.mxu3 %v3078_v59  ;;  %946 = vmatpush.bf16.msrb.mxu0 %v3081_v9  ;;  %v3102_v17 = vor.u32 %v2661_v0, %v2532_v58  ;;  %v2642_v58 = vld [vmem:[#allocation11 + $0x24] sm:$0xf]  ;;  %v2462_v0 = vld [vmem:[#allocation11 + $0x28] sm:$0xf0]  ;;  %v3114_v5 = vor.u32 %v2659_v55, %v2524_v50  ;;  %v2452_v43 = vld [vmem:[#allocation11 + $0x10] sm:$0xf] }
  0xc1   :  { %4006 = vst [vmem:[#allocation48_spill] sm:$0xff] %v3100_v61  ;;  %922 = vmatpush.bf16.msra.mxu2 %v3100_v61  ;;  %v3116_v15 = vor.u32 %v2642_v58, %v2462_v0  ;;  %v2516_v35 = vld [vmem:[#allocation11 + $0x90] sm:$0xf]  ;;  %v3127_v50 = vor.u32 %v2641_v48, %v2452_v43  ;;  %v2657_v55 = vld [vmem:[#allocation11 + $0x94] sm:$0xf0] }
  0xc2   :  { %4007 = vst [vmem:[#allocation49_spill] sm:$0xff] %v3102_v17  ;;  %v2640_v58 = vld [vmem:[#allocation11 + $0x14] sm:$0xf]  ;;  %v2454_v0 = vld [vmem:[#allocation11 + $0x18] sm:$0xf0]  ;;  %v3129_v61 = vor.u32 %v2657_v55, %v2516_v35 }
  0xc3   :  { %4010 = vst [vmem:[#allocation52_spill] sm:$0xff] %v3112_v54  ;;  %v2508_v43 = vld [vmem:[#allocation11 + $0x80] sm:$0xf]  ;;  %v2655_v48 = vld [vmem:[#allocation11 + $0x84] sm:$0xf0] }
  0xc4   :  { %934 = vmatpush.bf16.msra.mxu3 %v3090_v40  ;;  %947 = vmatpush.bf16.msrb.mxu0 %v3092_v42  ;;  %4011 = vst [vmem:[#allocation53_spill] sm:$0xff] %v3114_v5  ;;  %v3131_v42 = vor.u32 %v2640_v58, %v2454_v0  ;;  %v2638_v55 = vld [vmem:[#allocation11 + $0x4] sm:$0xf]  ;;  %v2446_v58 = vld [vmem:[#allocation11 + $0x8] sm:$0xf0]  ;;  %v3141_v0 = vor.u32 %v2655_v48, %v2508_v43 }
  0xc5   :  { %4012 = vst [vmem:[#allocation54_spill] sm:$0xff] %v3116_v15  ;;  %923 = vmatpush.bf16.msra.mxu2 %v3112_v54  ;;  %v3143_v40 = vor.u32 %v2638_v55, %v2446_v58 }
  0xc6   :  { %4014 = vst [vmem:[#allocation56_spill] sm:$0xff] %v3127_v50 }
  0xc7   :  { %4015 = vst [vmem:[#allocation57_spill] sm:$0xff] %v3129_v61 }
  0xc8   :  { %935 = vmatpush.bf16.msra.mxu3 %v3102_v17  ;;  %948 = vmatpush.bf16.msrb.mxu0 %v3104_v21  ;;  %v226_v17 = vld [vmem:[%s3878_s4] sm:$0x3]  ;;  %v3122_v21 = vor.u32 %v2658_v30, %v2526_v33  ;;  %4016 = vst [vmem:[#allocation58_spill] sm:$0xff] %v3131_v42  ;;  %v2656_v30 = vld [vmem:[#allocation11 + $0x94] sm:$0xf] }
  0xc9   :  { %v2518_v33 = vld [vmem:[#allocation11 + $0x98] sm:$0xf0]  ;;  %v287_v54 = vperm.slane %v226_v17, 1  ;;  %924 = vmatpush.bf16.msra.mxu2 %v3127_v50  ;;  %4019 = vst [vmem:[#allocation61_spill] sm:$0xff] %v3141_v0 }
  0xca   :  { %4013 = vst [vmem:[#allocation55_spill] sm:$0xff] %v3122_v21  ;;  %962 = vmatpush.bf16.msrb.mxu1 %v3122_v21  ;;  %v2639_v21 = vld [vmem:[#allocation11 + $0x4] sm:$0xf0] }
  0xcb   :  { %4020 = vst [vmem:[#allocation62_spill] sm:$0xff] %v3143_v40 }
  0xcc   :  { %936 = vmatpush.bf16.msra.mxu3 %v3114_v5  ;;  %949 = vmatpush.bf16.msrb.mxu0 %v3116_v15  ;;  %v3134_v5 = vor.u32 %v2656_v30, %v2518_v33  ;;  %v2444_v15 = vld [vmem:[#allocation11] sm:$0xf]  ;;  %v2654_v30 = vld [vmem:[#allocation11 + $0x84] sm:$0xf]  ;;  %v2510_v33 = vld [vmem:[#allocation11 + $0x88] sm:$0xf0] }
  0xcd   :  { %v3139_v35 = vor.u32 %v2639_v21, %v2444_v15  ;;  %v286_v15 = vperm.slane %v226_v17, 0 }
  0xce   :  { %4017 = vst [vmem:[#allocation59_spill] sm:$0xff] %v3134_v5  ;;  %963 = vmatpush.bf16.msrb.mxu1 %v3134_v5 }
  0xcf   :  { %4018 = vst [vmem:[#allocation60_spill] sm:$0xff] %v3139_v35  ;;  %925 = vmatpush.bf16.msra.mxu2 %v3139_v35 }
  0xd0   :  { %937 = vmatpush.bf16.msra.mxu3 %v3129_v61  ;;  %950 = vmatpush.bf16.msrb.mxu0 %v3131_v42  ;;  %v3146_v61 = vor.u32 %v2654_v30, %v2510_v33 }
  0xd2   :  { %4021 = vst [vmem:[#allocation63_spill] sm:$0xff] %v3146_v61  ;;  %964 = vmatpush.bf16.msrb.mxu1 %v3146_v61 }
  0xd3   :  { %984 = vmatpush.bf16.msrb.mxu2 %v2948_v49 }
  0xd4   :  { %938 = vmatpush.bf16.msra.mxu3 %v3141_v0  ;;  %951 = vmatpush.bf16.msrb.mxu0 %v3143_v40 }
  0xd6   :  { %1023 = vmatpush.bf16.msra.mxu1 %v2954_v60 }
  0xd7   :  { %985 = vmatpush.bf16.msrb.mxu2 %v2957_v63 }
  0xd8   :  { %997 = vmatpush.bf16.msrb.mxu3 %v2950_v53  ;;  %1010 = vmatpush.bf16.msra.mxu0 %v2952_v57 }
  0xda   :  { %1024 = vmatpush.bf16.msra.mxu1 %v2966_v4 }
  0xdb   :  { %986 = vmatpush.bf16.msrb.mxu2 %v2972_v7 }
  0xdc   :  { %998 = vmatpush.bf16.msrb.mxu3 %v2960_v2  ;;  %1011 = vmatpush.bf16.msra.mxu0 %v2963_v3 }
  0xde   :  { %1025 = vmatpush.bf16.msra.mxu1 %v2980_v16 }
  0xdf   :  { %987 = vmatpush.bf16.msrb.mxu2 %v2983_v20 }
  0xe0   :  { %999 = vmatpush.bf16.msrb.mxu3 %v2974_v10  ;;  %1012 = vmatpush.bf16.msra.mxu0 %v2977_v13 }
  0xe2   :  { %1026 = vmatpush.bf16.msra.mxu1 %v2991_v28 }
  0xe3   :  { %988 = vmatpush.bf16.msrb.mxu2 %v2996_v32 }
  0xe4   :  { %1000 = vmatpush.bf16.msrb.mxu3 %v2986_v24  ;;  %1013 = vmatpush.bf16.msra.mxu0 %v2988_v25 }
  0xe6   :  { %1027 = vmatpush.bf16.msra.mxu1 %v3003_v41 }
  0xe7   :  { %989 = vmatpush.bf16.msrb.mxu2 %v3007_v45 }
  0xe8   :  { %1001 = vmatpush.bf16.msrb.mxu3 %v2998_v36  ;;  %1014 = vmatpush.bf16.msra.mxu0 %v3000_v37 }
  0xea   :  { %1028 = vmatpush.bf16.msra.mxu1 %v3014_v56 }
  0xeb   :  { %990 = vmatpush.bf16.msrb.mxu2 %v3017_v62 }
  0xec   :  { %1002 = vmatpush.bf16.msrb.mxu3 %v3009_v46  ;;  %1015 = vmatpush.bf16.msra.mxu0 %v3012_v51 }
  0xee   :  { %1029 = vmatpush.bf16.msra.mxu1 %v3026_v14 }
  0xef   :  { %991 = vmatpush.bf16.msrb.mxu2 %v3029_v22 }
  0xf0   :  { %1003 = vmatpush.bf16.msrb.mxu3 %v3021_v6  ;;  %1016 = vmatpush.bf16.msra.mxu0 %v3023_v8 }
  0xf2   :  { %1030 = vmatpush.bf16.msra.mxu1 %v3038_v27 }
  0xf4   :  { %1004 = vmatpush.bf16.msrb.mxu3 %v3033_v23  ;;  %1017 = vmatpush.bf16.msra.mxu0 %v3035_v26 }
 0x12a   :  { %v492_v50 = vpop.f32.mrf.mxu0  ;;  %v505_v29 = vpop.f32.mrf.mxu1 }
 0x12b   :  { %v493_v21 = vadd.f32 %v492_v50, %v287_v54 }
 0x12d   :  { %v3154_v43 = vadd.f32 %v505_v29, %v493_v21  ;;  %v227_v29 = vld [vmem:[%s3880_s6] sm:$0x3] }
 0x12e   :  { %v511_v30 = vperm.slane %v227_v29, 1 }
 0x12f   :  { %v466_v48 = vpop.f32.mrf.mxu2  ;;  %v479_v55 = vpop.f32.mrf.mxu3 }
 0x130   :  { %v467_v58 = vadd.f32 %v466_v48, %v286_v15  ;;  %v510_v15 = vperm.slane %v227_v29, 0  ;;  %v3175_v48 = vadd.f32 %v511_v30, %v3046_v38 }
 0x132   :  { %v3161_v17 = vadd.f32 %v479_v55, %v467_v58  ;;  %v494_v54 = vpop.f32.mrf.mxu0  ;;  %v507_v50 = vpop.f32.mrf.mxu1  ;;  %4022 = vst [vmem:[#allocation64_spill] sm:$0xff] %v3175_v48 }
 0x133   :  { %v3183_v50 = vadd.f32 %v510_v15, %v3044_v34 }
 0x137   :  { %v468_v33 = vpop.f32.mrf.mxu2  ;;  %v481_v21 = vpop.f32.mrf.mxu3 }
 0x13a   :  { %v729_v55 = vpop.f32.mrf.mxu0  ;;  %v742_v58 = vpop.f32.mrf.mxu1 }
 0x13b   :  { %v730_v54 = vadd.f32 %v729_v55, %v3175_v48 }
 0x13d   :  { %v743_v33 = vadd.f32 %v742_v58, %v730_v54 }
 0x13f   :  { %v703_v29 = vpop.f32.mrf.mxu2  ;;  %v716_v30 = vpop.f32.mrf.mxu3  ;;  %vm748_vm4 = vcmp.gt.f32.partialorder %v743_v33, 0.001 }
 0x140   :  { %v704_v21 = vadd.f32 %v703_v29, %v3183_v50 }
 0x142   :  { %v717_v55 = vadd.f32 %v716_v30, %v704_v21  ;;  %v731_v48 = vpop.f32.mrf.mxu0  ;;  %v744_v37 = vpop.f32.mrf.mxu1  ;;  %v4023_v21 = vld [vmem:[#allocation44_spill] sm:$0xff] }
 0x144   :  { %v746_v15 = vpack.c.bf16 %v743_v33, %v717_v55  ;;  %vm747_vm5 = vcmp.gt.f32.partialorder %v717_v55, 0.001  ;;  %v4024_v55 = vld [vmem:[#allocation45_spill] sm:$0xff] }
 0x145   :  { %vm749_vm6 = vmpackc.low %vm748_vm4, %vm747_vm5 }
 0x146   :  { %v750_v58 = vsel %vm749_vm6, %v746_v15, 0  ;;  %v4025_v15 = vld [vmem:[#allocation46_spill] sm:$0xff] }
 0x147   :  { %v752_v54 = vunpack.c.l.b16 %v750_v58  ;;  %v753_v29 = vunpack.c.h.b16 %v750_v58  ;;  %v705_v30 = vpop.f32.mrf.mxu2  ;;  %v718_v48 = vpop.f32.mrf.mxu3  ;;  %v4026_v58 = vld [vmem:[#allocation47_spill] sm:$0xff] }
 0x148   :  { %v4029_v30 = vld [vmem:[#allocation50_spill] sm:$0xff]  ;;  %v4030_v48 = vld [vmem:[#allocation51_spill] sm:$0xff] }
 0x149   :  { %v754_v37 = vpack.c.b16 %v752_v54, %v752_v54  ;;  %v755_v33 = vpack.c.b16 %v753_v29, %v753_v29  ;;  %v4027_v54 = vld [vmem:[#allocation48_spill] sm:$0xff]  ;;  %v4028_v29 = vld [vmem:[#allocation49_spill] sm:$0xff] }
 0x14b   :  { %926 = vmatmul.bf16.vlgmr.msra.gmra.mxu2 %v754_v37  ;;  %939 = vmatmul.bf16.vlgmr.msra.gmra.mxu3 %v755_v33 }
 0x14c   :  { %952 = vmatmul.bf16.vlgmr.msrb.gmra.mxu0 %v754_v37  ;;  %965 = vmatmul.bf16.vlgmr.msrb.gmra.mxu1 %v755_v33  ;;  %v4031_v37 = vld [vmem:[#allocation52_spill] sm:$0xff]  ;;  %v4032_v33 = vld [vmem:[#allocation53_spill] sm:$0xff] }
 0x14d   :  { %1048 = vmatpush.bf16.msra.mxu2 %v3052_v1  ;;  %1061 = vmatpush.bf16.msra.mxu3 %v3054_v11 }
 0x14e   :  { %1074 = vmatpush.bf16.msrb.mxu0 %v3057_v18  ;;  %1087 = vmatpush.bf16.msrb.mxu1 %v3059_v19 }
 0x151   :  { %1049 = vmatpush.bf16.msra.mxu2 %v3064_v31  ;;  %1062 = vmatpush.bf16.msra.mxu3 %v3066_v39 }
 0x152   :  { %1075 = vmatpush.bf16.msrb.mxu0 %v3069_v44  ;;  %1088 = vmatpush.bf16.msrb.mxu1 %v3071_v47 }
 0x155   :  { %1050 = vmatpush.bf16.msra.mxu2 %v3076_v52  ;;  %1063 = vmatpush.bf16.msra.mxu3 %v3078_v59 }
 0x156   :  { %1076 = vmatpush.bf16.msrb.mxu0 %v3081_v9  ;;  %1089 = vmatpush.bf16.msrb.mxu1 %v3083_v12  ;;  %v4033_v12 = vld [vmem:[#allocation54_spill] sm:$0xff] }
 0x159   :  { %1051 = vmatpush.bf16.msra.mxu2 %v4023_v21  ;;  %1064 = vmatpush.bf16.msra.mxu3 %v4024_v55  ;;  %v4034_v21 = vld [vmem:[#allocation55_spill] sm:$0xff]  ;;  %v4035_v55 = vld [vmem:[#allocation56_spill] sm:$0xff] }
 0x15a   :  { %1077 = vmatpush.bf16.msrb.mxu0 %v4025_v15  ;;  %1090 = vmatpush.bf16.msrb.mxu1 %v4026_v58  ;;  %v4036_v15 = vld [vmem:[#allocation57_spill] sm:$0xff] }
 0x15d   :  { %1052 = vmatpush.bf16.msra.mxu2 %v4027_v54  ;;  %1065 = vmatpush.bf16.msra.mxu3 %v4028_v29 }
 0x15e   :  { %1078 = vmatpush.bf16.msrb.mxu0 %v4029_v30  ;;  %1091 = vmatpush.bf16.msrb.mxu1 %v4030_v48 }
 0x161   :  { %1053 = vmatpush.bf16.msra.mxu2 %v4031_v37  ;;  %1066 = vmatpush.bf16.msra.mxu3 %v4032_v33 }
 0x162   :  { %1079 = vmatpush.bf16.msrb.mxu0 %v4033_v12  ;;  %1092 = vmatpush.bf16.msrb.mxu1 %v4034_v21  ;;  %v228_v21 = vld [vmem:[%s3882_s8] sm:$0x3]  ;;  %s2865_s8 = smov [#allocation13]  }
 0x163   :  { %v518_v33 = vperm.slane %v228_v21, 1  ;;  %s2153_s18 = sshll.u32 %s2865_s8, 4  ;;  %s2154_s18 = int_to_ptr.vmem [resolvable:$true] %s2153_s18 }
 0x165   :  { %1054 = vmatpush.bf16.msra.mxu2 %v4035_v55  ;;  %1067 = vmatpush.bf16.msra.mxu3 %v4036_v15 }
 0x166   :  { %1080 = vmatpush.bf16.msrb.mxu0 %v3131_v42  ;;  %1093 = vmatpush.bf16.msrb.mxu1 %v3134_v5  ;;  %v517_v42 = vperm.slane %v228_v21, 0 }
 0x169   :  { %1055 = vmatpush.bf16.msra.mxu2 %v3139_v35  ;;  %1068 = vmatpush.bf16.msra.mxu3 %v3141_v0  ;;  %v3235_v35 = vadd.f32 %v518_v33, %v3154_v43 }
 0x16a   :  { %1081 = vmatpush.bf16.msrb.mxu0 %v3143_v40  ;;  %1094 = vmatpush.bf16.msrb.mxu1 %v3146_v61  ;;  %v3239_v61 = vadd.f32 %v517_v42, %v3161_v17 }
 0x1c9   :  { %v953_v12 = vpop.f32.mrf.mxu0  ;;  %v966_v55 = vpop.f32.mrf.mxu1 }
 0x1ca   :  { %v954_v15 = vadd.f32 %v953_v12, %v3046_v38 }
 0x1cc   :  { %v967_v37 = vadd.f32 %v966_v55, %v954_v15  ;;  %v4037_v55 = vld [vmem:[#allocation29_spill] sm:$0xff] }
 0x1ce   :  { %v927_v5 = vpop.f32.mrf.mxu2  ;;  %v940_v48 = vpop.f32.mrf.mxu3  ;;  %v3242_v0 = vadd.f32 %v967_v37, %v3235_v35 }
 0x1cf   :  { %v928_v40 = vadd.f32 %v927_v5, %v3044_v34 }
 0x1d0   :  { %vm974_vm7 = vcmp.gt.f32.partialorder %v3242_v0, 0.001 }
 0x1d1   :  { %v941_v30 = vadd.f32 %v940_v48, %v928_v40  ;;  %v955_v29 = vpop.f32.mrf.mxu0  ;;  %v968_v54 = vpop.f32.mrf.mxu1 }
 0x1d2   :  { %v4038_v29 = vld [vmem:[#allocation64_spill] sm:$0xff] }
 0x1d3   :  { %v3245_v38 = vadd.f32 %v941_v30, %v3239_v61 }
 0x1d5   :  { %v972_v12 = vpack.c.bf16 %v3242_v0, %v3245_v38  ;;  %vm973_vm8 = vcmp.gt.f32.partialorder %v3245_v38, 0.001 }
 0x1d6   :  { %vm975_vm9 = vmpackc.low %vm974_vm7, %vm973_vm8  ;;  %v929_v34 = vpop.f32.mrf.mxu2  ;;  %v942_v42 = vpop.f32.mrf.mxu3 }
 0x1d7   :  { %v976_v5 = vsel %vm975_vm9, %v972_v12, 0 }
 0x1d8   :  { %v978_v43 = vunpack.c.l.b16 %v976_v5  ;;  %v979_v17 = vunpack.c.h.b16 %v976_v5 }
 0x1da   :  { %v980_v21 = vpack.c.b16 %v978_v43, %v978_v43  ;;  %v981_v40 = vpack.c.b16 %v979_v17, %v979_v17 }
 0x1dc   :  { %992 = vmatmul.bf16.vlgmr.msrb.gmra.mxu2 %v980_v21  ;;  %1005 = vmatmul.bf16.vlgmr.msrb.gmra.mxu3 %v981_v40 }
 0x1dd   :  { %1018 = vmatmul.bf16.vlgmr.msra.gmra.mxu0 %v980_v21  ;;  %1031 = vmatmul.bf16.vlgmr.msra.gmra.mxu1 %v981_v40 }
 0x1de   :  { %1114 = vmatpush.bf16.msrb.mxu2 %v2948_v49  ;;  %1127 = vmatpush.bf16.msrb.mxu3 %v2950_v53 }
 0x1df   :  { %1140 = vmatpush.bf16.msra.mxu0 %v2952_v57  ;;  %1153 = vmatpush.bf16.msra.mxu1 %v2954_v60 }
 0x1e2   :  { %1115 = vmatpush.bf16.msrb.mxu2 %v2957_v63  ;;  %1128 = vmatpush.bf16.msrb.mxu3 %v2960_v2 }
 0x1e3   :  { %1141 = vmatpush.bf16.msra.mxu0 %v2963_v3  ;;  %1154 = vmatpush.bf16.msra.mxu1 %v2966_v4 }
 0x1e6   :  { %1116 = vmatpush.bf16.msrb.mxu2 %v2972_v7  ;;  %1129 = vmatpush.bf16.msrb.mxu3 %v2974_v10 }
 0x1e7   :  { %1142 = vmatpush.bf16.msra.mxu0 %v2977_v13  ;;  %1155 = vmatpush.bf16.msra.mxu1 %v2980_v16 }
 0x1ea   :  { %1117 = vmatpush.bf16.msrb.mxu2 %v2983_v20  ;;  %1130 = vmatpush.bf16.msrb.mxu3 %v2986_v24 }
 0x1eb   :  { %1143 = vmatpush.bf16.msra.mxu0 %v2988_v25  ;;  %1156 = vmatpush.bf16.msra.mxu1 %v2991_v28 }
 0x1ee   :  { %1118 = vmatpush.bf16.msrb.mxu2 %v2996_v32  ;;  %1131 = vmatpush.bf16.msrb.mxu3 %v2998_v36 }
 0x1ef   :  { %1144 = vmatpush.bf16.msra.mxu0 %v4037_v55  ;;  %1157 = vmatpush.bf16.msra.mxu1 %v3003_v41 }
 0x1f2   :  { %1119 = vmatpush.bf16.msrb.mxu2 %v3007_v45  ;;  %1132 = vmatpush.bf16.msrb.mxu3 %v3009_v46 }
 0x1f3   :  { %1145 = vmatpush.bf16.msra.mxu0 %v3012_v51  ;;  %1158 = vmatpush.bf16.msra.mxu1 %v3014_v56 }
 0x1f6   :  { %1120 = vmatpush.bf16.msrb.mxu2 %v3017_v62  ;;  %1133 = vmatpush.bf16.msrb.mxu3 %v3021_v6 }
 0x1f7   :  { %1146 = vmatpush.bf16.msra.mxu0 %v3023_v8  ;;  %1159 = vmatpush.bf16.msra.mxu1 %v3026_v14 }
 0x1fa   :  { %1121 = vmatpush.bf16.msrb.mxu2 %v3029_v22  ;;  %1134 = vmatpush.bf16.msrb.mxu3 %v3033_v23 }
 0x1fb   :  { %1147 = vmatpush.bf16.msra.mxu0 %v3035_v26  ;;  %1160 = vmatpush.bf16.msra.mxu1 %v3038_v27 }
 0x25a   :  { %v1019_v15 = vpop.f32.mrf.mxu0  ;;  %v1032_v54 = vpop.f32.mrf.mxu1 }
 0x25b   :  { %v1020_v30 = vadd.f32 %v1019_v15, %v4038_v29  ;;  %v4043_v15 = vld [vmem:[#allocation48_spill] sm:$0xff] }
 0x25d   :  { %v1033_v33 = vadd.f32 %v1032_v54, %v1020_v30  ;;  %v4044_v54 = vld [vmem:[#allocation49_spill] sm:$0xff]  ;;  %v4045_v30 = vld [vmem:[#allocation50_spill] sm:$0xff] }
 0x25f   :  { %v993_v48 = vpop.f32.mrf.mxu2  ;;  %v1006_v37 = vpop.f32.mrf.mxu3  ;;  %vm1038_vm10 = vcmp.gt.f32.partialorder %v1033_v33, 0.001 }
 0x260   :  { %v994_v12 = vadd.f32 %v993_v48, %v3183_v50  ;;  %v4046_v48 = vld [vmem:[#allocation51_spill] sm:$0xff] }
 0x262   :  { %v1007_v34 = vadd.f32 %v1006_v37, %v994_v12  ;;  %v1021_v42 = vpop.f32.mrf.mxu0  ;;  %v1034_v5 = vpop.f32.mrf.mxu1  ;;  %v4047_v37 = vld [vmem:[#allocation52_spill] sm:$0xff]  ;;  %v4049_v12 = vld [vmem:[#allocation54_spill] sm:$0xff] }
 0x263   :  { %v4051_v42 = vld [vmem:[#allocation56_spill] sm:$0xff]  ;;  %v4052_v5 = vld [vmem:[#allocation57_spill] sm:$0xff] }
 0x264   :  { %v1036_v43 = vpack.c.bf16 %v1033_v33, %v1007_v34  ;;  %vm1037_vm11 = vcmp.gt.f32.partialorder %v1007_v34, 0.001  ;;  %v4048_v33 = vld [vmem:[#allocation53_spill] sm:$0xff]  ;;  %v4050_v34 = vld [vmem:[#allocation55_spill] sm:$0xff] }
 0x265   :  { %vm1039_vm12 = vmpackc.low %vm1038_vm10, %vm1037_vm11 }
 0x266   :  { %v1040_v17 = vsel %vm1039_vm12, %v1036_v43, 0  ;;  %v4053_v43 = vld [vmem:[#allocation58_spill] sm:$0xff] }
 0x267   :  { %v1042_v21 = vunpack.c.l.b16 %v1040_v17  ;;  %v1043_v40 = vunpack.c.h.b16 %v1040_v17  ;;  %v995_v27 = vpop.f32.mrf.mxu2  ;;  %v1008_v26 = vpop.f32.mrf.mxu3  ;;  %v4054_v17 = vld [vmem:[#allocation59_spill] sm:$0xff] }
 0x268   :  { %v4041_v26 = vld [vmem:[#allocation45_spill] sm:$0xff]  ;;  %v4042_v27 = vld [vmem:[#allocation46_spill] sm:$0xff] }
 0x269   :  { %v1044_v23 = vpack.c.b16 %v1042_v21, %v1042_v21  ;;  %v1045_v22 = vpack.c.b16 %v1043_v40, %v1043_v40  ;;  %v4055_v21 = vld [vmem:[#allocation60_spill] sm:$0xff]  ;;  %v4056_v40 = vld [vmem:[#allocation61_spill] sm:$0xff] }
 0x26b   :  { %1056 = vmatmul.bf16.vlgmr.msra.gmra.mxu2 %v1044_v23  ;;  %1069 = vmatmul.bf16.vlgmr.msra.gmra.mxu3 %v1045_v22 }
 0x26c   :  { %1082 = vmatmul.bf16.vlgmr.msrb.gmra.mxu0 %v1044_v23  ;;  %1095 = vmatmul.bf16.vlgmr.msrb.gmra.mxu1 %v1045_v22  ;;  %v4039_v22 = vld [vmem:[#allocation43_spill] sm:$0xff]  ;;  %v4040_v23 = vld [vmem:[#allocation44_spill] sm:$0xff] }
 0x26d   :  { %1178 = vmatpush.bf16.msra.mxu2 %v3052_v1  ;;  %1191 = vmatpush.bf16.msra.mxu3 %v3054_v11 }
 0x26e   :  { %1204 = vmatpush.bf16.msrb.mxu0 %v3057_v18  ;;  %1217 = vmatpush.bf16.msrb.mxu1 %v3059_v19 }
 0x271   :  { %1179 = vmatpush.bf16.msra.mxu2 %v3064_v31  ;;  %1192 = vmatpush.bf16.msra.mxu3 %v3066_v39 }
 0x272   :  { %1205 = vmatpush.bf16.msrb.mxu0 %v3069_v44  ;;  %1218 = vmatpush.bf16.msrb.mxu1 %v3071_v47 }
 0x275   :  { %1180 = vmatpush.bf16.msra.mxu2 %v3076_v52  ;;  %1193 = vmatpush.bf16.msra.mxu3 %v3078_v59 }
 0x276   :  { %1206 = vmatpush.bf16.msrb.mxu0 %v3081_v9  ;;  %1219 = vmatpush.bf16.msrb.mxu1 %v4039_v22 }
 0x279   :  { %1181 = vmatpush.bf16.msra.mxu2 %v4040_v23  ;;  %1194 = vmatpush.bf16.msra.mxu3 %v4041_v26 }
 0x27a   :  { %1207 = vmatpush.bf16.msrb.mxu0 %v4042_v27  ;;  %1220 = vmatpush.bf16.msrb.mxu1 %v4026_v58 }
 0x27d   :  { %1182 = vmatpush.bf16.msra.mxu2 %v4043_v15  ;;  %1195 = vmatpush.bf16.msra.mxu3 %v4044_v54 }
 0x27e   :  { %1208 = vmatpush.bf16.msrb.mxu0 %v4045_v30  ;;  %1221 = vmatpush.bf16.msrb.mxu1 %v4046_v48  ;;  %v4057_v48 = vld [vmem:[#allocation62_spill] sm:$0xff] }
 0x281   :  { %1183 = vmatpush.bf16.msra.mxu2 %v4047_v37  ;;  %1196 = vmatpush.bf16.msra.mxu3 %v4048_v33  ;;  %v4058_v37 = vld [vmem:[#allocation63_spill] sm:$0xff] }
 0x282   :  { %1209 = vmatpush.bf16.msrb.mxu0 %v4049_v12  ;;  %1222 = vmatpush.bf16.msrb.mxu1 %v4050_v34 }
 0x285   :  { %1184 = vmatpush.bf16.msra.mxu2 %v4051_v42  ;;  %1197 = vmatpush.bf16.msra.mxu3 %v4052_v5 }
 0x286   :  { %1210 = vmatpush.bf16.msrb.mxu0 %v4053_v43  ;;  %1223 = vmatpush.bf16.msrb.mxu1 %v4054_v17 }
 0x289   :  { %1185 = vmatpush.bf16.msra.mxu2 %v4055_v21  ;;  %1198 = vmatpush.bf16.msra.mxu3 %v4056_v40 }
 0x28a   :  { %1211 = vmatpush.bf16.msrb.mxu0 %v4057_v48  ;;  %1224 = vmatpush.bf16.msrb.mxu1 %v4058_v37 }
 0x2e9   :  { %v1083_v33 = vpop.f32.mrf.mxu0  ;;  %v1096_v12 = vpop.f32.mrf.mxu1 }
 0x2ea   :  { %v1084_v34 = vadd.f32 %v1083_v33, %v3242_v0 }
 0x2ec   :  { %v1097_v30 = vadd.f32 %v1096_v12, %v1084_v34 }
 0x2ee   :  { %v1057_v42 = vpop.f32.mrf.mxu2  ;;  %v1070_v54 = vpop.f32.mrf.mxu3  ;;  %v3320_v43 = vadd.f32 %v1097_v30, %v3235_v35 }
 0x2ef   :  { %v1058_v5 = vadd.f32 %v1057_v42, %v3245_v38  ;;  %v4061_v42 = vld [vmem:[#allocation41_spill] sm:$0xff] }
 0x2f0   :  { %vm1104_vm13 = vcmp.gt.f32.partialorder %v3320_v43, 0.001 }
 0x2f1   :  { %v1071_v17 = vadd.f32 %v1070_v54, %v1058_v5  ;;  %v1085_v21 = vpop.f32.mrf.mxu0  ;;  %v1098_v15 = vpop.f32.mrf.mxu1  ;;  %v4062_v5 = vld [vmem:[#allocation42_spill] sm:$0xff] }
 0x2f2   :  { %v4059_v15 = vld [vmem:[#allocation39_spill] sm:$0xff] }
 0x2f3   :  { %v3323_v40 = vadd.f32 %v1071_v17, %v3239_v61 }
 0x2f5   :  { %v1102_v37 = vpack.c.bf16 %v3320_v43, %v3323_v40  ;;  %vm1103_vm14 = vcmp.gt.f32.partialorder %v3323_v40, 0.001 }
 0x2f6   :  { %vm1105_vm15 = vmpackc.low %vm1104_vm13, %vm1103_vm14  ;;  %v1059_v0 = vpop.f32.mrf.mxu2  ;;  %v1072_v33 = vpop.f32.mrf.mxu3 }
 0x2f7   :  { %v1106_v38 = vsel %vm1105_vm15, %v1102_v37, 0  ;;  %v4060_v37 = vld [vmem:[#allocation40_spill] sm:$0xff] }
 0x2f8   :  { %v1108_v12 = vunpack.c.l.b16 %v1106_v38  ;;  %v1109_v30 = vunpack.c.h.b16 %v1106_v38 }
 0x2fa   :  { %v1110_v34 = vpack.c.b16 %v1108_v12, %v1108_v12  ;;  %v1111_v54 = vpack.c.b16 %v1109_v30, %v1109_v30 }
 0x2fc   :  { %1122 = vmatmul.bf16.vlgmr.msrb.gmra.mxu2 %v1110_v34  ;;  %1135 = vmatmul.bf16.vlgmr.msrb.gmra.mxu3 %v1111_v54 }
 0x2fd   :  { %1148 = vmatmul.bf16.vlgmr.msra.gmra.mxu0 %v1110_v34  ;;  %1161 = vmatmul.bf16.vlgmr.msra.gmra.mxu1 %v1111_v54 }
 0x2fe   :  { %1244 = vmatpush.bf16.msrb.mxu2 %v2948_v49  ;;  %1257 = vmatpush.bf16.msrb.mxu3 %v2950_v53 }
 0x2ff   :  { %1270 = vmatpush.bf16.msra.mxu0 %v2952_v57  ;;  %1283 = vmatpush.bf16.msra.mxu1 %v2954_v60 }
 0x302   :  { %1245 = vmatpush.bf16.msrb.mxu2 %v2957_v63  ;;  %1258 = vmatpush.bf16.msrb.mxu3 %v2960_v2 }
 0x303   :  { %1271 = vmatpush.bf16.msra.mxu0 %v2963_v3  ;;  %1284 = vmatpush.bf16.msra.mxu1 %v2966_v4 }
 0x306   :  { %1246 = vmatpush.bf16.msrb.mxu2 %v2972_v7  ;;  %1259 = vmatpush.bf16.msrb.mxu3 %v2974_v10 }
 0x307   :  { %1272 = vmatpush.bf16.msra.mxu0 %v2977_v13  ;;  %1285 = vmatpush.bf16.msra.mxu1 %v2980_v16 }
 0x30a   :  { %1247 = vmatpush.bf16.msrb.mxu2 %v2983_v20  ;;  %1260 = vmatpush.bf16.msrb.mxu3 %v2986_v24 }
 0x30b   :  { %1273 = vmatpush.bf16.msra.mxu0 %v2988_v25  ;;  %1286 = vmatpush.bf16.msra.mxu1 %v2991_v28 }
 0x30e   :  { %1248 = vmatpush.bf16.msrb.mxu2 %v2996_v32  ;;  %1261 = vmatpush.bf16.msrb.mxu3 %v2998_v36 }
 0x30f   :  { %1274 = vmatpush.bf16.msra.mxu0 %v4037_v55  ;;  %1287 = vmatpush.bf16.msra.mxu1 %v3003_v41 }
 0x312   :  { %1249 = vmatpush.bf16.msrb.mxu2 %v3007_v45  ;;  %1262 = vmatpush.bf16.msrb.mxu3 %v3009_v46 }
 0x313   :  { %1275 = vmatpush.bf16.msra.mxu0 %v3012_v51  ;;  %1288 = vmatpush.bf16.msra.mxu1 %v3014_v56 }
 0x316   :  { %1250 = vmatpush.bf16.msrb.mxu2 %v3017_v62  ;;  %1263 = vmatpush.bf16.msrb.mxu3 %v3021_v6 }
 0x317   :  { %1276 = vmatpush.bf16.msra.mxu0 %v3023_v8  ;;  %1289 = vmatpush.bf16.msra.mxu1 %v3026_v14 }
 0x31a   :  { %1251 = vmatpush.bf16.msrb.mxu2 %v4059_v15  ;;  %1264 = vmatpush.bf16.msrb.mxu3 %v4060_v37 }
 0x31b   :  { %1277 = vmatpush.bf16.msra.mxu0 %v4061_v42  ;;  %1290 = vmatpush.bf16.msra.mxu1 %v4062_v5 }
 0x37a   :  { %v1149_v17 = vpop.f32.mrf.mxu0  ;;  %v1162_v21 = vpop.f32.mrf.mxu1 }
 0x37b   :  { %v1150_v0 = vadd.f32 %v1149_v17, %v4038_v29  ;;  %v4072_v17 = vld [vmem:[#allocation57_spill] sm:$0xff] }
 0x37d   :  { %v1163_v12 = vadd.f32 %v1162_v21, %v1150_v0  ;;  %v4073_v21 = vld [vmem:[#allocation58_spill] sm:$0xff]  ;;  %v4074_v0 = vld [vmem:[#allocation59_spill] sm:$0xff] }
 0x37f   :  { %v1123_v33 = vpop.f32.mrf.mxu2  ;;  %v1136_v38 = vpop.f32.mrf.mxu3  ;;  %vm1168_vm0 = vcmp.gt.f32.partialorder %v1163_v12, 0.001 }
 0x380   :  { %v1124_v30 = vadd.f32 %v1123_v33, %v3183_v50  ;;  %v4075_v33 = vld [vmem:[#allocation60_spill] sm:$0xff] }
 0x382   :  { %v1137_v34 = vadd.f32 %v1136_v38, %v1124_v30  ;;  %v1151_v54 = vpop.f32.mrf.mxu0  ;;  %v1164_v14 = vpop.f32.mrf.mxu1  ;;  %v4076_v38 = vld [vmem:[#allocation61_spill] sm:$0xff] }
 0x383   :  { %v4067_v14 = vld [vmem:[#allocation52_spill] sm:$0xff] }
 0x384   :  { %v1166_v15 = vpack.c.bf16 %v1163_v12, %v1137_v34  ;;  %vm1167_vm1 = vcmp.gt.f32.partialorder %v1137_v34, 0.001  ;;  %v4077_v12 = vld [vmem:[#allocation63_spill] sm:$0xff] }
 0x385   :  { %vm1169_vm2 = vmpackc.low %vm1168_vm0, %vm1167_vm1 }
 0x386   :  { %v1170_v37 = vsel %vm1169_vm2, %v1166_v15, 0  ;;  %v4068_v15 = vld [vmem:[#allocation53_spill] sm:$0xff] }
 0x387   :  { %v1172_v42 = vunpack.c.l.b16 %v1170_v37  ;;  %v1173_v8 = vunpack.c.h.b16 %v1170_v37  ;;  %v1125_v5 = vpop.f32.mrf.mxu2  ;;  %v1138_v6 = vpop.f32.mrf.mxu3  ;;  %v4069_v37 = vld [vmem:[#allocation54_spill] sm:$0xff] }
 0x388   :  { %v4065_v6 = vld [vmem:[#allocation50_spill] sm:$0xff]  ;;  %v4071_v5 = vld [vmem:[#allocation56_spill] sm:$0xff] }
 0x389   :  { %v1174_v62 = vpack.c.b16 %v1172_v42, %v1172_v42  ;;  %v1175_v56 = vpack.c.b16 %v1173_v8, %v1173_v8  ;;  %v4066_v8 = vld [vmem:[#allocation51_spill] sm:$0xff] }
 0x38a   :  { %v4070_v42 = vld [vmem:[#allocation55_spill] sm:$0xff] }
 0x38b   :  { %1186 = vmatmul.bf16.vlgmr.msra.gmra.mxu2 %v1174_v62  ;;  %1199 = vmatmul.bf16.vlgmr.msra.gmra.mxu3 %v1175_v56 }
 0x38c   :  { %1212 = vmatmul.bf16.vlgmr.msrb.gmra.mxu0 %v1174_v62  ;;  %1225 = vmatmul.bf16.vlgmr.msrb.gmra.mxu1 %v1175_v56  ;;  %v4063_v56 = vld [vmem:[#allocation48_spill] sm:$0xff]  ;;  %v4064_v62 = vld [vmem:[#allocation49_spill] sm:$0xff] }
 0x38d   :  { %1308 = vmatpush.bf16.msra.mxu2 %v3052_v1  ;;  %1321 = vmatpush.bf16.msra.mxu3 %v3054_v11 }
 0x38e   :  { %1334 = vmatpush.bf16.msrb.mxu0 %v3057_v18  ;;  %1347 = vmatpush.bf16.msrb.mxu1 %v3059_v19 }
 0x391   :  { %1309 = vmatpush.bf16.msra.mxu2 %v3064_v31  ;;  %1322 = vmatpush.bf16.msra.mxu3 %v3066_v39 }
 0x392   :  { %1335 = vmatpush.bf16.msrb.mxu0 %v3069_v44  ;;  %1348 = vmatpush.bf16.msrb.mxu1 %v3071_v47 }
 0x395   :  { %1310 = vmatpush.bf16.msra.mxu2 %v3076_v52  ;;  %1323 = vmatpush.bf16.msra.mxu3 %v3078_v59 }
 0x396   :  { %1336 = vmatpush.bf16.msrb.mxu0 %v3081_v9  ;;  %1349 = vmatpush.bf16.msrb.mxu1 %v4039_v22 }
 0x399   :  { %1311 = vmatpush.bf16.msra.mxu2 %v4040_v23  ;;  %1324 = vmatpush.bf16.msra.mxu3 %v4041_v26 }
 0x39a   :  { %1337 = vmatpush.bf16.msrb.mxu0 %v4042_v27  ;;  %1350 = vmatpush.bf16.msrb.mxu1 %v4026_v58 }
 0x39d   :  { %1312 = vmatpush.bf16.msra.mxu2 %v4063_v56  ;;  %1325 = vmatpush.bf16.msra.mxu3 %v4064_v62 }
 0x39e   :  { %1338 = vmatpush.bf16.msrb.mxu0 %v4065_v6  ;;  %1351 = vmatpush.bf16.msrb.mxu1 %v4066_v8 }
 0x3a1   :  { %1313 = vmatpush.bf16.msra.mxu2 %v4067_v14  ;;  %1326 = vmatpush.bf16.msra.mxu3 %v4068_v15 }
 0x3a2   :  { %1339 = vmatpush.bf16.msrb.mxu0 %v4069_v37  ;;  %1352 = vmatpush.bf16.msrb.mxu1 %v4070_v42 }
 0x3a5   :  { %1314 = vmatpush.bf16.msra.mxu2 %v4071_v5  ;;  %1327 = vmatpush.bf16.msra.mxu3 %v4072_v17 }
 0x3a6   :  { %1340 = vmatpush.bf16.msrb.mxu0 %v4073_v21  ;;  %1353 = vmatpush.bf16.msrb.mxu1 %v4074_v0 }
 0x3a9   :  { %1315 = vmatpush.bf16.msra.mxu2 %v4075_v33  ;;  %1328 = vmatpush.bf16.msra.mxu3 %v4076_v38 }
 0x3aa   :  { %1341 = vmatpush.bf16.msrb.mxu0 %v4057_v48  ;;  %1354 = vmatpush.bf16.msrb.mxu1 %v4077_v12 }
 0x409   :  { %v1213_v30 = vpop.f32.mrf.mxu0  ;;  %v1226_v34 = vpop.f32.mrf.mxu1 }
 0x40a   :  { %v1214_v54 = vadd.f32 %v1213_v30, %v3320_v43 }
 0x40c   :  { %v1227_v42 = vadd.f32 %v1226_v34, %v1214_v54  ;;  %v4083_v54 = vld [vmem:[#allocation39_spill] sm:$0xff] }
 0x40e   :  { %v1187_v5 = vpop.f32.mrf.mxu2  ;;  %v1200_v37 = vpop.f32.mrf.mxu3  ;;  %v3398_v21 = vadd.f32 %v1227_v42, %v3235_v35 }
 0x40f   :  { %v1188_v17 = vadd.f32 %v1187_v5, %v3323_v40 }
 0x410   :  { %vm1234_vm3 = vcmp.gt.f32.partialorder %v3398_v21, 0.001 }
 0x411   :  { %v1201_v0 = vadd.f32 %v1200_v37, %v1188_v17  ;;  %v1215_v33 = vpop.f32.mrf.mxu0  ;;  %v1228_v15 = vpop.f32.mrf.mxu1  ;;  %v4079_v17 = vld [vmem:[#allocation35_spill] sm:$0xff] }
 0x412   :  { %v4078_v15 = vld [vmem:[#allocation34_spill] sm:$0xff]  ;;  %v4081_v33 = vld [vmem:[#allocation37_spill] sm:$0xff] }
 0x413   :  { %v3401_v38 = vadd.f32 %v1201_v0, %v3239_v61  ;;  %v4080_v0 = vld [vmem:[#allocation36_spill] sm:$0xff] }
 0x415   :  { %v1232_v12 = vpack.c.bf16 %v3398_v21, %v3401_v38  ;;  %vm1233_vm4 = vcmp.gt.f32.partialorder %v3401_v38, 0.001 }
 0x416   :  { %vm1235_vm5 = vmpackc.low %vm1234_vm3, %vm1233_vm4  ;;  %v1189_v43 = vpop.f32.mrf.mxu2  ;;  %v1202_v30 = vpop.f32.mrf.mxu3 }
 0x417   :  { %v1236_v40 = vsel %vm1235_vm5, %v1232_v12, 0  ;;  %v4082_v12 = vld [vmem:[#allocation38_spill] sm:$0xff]  ;;  %v4084_v43 = vld [vmem:[#allocation40_spill] sm:$0xff]  ;;  %v4085_v30 = vld [vmem:[#allocation41_spill] sm:$0xff] }
 0x418   :  { %v1238_v5 = vunpack.c.l.b16 %v1236_v40  ;;  %v1239_v42 = vunpack.c.h.b16 %v1236_v40  ;;  %v4086_v40 = vld [vmem:[#allocation42_spill] sm:$0xff] }
 0x41a   :  { %v1240_v34 = vpack.c.b16 %v1238_v5, %v1238_v5  ;;  %v1241_v37 = vpack.c.b16 %v1239_v42, %v1239_v42 }
 0x41c   :  { %1252 = vmatmul.bf16.vlgmr.msrb.gmra.mxu2 %v1240_v34  ;;  %1265 = vmatmul.bf16.vlgmr.msrb.gmra.mxu3 %v1241_v37 }
 0x41d   :  { %1278 = vmatmul.bf16.vlgmr.msra.gmra.mxu0 %v1240_v34  ;;  %1291 = vmatmul.bf16.vlgmr.msra.gmra.mxu1 %v1241_v37 }
 0x41e   :  { %1374 = vmatpush.bf16.msrb.mxu2 %v2948_v49  ;;  %1387 = vmatpush.bf16.msrb.mxu3 %v2950_v53 }
 0x41f   :  { %1400 = vmatpush.bf16.msra.mxu0 %v2952_v57  ;;  %1413 = vmatpush.bf16.msra.mxu1 %v2954_v60 }
 0x422   :  { %1375 = vmatpush.bf16.msrb.mxu2 %v2957_v63  ;;  %1388 = vmatpush.bf16.msrb.mxu3 %v2960_v2 }
 0x423   :  { %1401 = vmatpush.bf16.msra.mxu0 %v2963_v3  ;;  %1414 = vmatpush.bf16.msra.mxu1 %v2966_v4 }
 0x426   :  { %1376 = vmatpush.bf16.msrb.mxu2 %v2972_v7  ;;  %1389 = vmatpush.bf16.msrb.mxu3 %v2974_v10 }
 0x427   :  { %1402 = vmatpush.bf16.msra.mxu0 %v2977_v13  ;;  %1415 = vmatpush.bf16.msra.mxu1 %v2980_v16 }
 0x42a   :  { %1377 = vmatpush.bf16.msrb.mxu2 %v2983_v20  ;;  %1390 = vmatpush.bf16.msrb.mxu3 %v2986_v24 }
 0x42b   :  { %1403 = vmatpush.bf16.msra.mxu0 %v2988_v25  ;;  %1416 = vmatpush.bf16.msra.mxu1 %v2991_v28 }
 0x42e   :  { %1378 = vmatpush.bf16.msrb.mxu2 %v2996_v32  ;;  %1391 = vmatpush.bf16.msrb.mxu3 %v2998_v36 }
 0x42f   :  { %1404 = vmatpush.bf16.msra.mxu0 %v4037_v55  ;;  %1417 = vmatpush.bf16.msra.mxu1 %v3003_v41 }
 0x432   :  { %1379 = vmatpush.bf16.msrb.mxu2 %v3007_v45  ;;  %1392 = vmatpush.bf16.msrb.mxu3 %v3009_v46 }
 0x433   :  { %1405 = vmatpush.bf16.msra.mxu0 %v3012_v51  ;;  %1418 = vmatpush.bf16.msra.mxu1 %v4078_v15 }
 0x436   :  { %1380 = vmatpush.bf16.msrb.mxu2 %v4079_v17  ;;  %1393 = vmatpush.bf16.msrb.mxu3 %v4080_v0 }
 0x437   :  { %1406 = vmatpush.bf16.msra.mxu0 %v4081_v33  ;;  %1419 = vmatpush.bf16.msra.mxu1 %v4082_v12 }
 0x43a   :  { %1381 = vmatpush.bf16.msrb.mxu2 %v4083_v54  ;;  %1394 = vmatpush.bf16.msrb.mxu3 %v4084_v43 }
 0x43b   :  { %1407 = vmatpush.bf16.msra.mxu0 %v4085_v30  ;;  %1420 = vmatpush.bf16.msra.mxu1 %v4086_v40 }
 0x49a   :  { %v1279_v5 = vpop.f32.mrf.mxu0  ;;  %v1292_v42 = vpop.f32.mrf.mxu1 }
 0x49b   :  { %v1280_v34 = vadd.f32 %v1279_v5, %v4038_v29 }
 0x49d   :  { %v1293_v15 = vadd.f32 %v1292_v42, %v1280_v34 }
 0x49f   :  { %v1253_v37 = vpop.f32.mrf.mxu2  ;;  %v1266_v17 = vpop.f32.mrf.mxu3  ;;  %vm1298_vm6 = vcmp.gt.f32.partialorder %v1293_v15, 0.001 }
 0x4a0   :  { %v1254_v0 = vadd.f32 %v1253_v37, %v3183_v50 }
 0x4a2   :  { %v1267_v33 = vadd.f32 %v1266_v17, %v1254_v0  ;;  %v1281_v51 = vpop.f32.mrf.mxu0  ;;  %v1294_v12 = vpop.f32.mrf.mxu1  ;;  %v4093_v17 = vld [vmem:[#allocation59_spill] sm:$0xff]  ;;  %v4094_v0 = vld [vmem:[#allocation60_spill] sm:$0xff] }
 0x4a3   :  { %v4090_v51 = vld [vmem:[#allocation56_spill] sm:$0xff]  ;;  %v4096_v12 = vld [vmem:[#allocation63_spill] sm:$0xff] }
 0x4a4   :  { %v1296_v54 = vpack.c.bf16 %v1293_v15, %v1267_v33  ;;  %vm1297_vm7 = vcmp.gt.f32.partialorder %v1267_v33, 0.001  ;;  %v4092_v15 = vld [vmem:[#allocation58_spill] sm:$0xff]  ;;  %v4095_v33 = vld [vmem:[#allocation61_spill] sm:$0xff] }
 0x4a5   :  { %vm1299_vm8 = vmpackc.low %vm1298_vm6, %vm1297_vm7 }
 0x4a6   :  { %v1300_v43 = vsel %vm1299_vm8, %v1296_v54, 0 }
 0x4a7   :  { %v1302_v30 = vunpack.c.l.b16 %v1300_v43  ;;  %v1303_v46 = vunpack.c.h.b16 %v1300_v43  ;;  %v1255_v40 = vpop.f32.mrf.mxu2  ;;  %v1268_v45 = vpop.f32.mrf.mxu3 }
 0x4a8   :  { %v4088_v45 = vld [vmem:[#allocation54_spill] sm:$0xff] }
 0x4a9   :  { %v1304_v41 = vpack.c.b16 %v1302_v30, %v1302_v30  ;;  %v1305_v55 = vpack.c.b16 %v1303_v46, %v1303_v46  ;;  %v4089_v46 = vld [vmem:[#allocation55_spill] sm:$0xff] }
 0x4ab   :  { %1316 = vmatmul.bf16.vlgmr.msra.gmra.mxu2 %v1304_v41  ;;  %1329 = vmatmul.bf16.vlgmr.msra.gmra.mxu3 %v1305_v55 }
 0x4ac   :  { %1342 = vmatmul.bf16.vlgmr.msrb.gmra.mxu0 %v1304_v41  ;;  %1355 = vmatmul.bf16.vlgmr.msrb.gmra.mxu1 %v1305_v55  ;;  %v4087_v41 = vld [vmem:[#allocation53_spill] sm:$0xff] }
 0x4ad   :  { %1438 = vmatpush.bf16.msra.mxu2 %v3052_v1  ;;  %1451 = vmatpush.bf16.msra.mxu3 %v3054_v11  ;;  %v4091_v55 = vld [vmem:[#allocation57_spill] sm:$0xff] }
 0x4ae   :  { %1464 = vmatpush.bf16.msrb.mxu0 %v3057_v18  ;;  %1477 = vmatpush.bf16.msrb.mxu1 %v3059_v19 }
 0x4b1   :  { %1439 = vmatpush.bf16.msra.mxu2 %v3064_v31  ;;  %1452 = vmatpush.bf16.msra.mxu3 %v3066_v39 }
 0x4b2   :  { %1465 = vmatpush.bf16.msrb.mxu0 %v3069_v44  ;;  %1478 = vmatpush.bf16.msrb.mxu1 %v3071_v47 }
 0x4b5   :  { %1440 = vmatpush.bf16.msra.mxu2 %v3076_v52  ;;  %1453 = vmatpush.bf16.msra.mxu3 %v3078_v59 }
 0x4b6   :  { %1466 = vmatpush.bf16.msrb.mxu0 %v3081_v9  ;;  %1479 = vmatpush.bf16.msrb.mxu1 %v4039_v22 }
 0x4b9   :  { %1441 = vmatpush.bf16.msra.mxu2 %v4040_v23  ;;  %1454 = vmatpush.bf16.msra.mxu3 %v4041_v26 }
 0x4ba   :  { %1467 = vmatpush.bf16.msrb.mxu0 %v4042_v27  ;;  %1480 = vmatpush.bf16.msrb.mxu1 %v4026_v58 }
 0x4bd   :  { %1442 = vmatpush.bf16.msra.mxu2 %v4063_v56  ;;  %1455 = vmatpush.bf16.msra.mxu3 %v4064_v62 }
 0x4be   :  { %1468 = vmatpush.bf16.msrb.mxu0 %v4065_v6  ;;  %1481 = vmatpush.bf16.msrb.mxu1 %v4066_v8 }
 0x4c1   :  { %1443 = vmatpush.bf16.msra.mxu2 %v4067_v14  ;;  %1456 = vmatpush.bf16.msra.mxu3 %v4087_v41 }
 0x4c2   :  { %1469 = vmatpush.bf16.msrb.mxu0 %v4088_v45  ;;  %1482 = vmatpush.bf16.msrb.mxu1 %v4089_v46 }
 0x4c5   :  { %1444 = vmatpush.bf16.msra.mxu2 %v4090_v51  ;;  %1457 = vmatpush.bf16.msra.mxu3 %v4091_v55 }
 0x4c6   :  { %1470 = vmatpush.bf16.msrb.mxu0 %v4092_v15  ;;  %1483 = vmatpush.bf16.msrb.mxu1 %v4093_v17 }
 0x4c9   :  { %1445 = vmatpush.bf16.msra.mxu2 %v4094_v0  ;;  %1458 = vmatpush.bf16.msra.mxu3 %v4095_v33 }
 0x4ca   :  { %1471 = vmatpush.bf16.msrb.mxu0 %v4057_v48  ;;  %1484 = vmatpush.bf16.msrb.mxu1 %v4096_v12 }
 0x529   :  { %v1343_v54 = vpop.f32.mrf.mxu0  ;;  %v1356_v43 = vpop.f32.mrf.mxu1 }
 0x52a   :  { %v1344_v30 = vadd.f32 %v1343_v54, %v3398_v21 }
 0x52c   :  { %v1357_v40 = vadd.f32 %v1356_v43, %v1344_v30 }
 0x52e   :  { %v1317_v5 = vpop.f32.mrf.mxu2  ;;  %v1330_v42 = vpop.f32.mrf.mxu3  ;;  %v3476_v37 = vadd.f32 %v1357_v40, %v3235_v35 }
 0x52f   :  { %v1318_v34 = vadd.f32 %v1317_v5, %v3401_v38 }
 0x530   :  { %vm1364_vm9 = vcmp.gt.f32.partialorder %v3476_v37, 0.001 }
 0x531   :  { %v1331_v17 = vadd.f32 %v1330_v42, %v1318_v34  ;;  %v1345_v0 = vpop.f32.mrf.mxu0  ;;  %v1358_v15 = vpop.f32.mrf.mxu1  ;;  %v4101_v42 = vld [vmem:[#allocation33_spill] sm:$0xff]  ;;  %v4102_v34 = vld [vmem:[#allocation34_spill] sm:$0xff] }
 0x532   :  { %v4097_v15 = vld [vmem:[#allocation29_spill] sm:$0xff]  ;;  %v4099_v0 = vld [vmem:[#allocation31_spill] sm:$0xff] }
 0x533   :  { %v3479_v33 = vadd.f32 %v1331_v17, %v3239_v61  ;;  %v4098_v17 = vld [vmem:[#allocation30_spill] sm:$0xff] }
 0x535   :  { %v1362_v12 = vpack.c.bf16 %v3476_v37, %v3479_v33  ;;  %vm1363_vm10 = vcmp.gt.f32.partialorder %v3479_v33, 0.001 }
 0x536   :  { %vm1365_vm11 = vmpackc.low %vm1364_vm9, %vm1363_vm10  ;;  %v1319_v21 = vpop.f32.mrf.mxu2  ;;  %v1332_v54 = vpop.f32.mrf.mxu3 }
 0x537   :  { %v1366_v38 = vsel %vm1365_vm11, %v1362_v12, 0  ;;  %v4100_v12 = vld [vmem:[#allocation32_spill] sm:$0xff]  ;;  %v4103_v21 = vld [vmem:[#allocation35_spill] sm:$0xff] }
 0x538   :  { %v1368_v43 = vunpack.c.l.b16 %v1366_v38  ;;  %v1369_v30 = vunpack.c.h.b16 %v1366_v38  ;;  %v4104_v54 = vld [vmem:[#allocation36_spill] sm:$0xff]  ;;  %v4105_v38 = vld [vmem:[#allocation37_spill] sm:$0xff] }
 0x53a   :  { %v1370_v40 = vpack.c.b16 %v1368_v43, %v1368_v43  ;;  %v1371_v5 = vpack.c.b16 %v1369_v30, %v1369_v30  ;;  %v4106_v43 = vld [vmem:[#allocation38_spill] sm:$0xff]  ;;  %v4107_v30 = vld [vmem:[#allocation39_spill] sm:$0xff] }
 0x53c   :  { %1382 = vmatmul.bf16.vlgmr.msrb.gmra.mxu2 %v1370_v40  ;;  %1395 = vmatmul.bf16.vlgmr.msrb.gmra.mxu3 %v1371_v5 }
 0x53d   :  { %1408 = vmatmul.bf16.vlgmr.msra.gmra.mxu0 %v1370_v40  ;;  %1421 = vmatmul.bf16.vlgmr.msra.gmra.mxu1 %v1371_v5  ;;  %v4108_v40 = vld [vmem:[#allocation40_spill] sm:$0xff]  ;;  %v4109_v5 = vld [vmem:[#allocation41_spill] sm:$0xff] }
 0x53e   :  { %1504 = vmatpush.bf16.msrb.mxu2 %v2948_v49  ;;  %1517 = vmatpush.bf16.msrb.mxu3 %v2950_v53 }
 0x53f   :  { %1530 = vmatpush.bf16.msra.mxu0 %v2952_v57  ;;  %1543 = vmatpush.bf16.msra.mxu1 %v2954_v60 }
 0x542   :  { %1505 = vmatpush.bf16.msrb.mxu2 %v2957_v63  ;;  %1518 = vmatpush.bf16.msrb.mxu3 %v2960_v2 }
 0x543   :  { %1531 = vmatpush.bf16.msra.mxu0 %v2963_v3  ;;  %1544 = vmatpush.bf16.msra.mxu1 %v2966_v4 }
 0x546   :  { %1506 = vmatpush.bf16.msrb.mxu2 %v2972_v7  ;;  %1519 = vmatpush.bf16.msrb.mxu3 %v2974_v10 }
 0x547   :  { %1532 = vmatpush.bf16.msra.mxu0 %v2977_v13  ;;  %1545 = vmatpush.bf16.msra.mxu1 %v2980_v16 }
 0x54a   :  { %1507 = vmatpush.bf16.msrb.mxu2 %v2983_v20  ;;  %1520 = vmatpush.bf16.msrb.mxu3 %v2986_v24 }
 0x54b   :  { %1533 = vmatpush.bf16.msra.mxu0 %v2988_v25  ;;  %1546 = vmatpush.bf16.msra.mxu1 %v2991_v28 }
 0x54e   :  { %1508 = vmatpush.bf16.msrb.mxu2 %v2996_v32  ;;  %1521 = vmatpush.bf16.msrb.mxu3 %v2998_v36 }
 0x54f   :  { %1534 = vmatpush.bf16.msra.mxu0 %v4097_v15  ;;  %1547 = vmatpush.bf16.msra.mxu1 %v4098_v17 }
 0x552   :  { %1509 = vmatpush.bf16.msrb.mxu2 %v4099_v0  ;;  %1522 = vmatpush.bf16.msrb.mxu3 %v4100_v12  ;;  %v4110_v0 = vld [vmem:[#allocation42_spill] sm:$0xff] }
 0x553   :  { %1535 = vmatpush.bf16.msra.mxu0 %v4101_v42  ;;  %1548 = vmatpush.bf16.msra.mxu1 %v4102_v34 }
 0x556   :  { %1510 = vmatpush.bf16.msrb.mxu2 %v4103_v21  ;;  %1523 = vmatpush.bf16.msrb.mxu3 %v4104_v54 }
 0x557   :  { %1536 = vmatpush.bf16.msra.mxu0 %v4105_v38  ;;  %1549 = vmatpush.bf16.msra.mxu1 %v4106_v43 }
 0x55a   :  { %1511 = vmatpush.bf16.msrb.mxu2 %v4107_v30  ;;  %1524 = vmatpush.bf16.msrb.mxu3 %v4108_v40 }
 0x55b   :  { %1537 = vmatpush.bf16.msra.mxu0 %v4109_v5  ;;  %1550 = vmatpush.bf16.msra.mxu1 %v4110_v0 }
 0x5ba   :  { %v1409_v12 = vpop.f32.mrf.mxu0  ;;  %v1422_v42 = vpop.f32.mrf.mxu1 }
 0x5bb   :  { %v1410_v34 = vadd.f32 %v1409_v12, %v4038_v29 }
 0x5bd   :  { %v1423_v15 = vadd.f32 %v1422_v42, %v1410_v34 }
 0x5bf   :  { %v1383_v17 = vpop.f32.mrf.mxu2  ;;  %v1396_v21 = vpop.f32.mrf.mxu3  ;;  %vm1428_vm12 = vcmp.gt.f32.partialorder %v1423_v15, 0.001 }
 0x5c0   :  { %v1384_v54 = vadd.f32 %v1383_v17, %v3183_v50 }
 0x5c2   :  { %v1397_v38 = vadd.f32 %v1396_v21, %v1384_v54  ;;  %v1411_v36 = vpop.f32.mrf.mxu0  ;;  %v1424_v43 = vpop.f32.mrf.mxu1 }
 0x5c3   :  { %v4115_v36 = vld [vmem:[#allocation63_spill] sm:$0xff] }
 0x5c4   :  { %v1426_v30 = vpack.c.bf16 %v1423_v15, %v1397_v38  ;;  %vm1427_vm13 = vcmp.gt.f32.partialorder %v1397_v38, 0.001 }
 0x5c5   :  { %vm1429_vm14 = vmpackc.low %vm1428_vm12, %vm1427_vm13 }
 0x5c6   :  { %v1430_v40 = vsel %vm1429_vm14, %v1426_v30, 0 }
 0x5c7   :  { %v1432_v5 = vunpack.c.l.b16 %v1430_v40  ;;  %v1433_v32 = vunpack.c.h.b16 %v1430_v40  ;;  %v1385_v0 = vpop.f32.mrf.mxu2  ;;  %v1398_v28 = vpop.f32.mrf.mxu3 }
 0x5c8   :  { %v4113_v28 = vld [vmem:[#allocation60_spill] sm:$0xff] }
 0x5c9   :  { %v1434_v25 = vpack.c.b16 %v1432_v5, %v1432_v5  ;;  %v1435_v24 = vpack.c.b16 %v1433_v32, %v1433_v32  ;;  %v4114_v32 = vld [vmem:[#allocation61_spill] sm:$0xff] }
 0x5cb   :  { %1446 = vmatmul.bf16.vlgmr.msra.gmra.mxu2 %v1434_v25  ;;  %1459 = vmatmul.bf16.vlgmr.msra.gmra.mxu3 %v1435_v24 }
 0x5cc   :  { %1472 = vmatmul.bf16.vlgmr.msrb.gmra.mxu0 %v1434_v25  ;;  %1485 = vmatmul.bf16.vlgmr.msrb.gmra.mxu1 %v1435_v24  ;;  %v4111_v24 = vld [vmem:[#allocation58_spill] sm:$0xff]  ;;  %v4112_v25 = vld [vmem:[#allocation59_spill] sm:$0xff] }
 0x5cd   :  { %1568 = vmatpush.bf16.msra.mxu2 %v3052_v1  ;;  %1581 = vmatpush.bf16.msra.mxu3 %v3054_v11 }
 0x5ce   :  { %1594 = vmatpush.bf16.msrb.mxu0 %v3057_v18  ;;  %1607 = vmatpush.bf16.msrb.mxu1 %v3059_v19 }
 0x5d1   :  { %1569 = vmatpush.bf16.msra.mxu2 %v3064_v31  ;;  %1582 = vmatpush.bf16.msra.mxu3 %v3066_v39 }
 0x5d2   :  { %1595 = vmatpush.bf16.msrb.mxu0 %v3069_v44  ;;  %1608 = vmatpush.bf16.msrb.mxu1 %v3071_v47 }
 0x5d5   :  { %1570 = vmatpush.bf16.msra.mxu2 %v3076_v52  ;;  %1583 = vmatpush.bf16.msra.mxu3 %v3078_v59 }
 0x5d6   :  { %1596 = vmatpush.bf16.msrb.mxu0 %v3081_v9  ;;  %1609 = vmatpush.bf16.msrb.mxu1 %v4039_v22 }
 0x5d9   :  { %1571 = vmatpush.bf16.msra.mxu2 %v4040_v23  ;;  %1584 = vmatpush.bf16.msra.mxu3 %v4041_v26 }
 0x5da   :  { %1597 = vmatpush.bf16.msrb.mxu0 %v4042_v27  ;;  %1610 = vmatpush.bf16.msrb.mxu1 %v4026_v58 }
 0x5dd   :  { %1572 = vmatpush.bf16.msra.mxu2 %v4063_v56  ;;  %1585 = vmatpush.bf16.msra.mxu3 %v4064_v62 }
 0x5de   :  { %1598 = vmatpush.bf16.msrb.mxu0 %v4065_v6  ;;  %1611 = vmatpush.bf16.msrb.mxu1 %v4066_v8 }
 0x5e1   :  { %1573 = vmatpush.bf16.msra.mxu2 %v4067_v14  ;;  %1586 = vmatpush.bf16.msra.mxu3 %v4087_v41 }
 0x5e2   :  { %1599 = vmatpush.bf16.msrb.mxu0 %v4088_v45  ;;  %1612 = vmatpush.bf16.msrb.mxu1 %v4089_v46 }
 0x5e5   :  { %1574 = vmatpush.bf16.msra.mxu2 %v4090_v51  ;;  %1587 = vmatpush.bf16.msra.mxu3 %v4091_v55 }
 0x5e6   :  { %1600 = vmatpush.bf16.msrb.mxu0 %v4111_v24  ;;  %1613 = vmatpush.bf16.msrb.mxu1 %v4112_v25 }
 0x5e9   :  { %1575 = vmatpush.bf16.msra.mxu2 %v4113_v28  ;;  %1588 = vmatpush.bf16.msra.mxu3 %v4114_v32 }
 0x5ea   :  { %1601 = vmatpush.bf16.msrb.mxu0 %v4057_v48  ;;  %1614 = vmatpush.bf16.msrb.mxu1 %v4115_v36 }
 0x649   :  { %v1473_v15 = vpop.f32.mrf.mxu0  ;;  %v1486_v17 = vpop.f32.mrf.mxu1 }
 0x64a   :  { %v1474_v0 = vadd.f32 %v1473_v15, %v3476_v37 }
 0x64c   :  { %v1487_v12 = vadd.f32 %v1486_v17, %v1474_v0 }
 0x64e   :  { %v1447_v42 = vpop.f32.mrf.mxu2  ;;  %v1460_v34 = vpop.f32.mrf.mxu3  ;;  %v3554_v54 = vadd.f32 %v1487_v12, %v3235_v35 }
 0x64f   :  { %v1448_v21 = vadd.f32 %v1447_v42, %v3479_v33 }
 0x650   :  { %vm1494_vm15 = vcmp.gt.f32.partialorder %v3554_v54, 0.001 }
 0x651   :  { %v1461_v38 = vadd.f32 %v1460_v34, %v1448_v21  ;;  %v1475_v43 = vpop.f32.mrf.mxu0  ;;  %v1488_v30 = vpop.f32.mrf.mxu1  ;;  %v4116_v34 = vld [vmem:[#allocation24_spill] sm:$0xff]  ;;  %v4117_v21 = vld [vmem:[#allocation25_spill] sm:$0xff] }
 0x652   :  { %v4119_v43 = vld [vmem:[#allocation27_spill] sm:$0xff]  ;;  %v4120_v30 = vld [vmem:[#allocation28_spill] sm:$0xff] }
 0x653   :  { %v3557_v40 = vadd.f32 %v1461_v38, %v3239_v61  ;;  %v4118_v38 = vld [vmem:[#allocation26_spill] sm:$0xff] }
 0x655   :  { %v1492_v5 = vpack.c.bf16 %v3554_v54, %v3557_v40  ;;  %vm1493_vm0 = vcmp.gt.f32.partialorder %v3557_v40, 0.001 }
 0x656   :  { %vm1495_vm1 = vmpackc.low %vm1494_vm15, %vm1493_vm0  ;;  %v1449_v37 = vpop.f32.mrf.mxu2  ;;  %v1462_v15 = vpop.f32.mrf.mxu3 }
 0x657   :  { %v1496_v33 = vsel %vm1495_vm1, %v1492_v5, 0  ;;  %v4121_v5 = vld [vmem:[#allocation29_spill] sm:$0xff]  ;;  %v4122_v37 = vld [vmem:[#allocation30_spill] sm:$0xff]  ;;  %v4123_v15 = vld [vmem:[#allocation31_spill] sm:$0xff] }
 0x658   :  { %v1498_v17 = vunpack.c.l.b16 %v1496_v33  ;;  %v1499_v0 = vunpack.c.h.b16 %v1496_v33  ;;  %v4124_v33 = vld [vmem:[#allocation32_spill] sm:$0xff] }
 0x65a   :  { %v1500_v12 = vpack.c.b16 %v1498_v17, %v1498_v17  ;;  %v1501_v42 = vpack.c.b16 %v1499_v0, %v1499_v0  ;;  %v4125_v17 = vld [vmem:[#allocation33_spill] sm:$0xff]  ;;  %v4126_v0 = vld [vmem:[#allocation34_spill] sm:$0xff] }
 0x65c   :  { %1512 = vmatmul.bf16.vlgmr.msrb.gmra.mxu2 %v1500_v12  ;;  %1525 = vmatmul.bf16.vlgmr.msrb.gmra.mxu3 %v1501_v42 }
 0x65d   :  { %1538 = vmatmul.bf16.vlgmr.msra.gmra.mxu0 %v1500_v12  ;;  %1551 = vmatmul.bf16.vlgmr.msra.gmra.mxu1 %v1501_v42  ;;  %v4127_v12 = vld [vmem:[#allocation35_spill] sm:$0xff]  ;;  %v4128_v42 = vld [vmem:[#allocation36_spill] sm:$0xff] }
 0x65e   :  { %1634 = vmatpush.bf16.msrb.mxu2 %v2948_v49  ;;  %1647 = vmatpush.bf16.msrb.mxu3 %v2950_v53 }
 0x65f   :  { %1660 = vmatpush.bf16.msra.mxu0 %v2952_v57  ;;  %1673 = vmatpush.bf16.msra.mxu1 %v2954_v60 }
 0x662   :  { %1635 = vmatpush.bf16.msrb.mxu2 %v2957_v63  ;;  %1648 = vmatpush.bf16.msrb.mxu3 %v2960_v2 }
 0x663   :  { %1661 = vmatpush.bf16.msra.mxu0 %v2963_v3  ;;  %1674 = vmatpush.bf16.msra.mxu1 %v2966_v4 }
 0x666   :  { %1636 = vmatpush.bf16.msrb.mxu2 %v2972_v7  ;;  %1649 = vmatpush.bf16.msrb.mxu3 %v2974_v10 }
 0x667   :  { %1662 = vmatpush.bf16.msra.mxu0 %v2977_v13  ;;  %1675 = vmatpush.bf16.msra.mxu1 %v2980_v16 }
 0x66a   :  { %1637 = vmatpush.bf16.msrb.mxu2 %v2983_v20  ;;  %1650 = vmatpush.bf16.msrb.mxu3 %v4116_v34 }
 0x66b   :  { %1663 = vmatpush.bf16.msra.mxu0 %v4117_v21  ;;  %1676 = vmatpush.bf16.msra.mxu1 %v4118_v38  ;;  %v4129_v38 = vld [vmem:[#allocation37_spill] sm:$0xff] }
 0x66e   :  { %1638 = vmatpush.bf16.msrb.mxu2 %v4119_v43  ;;  %1651 = vmatpush.bf16.msrb.mxu3 %v4120_v30  ;;  %v4130_v43 = vld [vmem:[#allocation38_spill] sm:$0xff]  ;;  %v4131_v30 = vld [vmem:[#allocation39_spill] sm:$0xff] }
 0x66f   :  { %1664 = vmatpush.bf16.msra.mxu0 %v4121_v5  ;;  %1677 = vmatpush.bf16.msra.mxu1 %v4122_v37  ;;  %v4132_v5 = vld [vmem:[#allocation40_spill] sm:$0xff]  ;;  %v4133_v37 = vld [vmem:[#allocation41_spill] sm:$0xff] }
 0x672   :  { %1639 = vmatpush.bf16.msrb.mxu2 %v4123_v15  ;;  %1652 = vmatpush.bf16.msrb.mxu3 %v4124_v33  ;;  %v4134_v15 = vld [vmem:[#allocation42_spill] sm:$0xff] }
 0x673   :  { %1665 = vmatpush.bf16.msra.mxu0 %v4125_v17  ;;  %1678 = vmatpush.bf16.msra.mxu1 %v4126_v0 }
 0x676   :  { %1640 = vmatpush.bf16.msrb.mxu2 %v4127_v12  ;;  %1653 = vmatpush.bf16.msrb.mxu3 %v4128_v42 }
 0x677   :  { %1666 = vmatpush.bf16.msra.mxu0 %v4129_v38  ;;  %1679 = vmatpush.bf16.msra.mxu1 %v4130_v43 }
 0x67a   :  { %1641 = vmatpush.bf16.msrb.mxu2 %v4131_v30  ;;  %1654 = vmatpush.bf16.msrb.mxu3 %v4132_v5 }
 0x67b   :  { %1667 = vmatpush.bf16.msra.mxu0 %v4133_v37  ;;  %1680 = vmatpush.bf16.msra.mxu1 %v4134_v15 }
 0x6da   :  { %v1539_v33 = vpop.f32.mrf.mxu0  ;;  %v1552_v17 = vpop.f32.mrf.mxu1 }
 0x6db   :  { %v1540_v0 = vadd.f32 %v1539_v33, %v4038_v29 }
 0x6dd   :  { %v1553_v34 = vadd.f32 %v1552_v17, %v1540_v0 }
 0x6df   :  { %v1513_v21 = vpop.f32.mrf.mxu2  ;;  %v1526_v12 = vpop.f32.mrf.mxu3  ;;  %vm1558_vm2 = vcmp.gt.f32.partialorder %v1553_v34, 0.001 }
 0x6e0   :  { %v1514_v42 = vadd.f32 %v1513_v21, %v3183_v50 }
 0x6e2   :  { %v1527_v38 = vadd.f32 %v1526_v12, %v1514_v42  ;;  %v1541_v20 = vpop.f32.mrf.mxu0  ;;  %v1554_v43 = vpop.f32.mrf.mxu1 }
 0x6e4   :  { %v1556_v30 = vpack.c.bf16 %v1553_v34, %v1527_v38  ;;  %vm1557_vm3 = vcmp.gt.f32.partialorder %v1527_v38, 0.001 }
 0x6e5   :  { %vm1559_vm4 = vmpackc.low %vm1558_vm2, %vm1557_vm3 }
 0x6e6   :  { %v1560_v5 = vsel %vm1559_vm4, %v1556_v30, 0 }
 0x6e7   :  { %v1562_v37 = vunpack.c.l.b16 %v1560_v5  ;;  %v1563_v16 = vunpack.c.h.b16 %v1560_v5  ;;  %v1515_v15 = vpop.f32.mrf.mxu2  ;;  %v1528_v13 = vpop.f32.mrf.mxu3 }
 0x6e9   :  { %v1564_v10 = vpack.c.b16 %v1562_v37, %v1562_v37  ;;  %v1565_v7 = vpack.c.b16 %v1563_v16, %v1563_v16 }
 0x6eb   :  { %1576 = vmatmul.bf16.vlgmr.msra.gmra.mxu2 %v1564_v10  ;;  %1589 = vmatmul.bf16.vlgmr.msra.gmra.mxu3 %v1565_v7 }
 0x6ec   :  { %1602 = vmatmul.bf16.vlgmr.msrb.gmra.mxu0 %v1564_v10  ;;  %1615 = vmatmul.bf16.vlgmr.msrb.gmra.mxu1 %v1565_v7 }
 0x6ed   :  { %1698 = vmatpush.bf16.msra.mxu2 %v3052_v1  ;;  %1711 = vmatpush.bf16.msra.mxu3 %v3054_v11 }
 0x6ee   :  { %1724 = vmatpush.bf16.msrb.mxu0 %v3057_v18  ;;  %1737 = vmatpush.bf16.msrb.mxu1 %v3059_v19 }
 0x6f1   :  { %1699 = vmatpush.bf16.msra.mxu2 %v3064_v31  ;;  %1712 = vmatpush.bf16.msra.mxu3 %v3066_v39 }
 0x6f2   :  { %1725 = vmatpush.bf16.msrb.mxu0 %v3069_v44  ;;  %1738 = vmatpush.bf16.msrb.mxu1 %v3071_v47 }
 0x6f5   :  { %1700 = vmatpush.bf16.msra.mxu2 %v3076_v52  ;;  %1713 = vmatpush.bf16.msra.mxu3 %v3078_v59 }
 0x6f6   :  { %1726 = vmatpush.bf16.msrb.mxu0 %v3081_v9  ;;  %1739 = vmatpush.bf16.msrb.mxu1 %v4039_v22 }
 0x6f9   :  { %1701 = vmatpush.bf16.msra.mxu2 %v4040_v23  ;;  %1714 = vmatpush.bf16.msra.mxu3 %v4041_v26 }
 0x6fa   :  { %1727 = vmatpush.bf16.msrb.mxu0 %v4042_v27  ;;  %1740 = vmatpush.bf16.msrb.mxu1 %v4026_v58 }
 0x6fd   :  { %1702 = vmatpush.bf16.msra.mxu2 %v4063_v56  ;;  %1715 = vmatpush.bf16.msra.mxu3 %v4064_v62 }
 0x6fe   :  { %1728 = vmatpush.bf16.msrb.mxu0 %v4065_v6  ;;  %1741 = vmatpush.bf16.msrb.mxu1 %v4066_v8 }
 0x701   :  { %1703 = vmatpush.bf16.msra.mxu2 %v4067_v14  ;;  %1716 = vmatpush.bf16.msra.mxu3 %v4087_v41 }
 0x702   :  { %1729 = vmatpush.bf16.msrb.mxu0 %v4088_v45  ;;  %1742 = vmatpush.bf16.msrb.mxu1 %v4089_v46 }
 0x705   :  { %1704 = vmatpush.bf16.msra.mxu2 %v4090_v51  ;;  %1717 = vmatpush.bf16.msra.mxu3 %v4091_v55 }
 0x706   :  { %1730 = vmatpush.bf16.msrb.mxu0 %v4111_v24  ;;  %1743 = vmatpush.bf16.msrb.mxu1 %v4112_v25 }
 0x709   :  { %1705 = vmatpush.bf16.msra.mxu2 %v4113_v28  ;;  %1718 = vmatpush.bf16.msra.mxu3 %v4114_v32 }
 0x70a   :  { %1731 = vmatpush.bf16.msrb.mxu0 %v4057_v48  ;;  %1744 = vmatpush.bf16.msrb.mxu1 %v4115_v36 }
 0x769   :  { %v1603_v7 = vpop.f32.mrf.mxu0  ;;  %v1616_v10 = vpop.f32.mrf.mxu1 }
 0x76a   :  { %v1604_v13 = vadd.f32 %v1603_v7, %v3554_v54  ;;  %v4135_v7 = vld [vmem:[#allocation19_spill] sm:$0xff] }
 0x76c   :  { %v1617_v16 = vadd.f32 %v1616_v10, %v1604_v13  ;;  %v4136_v10 = vld [vmem:[#allocation20_spill] sm:$0xff]  ;;  %v4137_v13 = vld [vmem:[#allocation21_spill] sm:$0xff] }
 0x76e   :  { %v1577_v20 = vpop.f32.mrf.mxu2  ;;  %v1590_v34 = vpop.f32.mrf.mxu3  ;;  %v3632_v38 = vadd.f32 %v1617_v16, %v3235_v35  ;;  %v4138_v16 = vld [vmem:[#allocation22_spill] sm:$0xff] }
 0x76f   :  { %v1578_v21 = vadd.f32 %v1577_v20, %v3557_v40  ;;  %v4139_v20 = vld [vmem:[#allocation23_spill] sm:$0xff] }
 0x770   :  { %vm1624_vm5 = vcmp.gt.f32.partialorder %v3632_v38, 0.001 }
 0x771   :  { %v1591_v43 = vadd.f32 %v1590_v34, %v1578_v21  ;;  %v1605_v30 = vpop.f32.mrf.mxu0  ;;  %v1618_v5 = vpop.f32.mrf.mxu1  ;;  %v4140_v34 = vld [vmem:[#allocation24_spill] sm:$0xff]  ;;  %v4141_v21 = vld [vmem:[#allocation25_spill] sm:$0xff] }
 0x772   :  { %v4143_v30 = vld [vmem:[#allocation27_spill] sm:$0xff]  ;;  %v4144_v5 = vld [vmem:[#allocation28_spill] sm:$0xff] }
 0x773   :  { %v3635_v37 = vadd.f32 %v1591_v43, %v3239_v61  ;;  %v4142_v43 = vld [vmem:[#allocation26_spill] sm:$0xff] }
 0x775   :  { %v1622_v15 = vpack.c.bf16 %v3632_v38, %v3635_v37  ;;  %vm1623_vm6 = vcmp.gt.f32.partialorder %v3635_v37, 0.001 }
 0x776   :  { %vm1625_vm7 = vmpackc.low %vm1624_vm5, %vm1623_vm6  ;;  %v1579_v54 = vpop.f32.mrf.mxu2  ;;  %v1592_v33 = vpop.f32.mrf.mxu3 }
 0x777   :  { %v1626_v40 = vsel %vm1625_vm7, %v1622_v15, 0  ;;  %v4145_v15 = vld [vmem:[#allocation29_spill] sm:$0xff]  ;;  %v4146_v54 = vld [vmem:[#allocation30_spill] sm:$0xff]  ;;  %v4147_v33 = vld [vmem:[#allocation31_spill] sm:$0xff] }
 0x778   :  { %v1628_v17 = vunpack.c.l.b16 %v1626_v40  ;;  %v1629_v0 = vunpack.c.h.b16 %v1626_v40  ;;  %v4148_v40 = vld [vmem:[#allocation32_spill] sm:$0xff] }
 0x77a   :  { %v1630_v12 = vpack.c.b16 %v1628_v17, %v1628_v17  ;;  %v1631_v42 = vpack.c.b16 %v1629_v0, %v1629_v0  ;;  %v4149_v17 = vld [vmem:[#allocation33_spill] sm:$0xff]  ;;  %v4150_v0 = vld [vmem:[#allocation34_spill] sm:$0xff] }
 0x77c   :  { %1642 = vmatmul.bf16.vlgmr.msrb.gmra.mxu2 %v1630_v12  ;;  %1655 = vmatmul.bf16.vlgmr.msrb.gmra.mxu3 %v1631_v42 }
 0x77d   :  { %1668 = vmatmul.bf16.vlgmr.msra.gmra.mxu0 %v1630_v12  ;;  %1681 = vmatmul.bf16.vlgmr.msra.gmra.mxu1 %v1631_v42  ;;  %v4151_v12 = vld [vmem:[#allocation35_spill] sm:$0xff]  ;;  %v4152_v42 = vld [vmem:[#allocation36_spill] sm:$0xff] }
 0x77e   :  { %1764 = vmatpush.bf16.msrb.mxu2 %v2948_v49  ;;  %1777 = vmatpush.bf16.msrb.mxu3 %v2950_v53 }
 0x77f   :  { %1790 = vmatpush.bf16.msra.mxu0 %v2952_v57  ;;  %1803 = vmatpush.bf16.msra.mxu1 %v2954_v60 }
 0x782   :  { %1765 = vmatpush.bf16.msrb.mxu2 %v2957_v63  ;;  %1778 = vmatpush.bf16.msrb.mxu3 %v2960_v2 }
 0x783   :  { %1791 = vmatpush.bf16.msra.mxu0 %v2963_v3  ;;  %1804 = vmatpush.bf16.msra.mxu1 %v2966_v4 }
 0x786   :  { %1766 = vmatpush.bf16.msrb.mxu2 %v4135_v7  ;;  %1779 = vmatpush.bf16.msrb.mxu3 %v4136_v10 }
 0x787   :  { %1792 = vmatpush.bf16.msra.mxu0 %v4137_v13  ;;  %1805 = vmatpush.bf16.msra.mxu1 %v4138_v16 }
 0x78a   :  { %1767 = vmatpush.bf16.msrb.mxu2 %v4139_v20  ;;  %1780 = vmatpush.bf16.msrb.mxu3 %v4140_v34 }
 0x78b   :  { %1793 = vmatpush.bf16.msra.mxu0 %v4141_v21  ;;  %1806 = vmatpush.bf16.msra.mxu1 %v4142_v43  ;;  %v4153_v43 = vld [vmem:[#allocation37_spill] sm:$0xff] }
 0x78e   :  { %1768 = vmatpush.bf16.msrb.mxu2 %v4143_v30  ;;  %1781 = vmatpush.bf16.msrb.mxu3 %v4144_v5  ;;  %v4154_v30 = vld [vmem:[#allocation38_spill] sm:$0xff]  ;;  %v4155_v5 = vld [vmem:[#allocation39_spill] sm:$0xff] }
 0x78f   :  { %1794 = vmatpush.bf16.msra.mxu0 %v4145_v15  ;;  %1807 = vmatpush.bf16.msra.mxu1 %v4146_v54  ;;  %v4156_v15 = vld [vmem:[#allocation40_spill] sm:$0xff]  ;;  %v4157_v54 = vld [vmem:[#allocation41_spill] sm:$0xff] }
 0x792   :  { %1769 = vmatpush.bf16.msrb.mxu2 %v4147_v33  ;;  %1782 = vmatpush.bf16.msrb.mxu3 %v4148_v40  ;;  %v4158_v33 = vld [vmem:[#allocation42_spill] sm:$0xff] }
 0x793   :  { %1795 = vmatpush.bf16.msra.mxu0 %v4149_v17  ;;  %1808 = vmatpush.bf16.msra.mxu1 %v4150_v0 }
 0x796   :  { %1770 = vmatpush.bf16.msrb.mxu2 %v4151_v12  ;;  %1783 = vmatpush.bf16.msrb.mxu3 %v4152_v42 }
 0x797   :  { %1796 = vmatpush.bf16.msra.mxu0 %v4153_v43  ;;  %1809 = vmatpush.bf16.msra.mxu1 %v4154_v30 }
 0x79a   :  { %1771 = vmatpush.bf16.msrb.mxu2 %v4155_v5  ;;  %1784 = vmatpush.bf16.msrb.mxu3 %v4156_v15 }
 0x79b   :  { %1797 = vmatpush.bf16.msra.mxu0 %v4157_v54  ;;  %1810 = vmatpush.bf16.msra.mxu1 %v4158_v33 }
 0x7fa   :  { %v1669_v40 = vpop.f32.mrf.mxu0  ;;  %v1682_v17 = vpop.f32.mrf.mxu1 }
 0x7fb   :  { %v1670_v0 = vadd.f32 %v1669_v40, %v4038_v29 }
 0x7fd   :  { %v1683_v34 = vadd.f32 %v1682_v17, %v1670_v0 }
 0x7ff   :  { %v1643_v21 = vpop.f32.mrf.mxu2  ;;  %v1656_v12 = vpop.f32.mrf.mxu3  ;;  %vm1688_vm8 = vcmp.gt.f32.partialorder %v1683_v34, 0.001 }
 0x800   :  { %v1644_v42 = vadd.f32 %v1643_v21, %v3183_v50 }
 0x802   :  { %v1657_v43 = vadd.f32 %v1656_v12, %v1644_v42  ;;  %v1671_v20 = vpop.f32.mrf.mxu0  ;;  %v1684_v30 = vpop.f32.mrf.mxu1 }
 0x804   :  { %v1686_v5 = vpack.c.bf16 %v1683_v34, %v1657_v43  ;;  %vm1687_vm9 = vcmp.gt.f32.partialorder %v1657_v43, 0.001 }
 0x805   :  { %vm1689_vm10 = vmpackc.low %vm1688_vm8, %vm1687_vm9 }
 0x806   :  { %v1690_v15 = vsel %vm1689_vm10, %v1686_v5, 0 }
 0x807   :  { %v1692_v54 = vunpack.c.l.b16 %v1690_v15  ;;  %v1693_v16 = vunpack.c.h.b16 %v1690_v15  ;;  %v1645_v33 = vpop.f32.mrf.mxu2  ;;  %v1658_v13 = vpop.f32.mrf.mxu3 }
 0x809   :  { %v1694_v10 = vpack.c.b16 %v1692_v54, %v1692_v54  ;;  %v1695_v7 = vpack.c.b16 %v1693_v16, %v1693_v16 }
 0x80b   :  { %1706 = vmatmul.bf16.vlgmr.msra.gmra.mxu2 %v1694_v10  ;;  %1719 = vmatmul.bf16.vlgmr.msra.gmra.mxu3 %v1695_v7 }
 0x80c   :  { %1732 = vmatmul.bf16.vlgmr.msrb.gmra.mxu0 %v1694_v10  ;;  %1745 = vmatmul.bf16.vlgmr.msrb.gmra.mxu1 %v1695_v7 }
 0x80d   :  { %1828 = vmatpush.bf16.msra.mxu2 %v3052_v1  ;;  %1841 = vmatpush.bf16.msra.mxu3 %v3054_v11 }
 0x80e   :  { %1854 = vmatpush.bf16.msrb.mxu0 %v3057_v18  ;;  %1867 = vmatpush.bf16.msrb.mxu1 %v3059_v19 }
 0x811   :  { %1829 = vmatpush.bf16.msra.mxu2 %v3064_v31  ;;  %1842 = vmatpush.bf16.msra.mxu3 %v3066_v39 }
 0x812   :  { %1855 = vmatpush.bf16.msrb.mxu0 %v3069_v44  ;;  %1868 = vmatpush.bf16.msrb.mxu1 %v3071_v47 }
 0x815   :  { %1830 = vmatpush.bf16.msra.mxu2 %v3076_v52  ;;  %1843 = vmatpush.bf16.msra.mxu3 %v3078_v59 }
 0x816   :  { %1856 = vmatpush.bf16.msrb.mxu0 %v3081_v9  ;;  %1869 = vmatpush.bf16.msrb.mxu1 %v4039_v22 }
 0x819   :  { %1831 = vmatpush.bf16.msra.mxu2 %v4040_v23  ;;  %1844 = vmatpush.bf16.msra.mxu3 %v4041_v26 }
 0x81a   :  { %1857 = vmatpush.bf16.msrb.mxu0 %v4042_v27  ;;  %1870 = vmatpush.bf16.msrb.mxu1 %v4026_v58 }
 0x81d   :  { %1832 = vmatpush.bf16.msra.mxu2 %v4063_v56  ;;  %1845 = vmatpush.bf16.msra.mxu3 %v4064_v62 }
 0x81e   :  { %1858 = vmatpush.bf16.msrb.mxu0 %v4065_v6  ;;  %1871 = vmatpush.bf16.msrb.mxu1 %v4066_v8 }
 0x821   :  { %1833 = vmatpush.bf16.msra.mxu2 %v4067_v14  ;;  %1846 = vmatpush.bf16.msra.mxu3 %v4087_v41 }
 0x822   :  { %1859 = vmatpush.bf16.msrb.mxu0 %v4088_v45  ;;  %1872 = vmatpush.bf16.msrb.mxu1 %v4089_v46 }
 0x825   :  { %1834 = vmatpush.bf16.msra.mxu2 %v4090_v51  ;;  %1847 = vmatpush.bf16.msra.mxu3 %v4091_v55 }
 0x826   :  { %1860 = vmatpush.bf16.msrb.mxu0 %v4111_v24  ;;  %1873 = vmatpush.bf16.msrb.mxu1 %v4112_v25 }
 0x829   :  { %1835 = vmatpush.bf16.msra.mxu2 %v4113_v28  ;;  %1848 = vmatpush.bf16.msra.mxu3 %v4114_v32 }
 0x82a   :  { %1861 = vmatpush.bf16.msrb.mxu0 %v4057_v48  ;;  %1874 = vmatpush.bf16.msrb.mxu1 %v4115_v36 }
 0x889   :  { %v1733_v7 = vpop.f32.mrf.mxu0  ;;  %v1746_v10 = vpop.f32.mrf.mxu1 }
 0x88a   :  { %v1734_v13 = vadd.f32 %v1733_v7, %v3632_v38  ;;  %v4159_v7 = vld [vmem:[#allocation19_spill] sm:$0xff] }
 0x88c   :  { %v1747_v16 = vadd.f32 %v1746_v10, %v1734_v13  ;;  %v4160_v10 = vld [vmem:[#allocation20_spill] sm:$0xff]  ;;  %v4161_v13 = vld [vmem:[#allocation21_spill] sm:$0xff] }
 0x88e   :  { %v1707_v20 = vpop.f32.mrf.mxu2  ;;  %v1720_v34 = vpop.f32.mrf.mxu3  ;;  %v3710_v43 = vadd.f32 %v1747_v16, %v3235_v35  ;;  %v4162_v16 = vld [vmem:[#allocation22_spill] sm:$0xff] }
 0x88f   :  { %v1708_v21 = vadd.f32 %v1707_v20, %v3635_v37  ;;  %v4163_v20 = vld [vmem:[#allocation23_spill] sm:$0xff] }
 0x890   :  { %vm1754_vm11 = vcmp.gt.f32.partialorder %v3710_v43, 0.001 }
 0x891   :  { %v1721_v30 = vadd.f32 %v1720_v34, %v1708_v21  ;;  %v1735_v5 = vpop.f32.mrf.mxu0  ;;  %v1748_v15 = vpop.f32.mrf.mxu1  ;;  %v4164_v34 = vld [vmem:[#allocation24_spill] sm:$0xff]  ;;  %v4165_v21 = vld [vmem:[#allocation25_spill] sm:$0xff] }
 0x892   :  { %v4167_v5 = vld [vmem:[#allocation27_spill] sm:$0xff]  ;;  %v4168_v15 = vld [vmem:[#allocation28_spill] sm:$0xff] }
 0x893   :  { %v3713_v54 = vadd.f32 %v1721_v30, %v3239_v61  ;;  %v4166_v30 = vld [vmem:[#allocation26_spill] sm:$0xff] }
 0x895   :  { %v1752_v33 = vpack.c.bf16 %v3710_v43, %v3713_v54  ;;  %vm1753_vm12 = vcmp.gt.f32.partialorder %v3713_v54, 0.001 }
 0x896   :  { %vm1755_vm13 = vmpackc.low %vm1754_vm11, %vm1753_vm12  ;;  %v1709_v38 = vpop.f32.mrf.mxu2  ;;  %v1722_v40 = vpop.f32.mrf.mxu3 }
 0x897   :  { %v1756_v37 = vsel %vm1755_vm13, %v1752_v33, 0  ;;  %v4169_v33 = vld [vmem:[#allocation29_spill] sm:$0xff]  ;;  %v4170_v38 = vld [vmem:[#allocation30_spill] sm:$0xff]  ;;  %v4171_v40 = vld [vmem:[#allocation31_spill] sm:$0xff] }
 0x898   :  { %v1758_v17 = vunpack.c.l.b16 %v1756_v37  ;;  %v1759_v0 = vunpack.c.h.b16 %v1756_v37  ;;  %v4172_v37 = vld [vmem:[#allocation32_spill] sm:$0xff] }
 0x89a   :  { %v1760_v12 = vpack.c.b16 %v1758_v17, %v1758_v17  ;;  %v1761_v42 = vpack.c.b16 %v1759_v0, %v1759_v0  ;;  %v4173_v17 = vld [vmem:[#allocation33_spill] sm:$0xff]  ;;  %v4174_v0 = vld [vmem:[#allocation34_spill] sm:$0xff] }
 0x89c   :  { %1772 = vmatmul.bf16.vlgmr.msrb.gmra.mxu2 %v1760_v12  ;;  %1785 = vmatmul.bf16.vlgmr.msrb.gmra.mxu3 %v1761_v42 }
 0x89d   :  { %1798 = vmatmul.bf16.vlgmr.msra.gmra.mxu0 %v1760_v12  ;;  %1811 = vmatmul.bf16.vlgmr.msra.gmra.mxu1 %v1761_v42  ;;  %v4175_v12 = vld [vmem:[#allocation35_spill] sm:$0xff]  ;;  %v4176_v42 = vld [vmem:[#allocation36_spill] sm:$0xff] }
 0x89e   :  { %1894 = vmatpush.bf16.msrb.mxu2 %v2948_v49  ;;  %1907 = vmatpush.bf16.msrb.mxu3 %v2950_v53 }
 0x89f   :  { %1920 = vmatpush.bf16.msra.mxu0 %v2952_v57  ;;  %1933 = vmatpush.bf16.msra.mxu1 %v2954_v60 }
 0x8a2   :  { %1895 = vmatpush.bf16.msrb.mxu2 %v2957_v63  ;;  %1908 = vmatpush.bf16.msrb.mxu3 %v2960_v2 }
 0x8a3   :  { %1921 = vmatpush.bf16.msra.mxu0 %v2963_v3  ;;  %1934 = vmatpush.bf16.msra.mxu1 %v2966_v4 }
 0x8a6   :  { %1896 = vmatpush.bf16.msrb.mxu2 %v4159_v7  ;;  %1909 = vmatpush.bf16.msrb.mxu3 %v4160_v10 }
 0x8a7   :  { %1922 = vmatpush.bf16.msra.mxu0 %v4161_v13  ;;  %1935 = vmatpush.bf16.msra.mxu1 %v4162_v16 }
 0x8aa   :  { %1897 = vmatpush.bf16.msrb.mxu2 %v4163_v20  ;;  %1910 = vmatpush.bf16.msrb.mxu3 %v4164_v34 }
 0x8ab   :  { %1923 = vmatpush.bf16.msra.mxu0 %v4165_v21  ;;  %1936 = vmatpush.bf16.msra.mxu1 %v4166_v30  ;;  %v4177_v30 = vld [vmem:[#allocation37_spill] sm:$0xff] }
 0x8ae   :  { %1898 = vmatpush.bf16.msrb.mxu2 %v4167_v5  ;;  %1911 = vmatpush.bf16.msrb.mxu3 %v4168_v15  ;;  %v4178_v5 = vld [vmem:[#allocation38_spill] sm:$0xff]  ;;  %v4179_v15 = vld [vmem:[#allocation39_spill] sm:$0xff] }
 0x8af   :  { %1924 = vmatpush.bf16.msra.mxu0 %v4169_v33  ;;  %1937 = vmatpush.bf16.msra.mxu1 %v4170_v38  ;;  %v4180_v33 = vld [vmem:[#allocation40_spill] sm:$0xff]  ;;  %v4181_v38 = vld [vmem:[#allocation41_spill] sm:$0xff] }
 0x8b2   :  { %1899 = vmatpush.bf16.msrb.mxu2 %v4171_v40  ;;  %1912 = vmatpush.bf16.msrb.mxu3 %v4172_v37  ;;  %v4182_v40 = vld [vmem:[#allocation42_spill] sm:$0xff] }
 0x8b3   :  { %1925 = vmatpush.bf16.msra.mxu0 %v4173_v17  ;;  %1938 = vmatpush.bf16.msra.mxu1 %v4174_v0 }
 0x8b6   :  { %1900 = vmatpush.bf16.msrb.mxu2 %v4175_v12  ;;  %1913 = vmatpush.bf16.msrb.mxu3 %v4176_v42 }
 0x8b7   :  { %1926 = vmatpush.bf16.msra.mxu0 %v4177_v30  ;;  %1939 = vmatpush.bf16.msra.mxu1 %v4178_v5 }
 0x8ba   :  { %1901 = vmatpush.bf16.msrb.mxu2 %v4179_v15  ;;  %1914 = vmatpush.bf16.msrb.mxu3 %v4180_v33 }
 0x8bb   :  { %1927 = vmatpush.bf16.msra.mxu0 %v4181_v38  ;;  %1940 = vmatpush.bf16.msra.mxu1 %v4182_v40 }
 0x91a   :  { %v1799_v37 = vpop.f32.mrf.mxu0  ;;  %v1812_v17 = vpop.f32.mrf.mxu1 }
 0x91b   :  { %v1800_v0 = vadd.f32 %v1799_v37, %v4038_v29 }
 0x91d   :  { %v1813_v34 = vadd.f32 %v1812_v17, %v1800_v0 }
 0x91f   :  { %v1773_v21 = vpop.f32.mrf.mxu2  ;;  %v1786_v12 = vpop.f32.mrf.mxu3  ;;  %vm1818_vm14 = vcmp.gt.f32.partialorder %v1813_v34, 0.001 }
 0x920   :  { %v1774_v42 = vadd.f32 %v1773_v21, %v3183_v50 }
 0x922   :  { %v1787_v30 = vadd.f32 %v1786_v12, %v1774_v42  ;;  %v1801_v20 = vpop.f32.mrf.mxu0  ;;  %v1814_v5 = vpop.f32.mrf.mxu1 }
 0x924   :  { %v1816_v15 = vpack.c.bf16 %v1813_v34, %v1787_v30  ;;  %vm1817_vm15 = vcmp.gt.f32.partialorder %v1787_v30, 0.001 }
 0x925   :  { %vm1819_vm0 = vmpackc.low %vm1818_vm14, %vm1817_vm15 }
 0x926   :  { %v1820_v33 = vsel %vm1819_vm0, %v1816_v15, 0 }
 0x927   :  { %v1822_v38 = vunpack.c.l.b16 %v1820_v33  ;;  %v1823_v16 = vunpack.c.h.b16 %v1820_v33  ;;  %v1775_v40 = vpop.f32.mrf.mxu2  ;;  %v1788_v13 = vpop.f32.mrf.mxu3 }
 0x929   :  { %v1824_v10 = vpack.c.b16 %v1822_v38, %v1822_v38  ;;  %v1825_v7 = vpack.c.b16 %v1823_v16, %v1823_v16 }
 0x92b   :  { %1836 = vmatmul.bf16.vlgmr.msra.gmra.mxu2 %v1824_v10  ;;  %1849 = vmatmul.bf16.vlgmr.msra.gmra.mxu3 %v1825_v7 }
 0x92c   :  { %1862 = vmatmul.bf16.vlgmr.msrb.gmra.mxu0 %v1824_v10  ;;  %1875 = vmatmul.bf16.vlgmr.msrb.gmra.mxu1 %v1825_v7 }
 0x92d   :  { %1958 = vmatpush.bf16.msra.mxu2 %v3052_v1  ;;  %1971 = vmatpush.bf16.msra.mxu3 %v3054_v11 }
 0x92e   :  { %1984 = vmatpush.bf16.msrb.mxu0 %v3057_v18  ;;  %1997 = vmatpush.bf16.msrb.mxu1 %v3059_v19 }
 0x931   :  { %1959 = vmatpush.bf16.msra.mxu2 %v3064_v31  ;;  %1972 = vmatpush.bf16.msra.mxu3 %v3066_v39 }
 0x932   :  { %1985 = vmatpush.bf16.msrb.mxu0 %v3069_v44  ;;  %1998 = vmatpush.bf16.msrb.mxu1 %v3071_v47 }
 0x935   :  { %1960 = vmatpush.bf16.msra.mxu2 %v3076_v52  ;;  %1973 = vmatpush.bf16.msra.mxu3 %v3078_v59 }
 0x936   :  { %1986 = vmatpush.bf16.msrb.mxu0 %v3081_v9  ;;  %1999 = vmatpush.bf16.msrb.mxu1 %v4039_v22 }
 0x939   :  { %1961 = vmatpush.bf16.msra.mxu2 %v4040_v23  ;;  %1974 = vmatpush.bf16.msra.mxu3 %v4041_v26 }
 0x93a   :  { %1987 = vmatpush.bf16.msrb.mxu0 %v4042_v27  ;;  %2000 = vmatpush.bf16.msrb.mxu1 %v4026_v58 }
 0x93d   :  { %1962 = vmatpush.bf16.msra.mxu2 %v4063_v56  ;;  %1975 = vmatpush.bf16.msra.mxu3 %v4064_v62 }
 0x93e   :  { %1988 = vmatpush.bf16.msrb.mxu0 %v4065_v6  ;;  %2001 = vmatpush.bf16.msrb.mxu1 %v4066_v8 }
 0x941   :  { %1963 = vmatpush.bf16.msra.mxu2 %v4067_v14  ;;  %1976 = vmatpush.bf16.msra.mxu3 %v4087_v41 }
 0x942   :  { %1989 = vmatpush.bf16.msrb.mxu0 %v4088_v45  ;;  %2002 = vmatpush.bf16.msrb.mxu1 %v4089_v46 }
 0x945   :  { %1964 = vmatpush.bf16.msra.mxu2 %v4090_v51  ;;  %1977 = vmatpush.bf16.msra.mxu3 %v4091_v55 }
 0x946   :  { %1990 = vmatpush.bf16.msrb.mxu0 %v4111_v24  ;;  %2003 = vmatpush.bf16.msrb.mxu1 %v4112_v25 }
 0x949   :  { %1965 = vmatpush.bf16.msra.mxu2 %v4113_v28  ;;  %1978 = vmatpush.bf16.msra.mxu3 %v4114_v32 }
 0x94a   :  { %1991 = vmatpush.bf16.msrb.mxu0 %v4057_v48  ;;  %2004 = vmatpush.bf16.msrb.mxu1 %v4115_v36 }
 0x9a9   :  { %v1863_v7 = vpop.f32.mrf.mxu0  ;;  %v1876_v10 = vpop.f32.mrf.mxu1 }
 0x9aa   :  { %v1864_v13 = vadd.f32 %v1863_v7, %v3710_v43  ;;  %v4183_v7 = vld [vmem:[#allocation19_spill] sm:$0xff] }
 0x9ac   :  { %v1877_v16 = vadd.f32 %v1876_v10, %v1864_v13  ;;  %v4184_v10 = vld [vmem:[#allocation20_spill] sm:$0xff]  ;;  %v4185_v13 = vld [vmem:[#allocation21_spill] sm:$0xff] }
 0x9ae   :  { %v1837_v20 = vpop.f32.mrf.mxu2  ;;  %v1850_v34 = vpop.f32.mrf.mxu3  ;;  %v3788_v30 = vadd.f32 %v1877_v16, %v3235_v35  ;;  %v4194_v16 = vld [vmem:[#allocation30_spill] sm:$0xff] }
 0x9af   :  { %v1838_v21 = vadd.f32 %v1837_v20, %v3713_v54  ;;  %v4195_v20 = vld [vmem:[#allocation31_spill] sm:$0xff] }
 0x9b0   :  { %vm1884_vm1 = vcmp.gt.f32.partialorder %v3788_v30, 0.001 }
 0x9b1   :  { %v1851_v5 = vadd.f32 %v1850_v34, %v1838_v21  ;;  %v1865_v15 = vpop.f32.mrf.mxu0  ;;  %v1878_v33 = vpop.f32.mrf.mxu1  ;;  %v4196_v34 = vld [vmem:[#allocation32_spill] sm:$0xff]  ;;  %v4197_v21 = vld [vmem:[#allocation33_spill] sm:$0xff] }
 0x9b2   :  { %v4199_v15 = vld [vmem:[#allocation35_spill] sm:$0xff]  ;;  %v4200_v33 = vld [vmem:[#allocation36_spill] sm:$0xff] }
 0x9b3   :  { %v3791_v38 = vadd.f32 %v1851_v5, %v3239_v61  ;;  %v4198_v5 = vld [vmem:[#allocation34_spill] sm:$0xff] }
 0x9b5   :  { %v1882_v40 = vpack.c.bf16 %v3788_v30, %v3791_v38  ;;  %vm1883_vm2 = vcmp.gt.f32.partialorder %v3791_v38, 0.001 }
 0x9b6   :  { %vm1885_vm3 = vmpackc.low %vm1884_vm1, %vm1883_vm2  ;;  %v1839_v43 = vpop.f32.mrf.mxu2  ;;  %v1852_v37 = vpop.f32.mrf.mxu3 }
 0x9b7   :  { %v1886_v54 = vsel %vm1885_vm3, %v1882_v40, 0  ;;  %v4201_v40 = vld [vmem:[#allocation37_spill] sm:$0xff]  ;;  %v4202_v43 = vld [vmem:[#allocation38_spill] sm:$0xff]  ;;  %v4203_v37 = vld [vmem:[#allocation39_spill] sm:$0xff] }
 0x9b8   :  { %v1888_v17 = vunpack.c.l.b16 %v1886_v54  ;;  %v1889_v0 = vunpack.c.h.b16 %v1886_v54  ;;  %v4204_v54 = vld [vmem:[#allocation40_spill] sm:$0xff] }
 0x9ba   :  { %v1890_v12 = vpack.c.b16 %v1888_v17, %v1888_v17  ;;  %v1891_v42 = vpack.c.b16 %v1889_v0, %v1889_v0  ;;  %v4205_v17 = vld [vmem:[#allocation41_spill] sm:$0xff]  ;;  %v4206_v0 = vld [vmem:[#allocation42_spill] sm:$0xff] }
 0x9bc   :  { %1902 = vmatmul.bf16.vlgmr.msrb.gmra.mxu2 %v1890_v12  ;;  %1915 = vmatmul.bf16.vlgmr.msrb.gmra.mxu3 %v1891_v42 }
 0x9bd   :  { %1928 = vmatmul.bf16.vlgmr.msra.gmra.mxu0 %v1890_v12  ;;  %1941 = vmatmul.bf16.vlgmr.msra.gmra.mxu1 %v1891_v42 }
 0x9be   :  { %2024 = vmatpush.bf16.msrb.mxu2 %v2948_v49  ;;  %2037 = vmatpush.bf16.msrb.mxu3 %v2950_v53  ;;  %v4186_v49 = vld [vmem:[#allocation22_spill] sm:$0xff]  ;;  %v4187_v53 = vld [vmem:[#allocation23_spill] sm:$0xff] }
 0x9bf   :  { %2050 = vmatpush.bf16.msra.mxu0 %v2952_v57  ;;  %2063 = vmatpush.bf16.msra.mxu1 %v2954_v60  ;;  %v4188_v57 = vld [vmem:[#allocation24_spill] sm:$0xff]  ;;  %v4189_v60 = vld [vmem:[#allocation25_spill] sm:$0xff] }
 0x9c2   :  { %2025 = vmatpush.bf16.msrb.mxu2 %v2957_v63  ;;  %2038 = vmatpush.bf16.msrb.mxu3 %v2960_v2  ;;  %v4190_v63 = vld [vmem:[#allocation26_spill] sm:$0xff]  ;;  %v4191_v2 = vld [vmem:[#allocation27_spill] sm:$0xff] }
 0x9c3   :  { %2051 = vmatpush.bf16.msra.mxu0 %v2963_v3  ;;  %2064 = vmatpush.bf16.msra.mxu1 %v2966_v4  ;;  %v4192_v3 = vld [vmem:[#allocation28_spill] sm:$0xff]  ;;  %v4193_v4 = vld [vmem:[#allocation29_spill] sm:$0xff] }
 0x9c6   :  { %2026 = vmatpush.bf16.msrb.mxu2 %v4183_v7  ;;  %2039 = vmatpush.bf16.msrb.mxu3 %v4184_v10 }
 0x9c7   :  { %2052 = vmatpush.bf16.msra.mxu0 %v4185_v13  ;;  %2065 = vmatpush.bf16.msra.mxu1 %v4186_v49 }
 0x9ca   :  { %2027 = vmatpush.bf16.msrb.mxu2 %v4187_v53  ;;  %2040 = vmatpush.bf16.msrb.mxu3 %v4188_v57 }
 0x9cb   :  { %2053 = vmatpush.bf16.msra.mxu0 %v4189_v60  ;;  %2066 = vmatpush.bf16.msra.mxu1 %v4190_v63 }
 0x9ce   :  { %2028 = vmatpush.bf16.msrb.mxu2 %v4191_v2  ;;  %2041 = vmatpush.bf16.msrb.mxu3 %v4192_v3 }
 0x9cf   :  { %2054 = vmatpush.bf16.msra.mxu0 %v4193_v4  ;;  %2067 = vmatpush.bf16.msra.mxu1 %v4194_v16 }
 0x9d2   :  { %2029 = vmatpush.bf16.msrb.mxu2 %v4195_v20  ;;  %2042 = vmatpush.bf16.msrb.mxu3 %v4196_v34 }
 0x9d3   :  { %2055 = vmatpush.bf16.msra.mxu0 %v4197_v21  ;;  %2068 = vmatpush.bf16.msra.mxu1 %v4198_v5 }
 0x9d6   :  { %2030 = vmatpush.bf16.msrb.mxu2 %v4199_v15  ;;  %2043 = vmatpush.bf16.msrb.mxu3 %v4200_v33 }
 0x9d7   :  { %2056 = vmatpush.bf16.msra.mxu0 %v4201_v40  ;;  %2069 = vmatpush.bf16.msra.mxu1 %v4202_v43 }
 0x9da   :  { %2031 = vmatpush.bf16.msrb.mxu2 %v4203_v37  ;;  %2044 = vmatpush.bf16.msrb.mxu3 %v4204_v54 }
 0x9db   :  { %2057 = vmatpush.bf16.msra.mxu0 %v4205_v17  ;;  %2070 = vmatpush.bf16.msra.mxu1 %v4206_v0 }
 0xa3a   :  { %v1929_v12 = vpop.f32.mrf.mxu0  ;;  %v1942_v42 = vpop.f32.mrf.mxu1 }
 0xa3b   :  { %v1930_v7 = vadd.f32 %v1929_v12, %v4038_v29 }
 0xa3d   :  { %v1943_v49 = vadd.f32 %v1942_v42, %v1930_v7 }
 0xa3f   :  { %v1903_v10 = vpop.f32.mrf.mxu2  ;;  %v1916_v13 = vpop.f32.mrf.mxu3  ;;  %vm1948_vm4 = vcmp.gt.f32.partialorder %v1943_v49, 0.001 }
 0xa40   :  { %v1904_v53 = vadd.f32 %v1903_v10, %v3183_v50 }
 0xa42   :  { %v1917_v57 = vadd.f32 %v1916_v13, %v1904_v53  ;;  %v1931_v60 = vpop.f32.mrf.mxu0  ;;  %v1944_v63 = vpop.f32.mrf.mxu1 }
 0xa44   :  { %v1946_v2 = vpack.c.bf16 %v1943_v49, %v1917_v57  ;;  %vm1947_vm5 = vcmp.gt.f32.partialorder %v1917_v57, 0.001 }
 0xa45   :  { %vm1949_vm6 = vmpackc.low %vm1948_vm4, %vm1947_vm5 }
 0xa46   :  { %v1950_v3 = vsel %vm1949_vm6, %v1946_v2, 0 }
 0xa47   :  { %v1952_v4 = vunpack.c.l.b16 %v1950_v3  ;;  %v1953_v16 = vunpack.c.h.b16 %v1950_v3  ;;  %v1905_v20 = vpop.f32.mrf.mxu2  ;;  %v1918_v34 = vpop.f32.mrf.mxu3 }
 0xa49   :  { %v1954_v21 = vpack.c.b16 %v1952_v4, %v1952_v4  ;;  %v1955_v5 = vpack.c.b16 %v1953_v16, %v1953_v16 }
 0xa4b   :  { %1966 = vmatmul.bf16.vlgmr.msra.gmra.mxu2 %v1954_v21  ;;  %1979 = vmatmul.bf16.vlgmr.msra.gmra.mxu3 %v1955_v5 }
 0xa4c   :  { %1992 = vmatmul.bf16.vlgmr.msrb.gmra.mxu0 %v1954_v21  ;;  %2005 = vmatmul.bf16.vlgmr.msrb.gmra.mxu1 %v1955_v5 }
 0xa4d   :  { %2088 = vmatpush.bf16.msra.mxu2 %v3052_v1  ;;  %2101 = vmatpush.bf16.msra.mxu3 %v3054_v11 }
 0xa4e   :  { %2114 = vmatpush.bf16.msrb.mxu0 %v3057_v18  ;;  %2127 = vmatpush.bf16.msrb.mxu1 %v3059_v19 }
 0xa51   :  { %2089 = vmatpush.bf16.msra.mxu2 %v3064_v31  ;;  %2102 = vmatpush.bf16.msra.mxu3 %v3066_v39 }
 0xa52   :  { %2115 = vmatpush.bf16.msrb.mxu0 %v3069_v44  ;;  %2128 = vmatpush.bf16.msrb.mxu1 %v3071_v47 }
 0xa55   :  { %2090 = vmatpush.bf16.msra.mxu2 %v3076_v52  ;;  %2103 = vmatpush.bf16.msra.mxu3 %v3078_v59 }
 0xa56   :  { %2116 = vmatpush.bf16.msrb.mxu0 %v3081_v9  ;;  %2129 = vmatpush.bf16.msrb.mxu1 %v4039_v22 }
 0xa59   :  { %2091 = vmatpush.bf16.msra.mxu2 %v4040_v23  ;;  %2104 = vmatpush.bf16.msra.mxu3 %v4041_v26 }
 0xa5a   :  { %2117 = vmatpush.bf16.msrb.mxu0 %v4042_v27  ;;  %2130 = vmatpush.bf16.msrb.mxu1 %v4026_v58 }
 0xa5d   :  { %2092 = vmatpush.bf16.msra.mxu2 %v4063_v56  ;;  %2105 = vmatpush.bf16.msra.mxu3 %v4064_v62 }
 0xa5e   :  { %2118 = vmatpush.bf16.msrb.mxu0 %v4065_v6  ;;  %2131 = vmatpush.bf16.msrb.mxu1 %v4066_v8 }
 0xa61   :  { %2093 = vmatpush.bf16.msra.mxu2 %v4067_v14  ;;  %2106 = vmatpush.bf16.msra.mxu3 %v4087_v41 }
 0xa62   :  { %2119 = vmatpush.bf16.msrb.mxu0 %v4088_v45  ;;  %2132 = vmatpush.bf16.msrb.mxu1 %v4089_v46 }
 0xa65   :  { %2094 = vmatpush.bf16.msra.mxu2 %v4090_v51  ;;  %2107 = vmatpush.bf16.msra.mxu3 %v4091_v55 }
 0xa66   :  { %2120 = vmatpush.bf16.msrb.mxu0 %v4111_v24  ;;  %2133 = vmatpush.bf16.msrb.mxu1 %v4112_v25 }
 0xa69   :  { %2095 = vmatpush.bf16.msra.mxu2 %v4113_v28  ;;  %2108 = vmatpush.bf16.msra.mxu3 %v4114_v32 }
 0xa6a   :  { %2121 = vmatpush.bf16.msrb.mxu0 %v4057_v48  ;;  %2134 = vmatpush.bf16.msrb.mxu1 %v4115_v36 }
 0xac9   :  { %v1993_v1 = vpop.f32.mrf.mxu0  ;;  %v2006_v11 = vpop.f32.mrf.mxu1 }
 0xaca   :  { %v1994_v18 = vadd.f32 %v1993_v1, %v3788_v30 }
 0xacc   :  { %v2007_v19 = vadd.f32 %v2006_v11, %v1994_v18 }
 0xace   :  { %v1967_v31 = vpop.f32.mrf.mxu2  ;;  %v1980_v39 = vpop.f32.mrf.mxu3  ;;  %v2011_v47 = vadd.f32 %v2007_v19, %v3235_v35 }
 0xacf   :  { %v1968_v44 = vadd.f32 %v1967_v31, %v3791_v38 }
 0xad0   :  { %vm2014_vm7 = vcmp.gt.f32.partialorder %v2011_v47, 0.001 }
 0xad1   :  { %v1981_v52 = vadd.f32 %v1980_v39, %v1968_v44  ;;  %v1995_v59 = vpop.f32.mrf.mxu0  ;;  %v2008_v9 = vpop.f32.mrf.mxu1 }
 0xad3   :  { %v2010_v58 = vadd.f32 %v1981_v52, %v3239_v61 }
 0xad5   :  { %v2012_v22 = vpack.c.bf16 %v2011_v47, %v2010_v58  ;;  %vm2013_vm8 = vcmp.gt.f32.partialorder %v2010_v58, 0.001 }
 0xad6   :  { %vm2015_vm9 = vmpackc.low %vm2014_vm7, %vm2013_vm8  ;;  %v1969_v23 = vpop.f32.mrf.mxu2  ;;  %v1982_v26 = vpop.f32.mrf.mxu3 }
 0xad7   :  { %v2016_v27 = vsel %vm2015_vm9, %v2012_v22, 0 }
 0xad8   :  { %v2018_v48 = vunpack.c.l.b16 %v2016_v27  ;;  %v2019_v56 = vunpack.c.h.b16 %v2016_v27 }
 0xada   :  { %v2020_v62 = vpack.c.b16 %v2018_v48, %v2018_v48  ;;  %v2021_v6 = vpack.c.b16 %v2019_v56, %v2019_v56 }
 0xadc   :  { %2032 = vmatmul.bf16.vlgmr.msrb.gmra.mxu2 %v2020_v62  ;;  %2045 = vmatmul.bf16.vlgmr.msrb.gmra.mxu3 %v2021_v6 }
 0xadd   :  { %2058 = vmatmul.bf16.vlgmr.msra.gmra.mxu0 %v2020_v62  ;;  %2071 = vmatmul.bf16.vlgmr.msra.gmra.mxu1 %v2021_v6 }
 0xb5a   :  { %v2059_v8 = vpop.f32.mrf.mxu0  ;;  %v2072_v14 = vpop.f32.mrf.mxu1 }
 0xb5b   :  { %v2060_v41 = vadd.f32 %v2059_v8, %v4038_v29 }
 0xb5d   :  { %v2073_v51 = vadd.f32 %v2072_v14, %v2060_v41 }
 0xb5f   :  { %v2033_v45 = vpop.f32.mrf.mxu2  ;;  %v2046_v46 = vpop.f32.mrf.mxu3  ;;  %vm2078_vm10 = vcmp.gt.f32.partialorder %v2073_v51, 0.001 }
 0xb60   :  { %v2034_v55 = vadd.f32 %v2033_v45, %v3183_v50 }
 0xb62   :  { %v2047_v24 = vadd.f32 %v2046_v46, %v2034_v55  ;;  %v2061_v25 = vpop.f32.mrf.mxu0  ;;  %v2074_v28 = vpop.f32.mrf.mxu1 }
 0xb64   :  { %v2076_v32 = vpack.c.bf16 %v2073_v51, %v2047_v24  ;;  %vm2077_vm11 = vcmp.gt.f32.partialorder %v2047_v24, 0.001 }
 0xb65   :  { %vm2079_vm12 = vmpackc.low %vm2078_vm10, %vm2077_vm11 }
 0xb66   :  { %v2080_v36 = vsel %vm2079_vm12, %v2076_v32, 0 }
 0xb67   :  { %v2082_v30 = vunpack.c.l.b16 %v2080_v36  ;;  %v2083_v38 = vunpack.c.h.b16 %v2080_v36  ;;  %v2035_v15 = vpop.f32.mrf.mxu2  ;;  %v2048_v33 = vpop.f32.mrf.mxu3 }
 0xb69   :  { %v2084_v40 = vpack.c.b16 %v2082_v30, %v2082_v30  ;;  %v2085_v43 = vpack.c.b16 %v2083_v38, %v2083_v38 }
 0xb6b   :  { %2096 = vmatmul.bf16.vlgmr.msra.gmra.mxu2 %v2084_v40  ;;  %2109 = vmatmul.bf16.vlgmr.msra.gmra.mxu3 %v2085_v43 }
 0xb6c   :  { %2122 = vmatmul.bf16.vlgmr.msrb.gmra.mxu0 %v2084_v40  ;;  %2135 = vmatmul.bf16.vlgmr.msrb.gmra.mxu1 %v2085_v43 }
 0xbe9   :  { %v2123_v29 = vpop.f32.mrf.mxu0  ;;  %v2136_v50 = vpop.f32.mrf.mxu1 }
 0xbea   :  { %v2124_v37 = vadd.f32 %v2123_v29, %v2011_v47 }
 0xbec   :  { %v2137_v54 = vadd.f32 %v2136_v50, %v2124_v37 }
 0xbee   :  { %v2141_v17 = vadd.f32 %v2137_v54, %v3235_v35  ;;  %v2097_v0 = vpop.f32.mrf.mxu2  ;;  %v2110_v12 = vpop.f32.mrf.mxu3 }
 0xbef   :  { %v2098_v42 = vadd.f32 %v2097_v0, %v2010_v58 }
 0xbf0   :  { %vm2143_vm13 = vcmp.gt.f32.partialorder %v2141_v17, 0.001 }
 0xbf1   :  { %v2145_v7 = vsel %vm2143_vm13, %v2141_v17, 0.0  ;;  %v2111_v10 = vadd.f32 %v2110_v12, %v2098_v42  ;;  %v2125_v13 = vpop.f32.mrf.mxu0  ;;  %v2138_v49 = vpop.f32.mrf.mxu1 }
 0xbf2   :  { %2147 = vst [vmem:[#allocation13 + $0x8] sm:$0xff] %v2145_v7 }
 0xbf3   :  { %v2140_v53 = vadd.f32 %v2111_v10, %v3239_v61 }
 0xbf5   :  { %vm2142_vm14 = vcmp.gt.f32.partialorder %v2140_v53, 0.001 }
 0xbf6   :  { %v2144_v35 = vsel %vm2142_vm14, %v2140_v53, 0.0  ;;  %v2099_v57 = vpop.f32.mrf.mxu2  ;;  %v2112_v60 = vpop.f32.mrf.mxu3 }
 0xbf7   :  { %2146 = vst [vmem:[#allocation13] sm:$0xff] %v2144_v35 }
 0xbf8   :  { %2158 = dma.vmem_to_hbm [thread:$0]  %s2154_s18, 256, %s2156_s21, [#allocation4]  }
 0xbf9   :  { %2855 = dma.done.wait [#allocation4], 256  }
 0xbfa   :  { %2856 = vsyncadd [#allocation4], 4294967040 }
 0xbfb   :  { %2163 = vsyncpa [#allocation3], 1 }
 0xbfc   :  { %2164 = vsyncpa [#allocation6], 1 }
 0xbfd   :  { %2165 = vsyncpa [#allocation9], 1 }
 0xbfe   :  { %2166 = vsyncpa [#allocation12], 1 }
 0xbff   :  { %2167 = vsyncpa [#allocation4], 1 }

</bundles_post_ra>
